<compile_context>
chip_gen: v7x
topology: tpu7x:2x2x1
jax: 0.10.0
libtpu: 0.0.40
codegen_flags: <defaults>
</compile_context>

<pallas_src>
import jax
import jax.numpy as jnp
from jax.experimental import pallas as pl
from jax.experimental.pallas import tpu as pltpu

INPUT_DIM = 5
NOISE_DIM = 100
OUTPUT_DIM = 6
H1, H2, H3 = 256, 512, 1024

K1_PAD = 128     # padded contraction dim of layer 1 (105 -> 128)
OUT_PAD = 128    # padded output dim of layer 4 (6 -> 128)


def _round_up(n, m):
    return ((n + m - 1) // m) * m


def generator_kernel(xc_ref,
                     w1_ref, b1_ref,
                     w2_ref, b2_ref,
                     w3_ref, b3_ref,
                     w4_ref, b4_ref,
                     out_ref):
    # Layer 1: (TB, 128) bf16 @ (128, 256) bf16 -> f32, + bias, ReLU
    h = jnp.dot(xc_ref[...], w1_ref[...], preferred_element_type=jnp.float32)
    h = jnp.maximum(h + b1_ref[...], 0.0)
    # Layer 2: (TB, 256) @ (256, 512)
    h = jnp.dot(h.astype(jnp.bfloat16), w2_ref[...],
                preferred_element_type=jnp.float32)
    h = jnp.maximum(h + b2_ref[...], 0.0)
    # Layer 3: (TB, 512) @ (512, 1024)
    h = jnp.dot(h.astype(jnp.bfloat16), w3_ref[...],
                preferred_element_type=jnp.float32)
    h = jnp.maximum(h + b3_ref[...], 0.0)
    # Layer 4: (TB, 1024) @ (1024, 128-padded), lane-dense store
    h = jnp.dot(h.astype(jnp.bfloat16), w4_ref[...],
                preferred_element_type=jnp.float32)
    out_ref[...] = (h + b4_ref[...]).astype(out_ref.dtype)


def prepare_params(params):
    """Cast weights to bf16, zero-pad layer-1 K (105->128) and layer-4 N (6->128)."""
    (w1, b1), (w2, b2), (w3, b3), (w4, b4) = params
    k_in = INPUT_DIM + NOISE_DIM

    w1p = jnp.zeros((K1_PAD, H1), jnp.bfloat16)
    w1p = w1p.at[:k_in, :].set(w1.astype(jnp.bfloat16))

    w4p = jnp.zeros((H3, OUT_PAD), jnp.bfloat16)
    w4p = w4p.at[:, :OUTPUT_DIM].set(w4.astype(jnp.bfloat16))
    b4p = jnp.zeros((1, OUT_PAD), jnp.float32)
    b4p = b4p.at[:, :OUTPUT_DIM].set(b4.astype(jnp.float32))

    return (w1p, b1.astype(jnp.float32),
            w2.astype(jnp.bfloat16), b2.astype(jnp.float32),
            w3.astype(jnp.bfloat16), b3.astype(jnp.float32),
            w4p, b4p)


def generator_forward(x, noise, prepped, tb=128):
    """x: (B, 5) f32, noise: (B, 100) f32 -> (B, 6) f32."""
    w1, b1, w2, b2, w3, b3, w4, b4 = prepped
    B = x.shape[0]
    # Cap the batch tile so double-buffered activation tiles stay comfortably
    # inside v7x's 64 MiB VMEM while still feeding the MXU with >=128 rows.
    tb = max(128, min(tb, 1024))
    Bp = _round_up(B, tb)

    # Fold concat([x, noise]) + K padding + batch padding + bf16 cast into one
    # padded activation slab produced directly in its final layout.
    xc = jnp.zeros((Bp, K1_PAD), jnp.bfloat16)
    xc = xc.at[:B, :INPUT_DIM].set(x.astype(jnp.bfloat16))
    xc = xc.at[:B, INPUT_DIM:INPUT_DIM + NOISE_DIM].set(noise.astype(jnp.bfloat16))

    grid = (Bp // tb,)

    flops = 2 * Bp * (K1_PAD * H1 + H1 * H2 + H2 * H3 + H3 * OUT_PAD)
    weight_bytes = sum(int(a.size) * a.dtype.itemsize
                       for a in (w1, b1, w2, b2, w3, b3, w4, b4))
    io_bytes = int(xc.size) * 2 + Bp * OUT_PAD * 4
    cost = pl.CostEstimate(flops=flops, transcendentals=0,
                           bytes_accessed=weight_bytes + io_bytes)

    out_padded = pl.pallas_call(
        generator_kernel,
        out_shape=jax.ShapeDtypeStruct((Bp, OUT_PAD), jnp.float32),
        grid=grid,
        in_specs=[
            pl.BlockSpec((tb, K1_PAD), lambda i: (i, 0)),   # activations: tiled over batch
            pl.BlockSpec(w1.shape, lambda i: (0, 0)),       # weights/biases: VMEM-resident
            pl.BlockSpec(b1.shape, lambda i: (0, 0)),
            pl.BlockSpec(w2.shape, lambda i: (0, 0)),
            pl.BlockSpec(b2.shape, lambda i: (0, 0)),
            pl.BlockSpec(w3.shape, lambda i: (0, 0)),
            pl.BlockSpec(b3.shape, lambda i: (0, 0)),
            pl.BlockSpec(w4.shape, lambda i: (0, 0)),
            pl.BlockSpec(b4.shape, lambda i: (0, 0)),
        ],
        out_specs=pl.BlockSpec((tb, OUT_PAD), lambda i: (i, 0)),
        compiler_params=pltpu.CompilerParams(
            dimension_semantics=("parallel",),
            vmem_limit_bytes=32 * 1024 * 1024,
        ),
        cost_estimate=cost,
    )(xc, w1, b1, w2, b2, w3, b3, w4, b4)

    return out_padded[:B, :OUTPUT_DIM]


def init_params(key):
    """PyTorch nn.Linear-style init (U(-k, k), k=1/sqrt(fan_in)); f32 master copies."""
    dims = [(INPUT_DIM + NOISE_DIM, H1), (H1, H2), (H2, H3), (H3, OUTPUT_DIM)]
    params = []
    for (fan_in, fan_out) in dims:
        key, kw, kb = jax.random.split(key, 3)
        bound = 1.0 / jnp.sqrt(fan_in)
        w = jax.random.uniform(kw, (fan_in, fan_out), jnp.float32, -bound, bound)
        b = jax.random.uniform(kb, (1, fan_out), jnp.float32, -bound, bound)
        params.append((w, b))
    return params


def reference_forward_f32(x, noise, params):
    """Spec semantics: full f32."""
    h = jnp.concatenate([x, noise], axis=1)
    (w1, b1), (w2, b2), (w3, b3), (w4, b4) = params
    h = jnp.maximum(h @ w1 + b1, 0.0)
    h = jnp.maximum(h @ w2 + b2, 0.0)
    h = jnp.maximum(h @ w3 + b3, 0.0)
    return h @ w4 + b4


def reference_forward_mixed(x, noise, params):
    """Emulates the kernel numerics: bf16 matmul inputs, f32 accumulation."""
    h = jnp.concatenate([x, noise], axis=1).astype(jnp.bfloat16)
    (w1, b1), (w2, b2), (w3, b3), (w4, b4) = params

    def lin(a, w, b):
        y = jnp.dot(a.astype(jnp.bfloat16), w.astype(jnp.bfloat16),
                    preferred_element_type=jnp.float32)
        return y + b.astype(jnp.float32)

    h = jnp.maximum(lin(h, w1, b1), 0.0)
    h = jnp.maximum(lin(h, w2, b2), 0.0)
    h = jnp.maximum(lin(h, w3, b3), 0.0)
    return lin(h, w4, b4)


if __name__ == "__main__":
    key = jax.random.PRNGKey(0)
    kx, kn, kp = jax.random.split(key, 3)

    B = 256  # two batch tiles of 128 -> exercises the grid / weight residency
    x = jax.random.normal(kx, (B, INPUT_DIM), jnp.float32)
    noise = jax.random.normal(kn, (B, NOISE_DIM), jnp.float32)

    params = init_params(kp)
    prepped = prepare_params(params)

    out = generator_forward(x, noise, prepped, tb=128)
    out = jax.block_until_ready(out)
    assert out.shape == (B, OUTPUT_DIM), out.shape

    # Tight check vs. a JAX reference with identical mixed-precision numerics.
    ref_mixed = reference_forward_mixed(x, noise, params)
    assert jnp.allclose(out, ref_mixed, atol=1e-2, rtol=1e-2), "mismatch vs mixed-precision ref"

    # Loose sanity check vs. the full-f32 spec reference (bf16 weight rounding).
    ref_f32 = reference_forward_f32(x, noise, params)
    assert jnp.allclose(out, ref_f32, atol=7e-2, rtol=7e-2), "mismatch vs f32 ref"

    print("KERNEL_OK")
</pallas_src>

<mosaic_0001>
module attributes {stable_mosaic.version = 11 : i64} {
  func.func @generator_kernel(%arg0: i32, %arg1: memref<128x128xbf16, #tpu.memory_space<vmem>>, %arg2: memref<128x256xbf16, #tpu.memory_space<vmem>>, %arg3: memref<1x256xf32, #tpu.memory_space<vmem>>, %arg4: memref<256x512xbf16, #tpu.memory_space<vmem>>, %arg5: memref<1x512xf32, #tpu.memory_space<vmem>>, %arg6: memref<512x1024xbf16, #tpu.memory_space<vmem>>, %arg7: memref<1x1024xf32, #tpu.memory_space<vmem>>, %arg8: memref<1024x128xbf16, #tpu.memory_space<vmem>>, %arg9: memref<1x128xf32, #tpu.memory_space<vmem>>, %arg10: memref<128x128xf32, #tpu.memory_space<vmem>>) attributes {dimension_semantics = [#tpu.dimension_semantics<parallel>], iteration_bounds = array<i64: 2>, scalar_prefetch = 0 : i64, scratch_operands = 0 : i64, tpu.core_type = #tpu.core_type<tc>, window_params = [{transform_indices = @transform_0, window_bounds = array<i64: 128, 128>}, {pipeline_mode = #tpu.pipeline_mode<synchronous>, transform_indices = @transform_1, window_bounds = array<i64: 128, 256>}, {pipeline_mode = #tpu.pipeline_mode<synchronous>, transform_indices = @transform_2, window_bounds = array<i64: 1, 256>}, {pipeline_mode = #tpu.pipeline_mode<synchronous>, transform_indices = @transform_3, window_bounds = array<i64: 256, 512>}, {pipeline_mode = #tpu.pipeline_mode<synchronous>, transform_indices = @transform_4, window_bounds = array<i64: 1, 512>}, {pipeline_mode = #tpu.pipeline_mode<synchronous>, transform_indices = @transform_5, window_bounds = array<i64: 512, 1024>}, {pipeline_mode = #tpu.pipeline_mode<synchronous>, transform_indices = @transform_6, window_bounds = array<i64: 1, 1024>}, {pipeline_mode = #tpu.pipeline_mode<synchronous>, transform_indices = @transform_7, window_bounds = array<i64: 1024, 128>}, {pipeline_mode = #tpu.pipeline_mode<synchronous>, transform_indices = @transform_8, window_bounds = array<i64: 1, 128>}, {transform_indices = @transform_9, window_bounds = array<i64: 128, 128>}]} {
    %c0 = arith.constant 0 : index
    %c0_0 = arith.constant 0 : index
    %0 = vector.load %arg1[%c0, %c0_0] : memref<128x128xbf16, #tpu.memory_space<vmem>>, vector<128x128xbf16>
    %c0_1 = arith.constant 0 : index
    %c0_2 = arith.constant 0 : index
    %1 = vector.load %arg2[%c0_1, %c0_2] : memref<128x256xbf16, #tpu.memory_space<vmem>>, vector<128x256xbf16>
    %cst = arith.constant dense<0.000000e+00> : vector<128x256xf32>
    %2 = tpu.matmul %0, %1, %cst {dimension_numbers = #tpu.dot_dimension_numbers<[1], [0], [0], [1], [0, 0, 1, 1], [], []>} : vector<128x128xbf16>, vector<128x256xbf16>, vector<128x256xf32> -> vector<128x256xf32>
    %c0_3 = arith.constant 0 : index
    %c0_4 = arith.constant 0 : index
    %3 = vector.load %arg3[%c0_3, %c0_4] : memref<1x256xf32, #tpu.memory_space<vmem>>, vector<1x256xf32>
    %4 = vector.broadcast %3 : vector<1x256xf32> to vector<128x256xf32>
    %5 = arith.addf %2, %4 : vector<128x256xf32>
    %cst_5 = arith.constant 0.000000e+00 : f32
    %6 = vector.broadcast %cst_5 : f32 to vector<128x256xf32>
    %7 = arith.maximumf %5, %6 : vector<128x256xf32>
    %8 = arith.truncf %7 : vector<128x256xf32> to vector<128x256xbf16>
    %c0_6 = arith.constant 0 : index
    %c0_7 = arith.constant 0 : index
    %9 = vector.load %arg4[%c0_6, %c0_7] : memref<256x512xbf16, #tpu.memory_space<vmem>>, vector<256x512xbf16>
    %cst_8 = arith.constant dense<0.000000e+00> : vector<128x512xf32>
    %10 = tpu.matmul %8, %9, %cst_8 {dimension_numbers = #tpu.dot_dimension_numbers<[1], [0], [0], [1], [0, 0, 1, 1], [], []>} : vector<128x256xbf16>, vector<256x512xbf16>, vector<128x512xf32> -> vector<128x512xf32>
    %c0_9 = arith.constant 0 : index
    %c0_10 = arith.constant 0 : index
    %11 = vector.load %arg5[%c0_9, %c0_10] : memref<1x512xf32, #tpu.memory_space<vmem>>, vector<1x512xf32>
    %12 = vector.broadcast %11 : vector<1x512xf32> to vector<128x512xf32>
    %13 = arith.addf %10, %12 : vector<128x512xf32>
    %cst_11 = arith.constant 0.000000e+00 : f32
    %14 = vector.broadcast %cst_11 : f32 to vector<128x512xf32>
    %15 = arith.maximumf %13, %14 : vector<128x512xf32>
    %16 = arith.truncf %15 : vector<128x512xf32> to vector<128x512xbf16>
    %c0_12 = arith.constant 0 : index
    %c0_13 = arith.constant 0 : index
    %17 = vector.load %arg6[%c0_12, %c0_13] : memref<512x1024xbf16, #tpu.memory_space<vmem>>, vector<512x1024xbf16>
    %cst_14 = arith.constant dense<0.000000e+00> : vector<128x1024xf32>
    %18 = tpu.matmul %16, %17, %cst_14 {dimension_numbers = #tpu.dot_dimension_numbers<[1], [0], [0], [1], [0, 0, 1, 1], [], []>} : vector<128x512xbf16>, vector<512x1024xbf16>, vector<128x1024xf32> -> vector<128x1024xf32>
    %c0_15 = arith.constant 0 : index
    %c0_16 = arith.constant 0 : index
    %19 = vector.load %arg7[%c0_15, %c0_16] : memref<1x1024xf32, #tpu.memory_space<vmem>>, vector<1x1024xf32>
    %20 = vector.broadcast %19 : vector<1x1024xf32> to vector<128x1024xf32>
    %21 = arith.addf %18, %20 : vector<128x1024xf32>
    %cst_17 = arith.constant 0.000000e+00 : f32
    %22 = vector.broadcast %cst_17 : f32 to vector<128x1024xf32>
    %23 = arith.maximumf %21, %22 : vector<128x1024xf32>
    %24 = arith.truncf %23 : vector<128x1024xf32> to vector<128x1024xbf16>
    %c0_18 = arith.constant 0 : index
    %c0_19 = arith.constant 0 : index
    %25 = vector.load %arg8[%c0_18, %c0_19] : memref<1024x128xbf16, #tpu.memory_space<vmem>>, vector<1024x128xbf16>
    %cst_20 = arith.constant dense<0.000000e+00> : vector<128x128xf32>
    %26 = tpu.matmul %24, %25, %cst_20 {dimension_numbers = #tpu.dot_dimension_numbers<[1], [0], [0], [1], [0, 0, 1, 1], [], []>} : vector<128x1024xbf16>, vector<1024x128xbf16>, vector<128x128xf32> -> vector<128x128xf32>
    %c0_21 = arith.constant 0 : index
    %c0_22 = arith.constant 0 : index
    %27 = vector.load %arg9[%c0_21, %c0_22] : memref<1x128xf32, #tpu.memory_space<vmem>>, vector<1x128xf32>
    %28 = vector.broadcast %27 : vector<1x128xf32> to vector<128x128xf32>
    %29 = arith.addf %26, %28 : vector<128x128xf32>
    %c0_23 = arith.constant 0 : index
    %c0_24 = arith.constant 0 : index
    %30 = vector.load %arg10[%c0_23, %c0_24] : memref<128x128xf32, #tpu.memory_space<vmem>>, vector<128x128xf32>
    tpu.vector_store %arg10[%c0_23, %c0_24], %29 {strides = array<i32>} : memref<128x128xf32, #tpu.memory_space<vmem>>, vector<128x128xf32>,
    return
  }
  func.func @transform_0(%arg0: i32) -> (i32, i32) {
    %c0_i32 = arith.constant 0 : i32
    %c0_i32_0 = arith.constant 0 : i32
    return %arg0, %c0_i32 : i32, i32
  }
  func.func @transform_1(%arg0: i32) -> (i32, i32) {
    %c0_i32 = arith.constant 0 : i32
    %c0_i32_0 = arith.constant 0 : i32
    %c0_i32_1 = arith.constant 0 : i32
    return %c0_i32, %c0_i32_0 : i32, i32
  }
  func.func @transform_2(%arg0: i32) -> (i32, i32) {
    %c0_i32 = arith.constant 0 : i32
    %c0_i32_0 = arith.constant 0 : i32
    %c0_i32_1 = arith.constant 0 : i32
    return %c0_i32, %c0_i32_0 : i32, i32
  }
  func.func @transform_3(%arg0: i32) -> (i32, i32) {
    %c0_i32 = arith.constant 0 : i32
    %c0_i32_0 = arith.constant 0 : i32
    %c0_i32_1 = arith.constant 0 : i32
    return %c0_i32, %c0_i32_0 : i32, i32
  }
  func.func @transform_4(%arg0: i32) -> (i32, i32) {
    %c0_i32 = arith.constant 0 : i32
    %c0_i32_0 = arith.constant 0 : i32
    %c0_i32_1 = arith.constant 0 : i32
    return %c0_i32, %c0_i32_0 : i32, i32
  }
  func.func @transform_5(%arg0: i32) -> (i32, i32) {
    %c0_i32 = arith.constant 0 : i32
    %c0_i32_0 = arith.constant 0 : i32
    %c0_i32_1 = arith.constant 0 : i32
    return %c0_i32, %c0_i32_0 : i32, i32
  }
  func.func @transform_6(%arg0: i32) -> (i32, i32) {
    %c0_i32 = arith.constant 0 : i32
    %c0_i32_0 = arith.constant 0 : i32
    %c0_i32_1 = arith.constant 0 : i32
    return %c0_i32, %c0_i32_0 : i32, i32
  }
  func.func @transform_7(%arg0: i32) -> (i32, i32) {
    %c0_i32 = arith.constant 0 : i32
    %c0_i32_0 = arith.constant 0 : i32
    %c0_i32_1 = arith.constant 0 : i32
    return %c0_i32, %c0_i32_0 : i32, i32
  }
  func.func @transform_8(%arg0: i32) -> (i32, i32) {
    %c0_i32 = arith.constant 0 : i32
    %c0_i32_0 = arith.constant 0 : i32
    %c0_i32_1 = arith.constant 0 : i32
    return %c0_i32, %c0_i32_0 : i32, i32
  }
  func.func @transform_9(%arg0: i32) -> (i32, i32) {
    %c0_i32 = arith.constant 0 : i32
    %c0_i32_0 = arith.constant 0 : i32
    return %arg0, %c0_i32 : i32, i32
  }
}

</mosaic_0001>

<bundles_post_ra>
// kernel: tpu_custom_call.1
= control target key start
LH: loop header
LB: loop body
LE: loop exit
PB: predicated region body
PF: predicated region fallthrough
CT: control target
= control target key end

     0   :  { %s7969_s0 = inlined_call_operand.hbm [shape: bf16[256,128], index: 0, kind: input, shape index: {}]   ;;  %s7970_s1 = inlined_call_operand.hbm [shape: bf16[128,256], index: 1, kind: input, shape index: {}]   ;;  %s7971_s2 = inlined_call_operand.vmem [shape: f32[1,256], index: 2, kind: input, shape index: {}]   ;;  %s7972_s3 = inlined_call_operand.hbm [shape: bf16[256,512], index: 3, kind: input, shape index: {}]   ;;  %s7973_s4 = inlined_call_operand.vmem [shape: f32[1,512], index: 4, kind: input, shape index: {}]   ;;  %s7974_s5 = inlined_call_operand.hbm [shape: bf16[512,1024], index: 5, kind: input, shape index: {}]   ;;  %s7975_s6 = inlined_call_operand.vmem [shape: f32[1,1024], index: 6, kind: input, shape index: {}]   ;;  %s7976_s7 = inlined_call_operand.hbm [shape: bf16[1024,128], index: 7, kind: input, shape index: {}]   ;;  %s7977_s8 = inlined_call_operand.vmem [shape: f32[1,128], index: 8, kind: input, shape index: {}]   ;;  %s7978_s9 = inlined_call_operand.hbm [shape: f32[256,128], index: 9, kind: output, shape index: {}]  }
   0x1   :  { %7989 = sst [smem:[#allocation20_spill]] %s7970_s1 }
   0x2   :  { %14 = vsyncpa [#allocation3], 0 }
   0x3   :  { %16 = vsyncpa [#allocation3 + $0x1], 0 }
   0x4   :  { %17 = vsyncpa [#allocation6], 0 }
   0x5   :  { %18 = vsyncpa [#allocation9], 0 }
   0x6   :  { %19 = vsyncpa [#allocation4], 0 }
   0x7   :  { %21 = vsyncpa [#allocation4 + $0x1], 0  ;;  %s6731_s30 = smov 0   ;;  %s6733_s10 = smov 0  }
   0x8   :  { %s6735_s11 = smov 0   ;;  %s6737_s12 = smov 0  }
   0x9 LB: > { %7990 = sst [smem:[#allocation16_spill]] %s6650_s30  ;;  %s6752_s13 = sadd.s32 4294967295, %s6662_s12   ;;  %s6662_s12 = sphi %s6737_s12, %s8020_s12   ;;  %s6658_s11 = sphi %s6735_s11, %s8019_s11   ;;  %s6654_s10 = sphi %s6733_s10, %s8018_s10   ;;  %s6650_s30 = sphi %s6731_s30, %s8017_s30  }
   0xa   : > { %s5195_s14 = sadd.s32 4294967294, %s6662_s12   ;;  %p47_p0 = scmp.ne.s32.totalorder %s6654_s10, %s6650_s30 }
   0xb   : > { %p7979_p1 = scmp.eq.s32.totalorder %s6752_s13, 0  ;;  %p245_p3 = scmp.eq.s32.totalorder %s5195_s14, 1 }
   0xc   : > { %p5196_p5 = scmp.ge.s32.totalorder %s6662_s12, 1  ;;  %p252_p7 = scmp.lt.s32.totalorder %s6662_s12, 3 }
   0xd   : > { %p6761_p4 = por %p7979_p1, %p47_p0  ;;  %p6766_p6 = por %p245_p3, %p47_p0 }
   0xe   : > { %p6771_p8 = pnand %p5196_p5, %p252_p7  ;;  %s6664_s18 = smov [#allocation5]  }
   0xf   : > { %s7991_s15 = scalar_select %p6761_p4, 1, 0 }
  0x10   : > { %s7992_s16 = scalar_select %p6766_p6, 1, 0 }
  0x11   : > { %s7994_s17 = scalar_select %p6771_p8, 1, 0 }
  0x12   : > { %7993 = sst [smem:[#allocation17_spill]] %s7992_s16  ;;  %s264_s19 = sshll.u32 %s6664_s18, 4  ;;  %s6775_s19 = int_to_ptr.vmem [resolvable:$true] %s264_s19 }
  0x13   : > { %p6176_p9 = pneg %p6771_p8  ;;  %s6665_s21 = smov [#allocation8]  }
  0x14   : > { %s296_s22 = sshll.u32 %s6665_s21, 4  ;;  %s7996_s1 = sld [smem:[#allocation20_spill]]  ;;  %s6786_s22 = int_to_ptr.vmem [resolvable:$true] %s296_s22 }
  0x15   : > { %p6782_p11 = pnand %p6176_p9, %p7979_p1 }
  0x17   : > { %p6796_p13 = pneg %p6782_p11 }
  0x1a   : > { %s6446_s25 = scalar_lea.hbm %s7996_s1, 2048 }
  0x1b   : > { %p6447_p12 = scmp.ne.s32.totalorder %s7996_s1, %s6446_s25  ;;  %p6453_p5 = scmp.lt.u32.totalorder %s6446_s25, %s7996_s1 }
  0x1d   : > { %p6449_p0 = pnand %p6796_p13, %p6447_p12 }
  0x1f   : > { %p6450_p3 = pneg %p6449_p0 }
  0x21   : > { %p6455_p7 = pnand %p6453_p5, %p6450_p3 }
  0x23   : > { %6458 = shalt.err (!%p6455_p7)
}
  0x24   : > { %s6459_s18 = scalar_lea.vmem %s6775_s19, 2048  ;;  %p6467_p2 = scmp.lt.s32.totalorder %s6775_s19, %s6775_s19 }
  0x25   : > { %p6460_p9 = scmp.ne.s32.totalorder %s6775_s19, %s6459_s18  ;;  %p6468_p6 = scmp.lt.s32.totalorder %s6459_s18, %s6459_s18 }
  0x27   : > { %p6462_p10 = pnand %p6460_p9, %p6796_p13  ;;  %p6469_p12 = por %p6468_p6, %p6467_p2 }
  0x29   : > { %p6463_p1 = pneg %p6462_p10 }
  0x2b   : > { %p6470_p0 = pnand %p6469_p12, %p6463_p1 }
  0x2d   : > { %6473 = shalt.err (!%p6470_p0)
}
  0x2e   : > { %s6666_s21 = smov 128   ;;  %s6667_s23 = smov 8  }
  0x2f   : > { %6179 = dma.hbm_to_vmem [thread:$0]  (!%p6782_p11), %s7996_s1, 2048, %s6775_s19, [#allocation6], %s6666_s21, %s6666_s21, %s6667_s23  }
  0x30   : > { %s6474_s29 = scalar_lea.hbm %s7974_s5, 32768 }
  0x31   : > { %p6475_p2 = scmp.ne.s32.totalorder %s7974_s5, %s6474_s29  ;;  %p6481_p10 = scmp.lt.u32.totalorder %s6474_s29, %s7974_s5 }
  0x33   : > { %p6477_p1 = pnand %p6475_p2, %p6796_p13 }
  0x35   : > { %p6478_p6 = pneg %p6477_p1 }
  0x37   : > { %p6483_p3 = pnand %p6481_p10, %p6478_p6 }
  0x39   : > { %6486 = shalt.err (!%p6483_p3)
}
  0x3a   : > { %s6487_s19 = scalar_lea.vmem %s6786_s22, 32768  ;;  %p6495_p12 = scmp.lt.s32.totalorder %s6786_s22, %s6786_s22 }
  0x3b   : > { %p6488_p5 = scmp.ne.s32.totalorder %s6786_s22, %s6487_s19  ;;  %p6496_p0 = scmp.lt.s32.totalorder %s6487_s19, %s6487_s19 }
  0x3d   : > { %p6490_p7 = pnand %p6488_p5, %p6796_p13  ;;  %p6497_p2 = por %p6496_p0, %p6495_p12 }
  0x3f   : > { %p6491_p9 = pneg %p6490_p7 }
  0x41   : > { %p6498_p1 = pnand %p6497_p2, %p6491_p9 }
  0x43   : > { %6501 = shalt.err (!%p6498_p1)
}
  0x44   : > { %s6668_s16 = smov 512   ;;  %s6669_s30 = smov 32  }
  0x45   : > { %6185 = dma.hbm_to_vmem [thread:$0]  (!%p6782_p11), %s7974_s5, 32768, %s6786_s22, [#allocation9], %s6668_s16, %s6668_s16, %s6669_s30  }
  0x46   : > { %s6670_s24 = smov [#allocation7]   ;;  %s6502_s29 = scalar_lea.hbm %s7972_s3, 8192 }
  0x47   : > { %s280_s25 = sshll.u32 %s6670_s24, 4  ;;  %p6503_p6 = scmp.ne.s32.totalorder %s7972_s3, %s6502_s29  ;;  %s281_s25 = int_to_ptr.vmem [resolvable:$true] %s280_s25 }
  0x48   : > { %p6509_p5 = scmp.lt.u32.totalorder %s6502_s29, %s7972_s3 }
  0x49   : > { %p6505_p10 = pnand %p6503_p6, %p6796_p13 }
  0x4b   : > { %p6506_p3 = pneg %p6505_p10 }
  0x4d   : > { %p6511_p7 = pnand %p6509_p5, %p6506_p3 }
  0x4f   : > { %6514 = shalt.err (!%p6511_p7)
}
  0x50   : > { %s6515_s22 = scalar_lea.vmem %s281_s25, 8192  ;;  %p6523_p2 = scmp.lt.s32.totalorder %s281_s25, %s281_s25 }
  0x51   : > { %p6516_p9 = scmp.ne.s32.totalorder %s281_s25, %s6515_s22  ;;  %p6524_p1 = scmp.lt.s32.totalorder %s6515_s22, %s6515_s22 }
  0x53   : > { %p6518_p12 = pnand %p6516_p9, %p6796_p13  ;;  %p6525_p4 = por %p6524_p1, %p6523_p2 }
  0x55   : > { %p6519_p0 = pneg %p6518_p12 }
  0x57   : > { %p6526_p8 = pnand %p6525_p4, %p6519_p0 }
  0x59   : > { %6529 = shalt.err (!%p6526_p8)
}
  0x5a   : > { %s6671_s16 = smov 256   ;;  %s6672_s30 = smov 16  }
  0x5b   : > { %6182 = dma.hbm_to_vmem [thread:$0]  (!%p6782_p11), %s7972_s3, 8192, %s281_s25, [#allocation6], %s6671_s16, %s6671_s16, %s6672_s30  }
  0x5c   : > { %s6673_s23 = smov [#allocation10]   ;;  %s6530_s29 = scalar_lea.hbm %s7976_s7, 8192 }
  0x5d   : > { %s312_s24 = sshll.u32 %s6673_s23, 4  ;;  %p6531_p4 = scmp.ne.s32.totalorder %s7976_s7, %s6530_s29  ;;  %s313_s24 = int_to_ptr.vmem [resolvable:$true] %s312_s24 }
  0x5e   : > { %p6537_p10 = scmp.lt.u32.totalorder %s6530_s29, %s7976_s7 }
  0x5f   : > { %p6533_p8 = pnand %p6531_p4, %p6796_p13 }
  0x61   : > { %p6534_p6 = pneg %p6533_p8 }
  0x63   : > { %p6539_p3 = pnand %p6537_p10, %p6534_p6 }
  0x65   : > { %6542 = shalt.err (!%p6539_p3)
}
  0x66   : > { %s6543_s25 = scalar_lea.vmem %s313_s24, 8192  ;;  %p6551_p12 = scmp.lt.s32.totalorder %s313_s24, %s313_s24 }
  0x67   : > { %p6544_p5 = scmp.ne.s32.totalorder %s313_s24, %s6543_s25  ;;  %p6552_p0 = scmp.lt.s32.totalorder %s6543_s25, %s6543_s25 }
  0x69   : > { %p6546_p7 = pnand %p6544_p5, %p6796_p13  ;;  %p6553_p2 = por %p6552_p0, %p6551_p12 }
  0x6b   : > { %p6547_p9 = pneg %p6546_p7 }
  0x6d   : > { %p6554_p1 = pnand %p6553_p2, %p6547_p9 }
  0x6f   : > { %6557 = shalt.err (!%p6554_p1)
}
  0x70   : > { %s6674_s16 = smov 64   ;;  %s6675_s28 = smov 4  }
  0x71   : > { %6188 = dma.hbm_to_vmem [thread:$0]  (!%p6782_p11), %s7976_s7, 8192, %s313_s24, [#allocation9], %s6674_s16, %s6674_s16, %s6675_s28  }
  0x72   : > { %s6880_s21 = sadd.s32 1, %s6662_s12   ;;  %s34_s26 = sadd.s32 1, %s6658_s11 }
  0x73   : > { %s31_s23 = ssub.s32 %s6662_s12, %s6880_s21  ;;  %p41_p4 = scmp.ne.s32.totalorder %s6658_s11, %s6654_s10 }
  0x74   : > { %p32_p13 = scmp.eq.s32.totalorder %s31_s23, 0  ;;  %p42_p8 = scmp.eq.s32.totalorder %s6662_s12, 0 }
  0x75   : > { %p7998_p10 = scmp.eq.s32.totalorder %s6752_s13, 1  ;;  %p6201_p5 = scmp.lt.s32.totalorder %s6662_s12, 2 }
  0x76   : > { %s6889_s27 = scalar_select %p32_p13, %s6658_s11, %s34_s26  }
  0x77   : > { %p43_p6 = por %p42_p8, %p41_p4  ;;  %p6893_p3 = por %p7998_p10, %p41_p4 }
  0x78   : > { %s329_s29 = sand.u32 1, %s6658_s11   ;;  %s5626_s24 = sshll.u32 %s6662_s12, 10 }
  0x79   : > { %s5202_s14 = sshll.u32 %s329_s29, 6  ;;  %s6903_s22 = scalar_lea.hbm %s7969_s0, %s5626_s24 }
  0x7a   : > { %s333_s25 = scalar_lea.vmem [#allocation2], %s5202_s14  ;;  %p6907_p11 = pnand %p6201_p5, %p43_p6 }
  0x7b   : > { %s340_s30 = sshll.u32 %s333_s25, 4  ;;  %s6911_s23 = scalar_lea.sflag [#allocation3], %s329_s29  ;;  %s6905_s30 = int_to_ptr.vmem [resolvable:$true] %s340_s30 }
  0x7c   : > { %s6558_s26 = scalar_lea.hbm %s6903_s22, 1024  ;;  %p6560_p9 = pneg %p6907_p11 }
  0x7d   : > { %p6559_p7 = scmp.ne.s32.totalorder %s6903_s22, %s6558_s26  ;;  %s6563_s18 = scalar_lea.hbm %s7969_s0, 2048 }
  0x7e   : > { %p6564_p2 = scmp.lt.u32.totalorder %s6903_s22, %s7969_s0  ;;  %p6565_p1 = scmp.lt.u32.totalorder %s6563_s18, %s6558_s26 }
  0x7f   : > { %p6561_p12 = pnand %p6560_p9, %p6559_p7  ;;  %p6567_p4 = scmp.lt.u32.totalorder %s6558_s26, %s6903_s22 }
  0x80   : > { %p6566_p13 = por %p6565_p1, %p6564_p2 }
  0x81   : > { %p6562_p0 = pneg %p6561_p12 }
  0x82   : > { %p6568_p8 = por %p6567_p4, %p6566_p13 }
  0x84   : > { %p6569_p6 = pnand %p6568_p8, %p6562_p0 }
  0x86   : > { %6572 = shalt.err (!%p6569_p6)
}
  0x87   : > { %s6573_s29 = scalar_lea.vmem %s6905_s30, 1024  ;;  %s6676_s14 = smov [#allocation2]  }
  0x88   : > { %p6574_p10 = scmp.ne.s32.totalorder %s6905_s30, %s6573_s29  ;;  %s6578_s24 = sshll.u32 %s6676_s14, 4  ;;  %s6579_s24 = int_to_ptr.vmem [resolvable:$false] %s6578_s24 }
  0x89   : > { %s6580_s19 = scalar_lea.vmem %s6579_s24, 2048  ;;  %p6581_p12 = scmp.lt.s32.totalorder %s6905_s30, %s6579_s24 }
  0x8a   : > { %p6576_p5 = pnand %p6574_p10, %p6560_p9  ;;  %p6582_p2 = scmp.lt.s32.totalorder %s6580_s19, %s6573_s29 }
  0x8c   : > { %p6577_p7 = pneg %p6576_p5  ;;  %p6583_p1 = por %p6582_p2, %p6581_p12 }
  0x8e   : > { %p6584_p13 = pnand %p6583_p1, %p6577_p7 }
  0x90   : > { %6587 = shalt.err (!%p6584_p13)
}
  0x91   : > { %6192 = dma.hbm_to_vmem [thread:$0]  (!%p6907_p11), %s6903_s22, 1024, %s6905_s30, %s6911_s23, %s6674_s16, %s6674_s16, %s6675_s28  }
  0x92   : > { %p8001_p9 = scmp.ne.s32.totalorder %s7994_s17, 0 }
  0x94   : > { %352 = sbr.rel (%p8001_p9) target bundleno = 1363 (0x553), region = 56 }
  0x9b   : > { %s6945_s26 = sand.u32 1, %s6654_s10   ;;  %p8002_p0 = scmp.ne.s32.totalorder %s7991_s15, 0 }
  0x9c   : > { %s5206_s18 = sshll.u32 %s6945_s26, 6  ;;  %s355_s25 = scalar_lea.sflag [#allocation3], %s6945_s26 }
  0x9d   : > { %s6949_s29 = scalar_lea.vmem [#allocation2], %s5206_s18 }
  0x9e   : > { %6633 = dma.done.wait (%p8002_p0), %s355_s25, 1024  }
  0x9f   : > { %6635 = vsyncadd (%p8002_p0), %s355_s25, 4294966272  ;;  %p8003_p11 = scmp.eq.s32.totalorder %s6752_s13, 0 }
  0xa1   : > { %6637 = dma.done.wait (%p8003_p11), [#allocation6], 10240   ;;  %p8004_p4 = pmov %p8003_p11 }
  0xa3   : > { %6639 = vsyncadd (%p8004_p4), [#allocation6], 4294957056  ;;  %p8005_p8 = pmov %p8004_p4 }
  0xa4   : > { %p8006_p6 = pmov %p8004_p4 }
  0xa5   : > { %6641 = dma.done.wait (%p8005_p8), [#allocation9], 40960  }
  0xa6   : > { %6643 = vsyncadd (%p8006_p6), [#allocation9], 4294926336  ;;  %v6677_v0 = vmov 0   ;;  %v6254_v1 = vld [vmem:[#allocation5 + $0x4] ss:$8 sps:$4 sm:$0xff]   ;;  %v6280_v43 = vld [vmem:[%s6949_s29 + $0x10] sm:$0xff]  }
  0xa7   : > { %616 = vmatprep.mubr.bf16.mxu0 %v6677_v0  ;;  %v6256_v2 = vld [vmem:[#allocation5] ss:$8 sps:$4 sm:$0xff]   ;;  %584 = vmatprep.subr.bf16.mxu0 %v6254_v1  ;;  %v6257_v3 = vld [vmem:[#allocation5 + $0x14] ss:$8 sps:$4 sm:$0xff]   ;;  %v6259_v4 = vld [vmem:[#allocation5 + $0x10] ss:$8 sps:$4 sm:$0xff]  }
  0xa8   : > { %585 = vmatpush1.bf16.msra.mxu0 %v6256_v2  ;;  %v6260_v5 = vld [vmem:[#allocation5 + $0x24] ss:$8 sps:$4 sm:$0xff]   ;;  %v6262_v6 = vld [vmem:[#allocation5 + $0x20] ss:$8 sps:$4 sm:$0xff]   ;;  %v6263_v7 = vld [vmem:[#allocation5 + $0x34] ss:$8 sps:$4 sm:$0xff]  }
  0xa9   : > { %586 = vmatprep.subr.bf16.mxu0 %v6257_v3  ;;  %v6265_v8 = vld [vmem:[#allocation5 + $0x30] ss:$8 sps:$4 sm:$0xff]   ;;  %v6266_v9 = vld [vmem:[#allocation5 + $0x44] ss:$8 sps:$4 sm:$0xff]   ;;  %v6268_v10 = vld [vmem:[#allocation5 + $0x40] ss:$8 sps:$4 sm:$0xff]  }
  0xaa   : > { %v6269_v11 = vld [vmem:[#allocation5 + $0x54] ss:$8 sps:$4 sm:$0xff]   ;;  %v6271_v12 = vld [vmem:[#allocation5 + $0x50] ss:$8 sps:$4 sm:$0xff]   ;;  %v6272_v14 = vld [vmem:[#allocation5 + $0x64] ss:$8 sps:$4 sm:$0xff]  }
  0xab   : > { %v6286_v13 = vld [vmem:[#allocation7 + $0x4] ss:$16 sps:$4 sm:$0xff]   ;;  %v6291_v15 = vld [vmem:[#allocation7] ss:$16 sps:$4 sm:$0xff]   ;;  %v6290_v23 = vld [vmem:[#allocation7 + $0xc] ss:$16 sps:$4 sm:$0xff]  }
  0xac   : > { %587 = vmatpush1.bf16.msra.mxu0 %v6259_v4  ;;  %1151 = vmatprep.subr.bf16.mxu1 %v6286_v13  ;;  %v6292_v16 = vld [vmem:[#allocation7 + $0x24] ss:$16 sps:$4 sm:$0xff]   ;;  %v6274_v17 = vld [vmem:[#allocation5 + $0x60] ss:$8 sps:$4 sm:$0xff]   ;;  %v6277_v21 = vld [vmem:[#allocation5 + $0x70] ss:$8 sps:$4 sm:$0xff]  }
  0xad   : > { %588 = vmatprep.subr.bf16.mxu0 %v6260_v5  ;;  %v6275_v18 = vld [vmem:[#allocation5 + $0x74] ss:$8 sps:$4 sm:$0xff]   ;;  %1152 = vmatpush1.bf16.msra.mxu1 %v6291_v15  ;;  %v6297_v19 = vld [vmem:[#allocation7 + $0x20] ss:$16 sps:$4 sm:$0xff]   ;;  %v6288_v26 = vld [vmem:[#allocation7 + $0x8] ss:$16 sps:$4 sm:$0xff]  }
  0xae   : > { %1153 = vmatprep.subr.bf16.mxu1 %v6292_v16  ;;  %v6298_v20 = vld [vmem:[#allocation7 + $0x44] ss:$16 sps:$4 sm:$0xff]   ;;  %v6303_v22 = vld [vmem:[#allocation7 + $0x40] ss:$16 sps:$4 sm:$0xff]   ;;  %v6296_v27 = vld [vmem:[#allocation7 + $0x2c] ss:$16 sps:$4 sm:$0xff]  }
  0xaf   : > { %v6304_v24 = vld [vmem:[#allocation7 + $0x64] ss:$16 sps:$4 sm:$0xff]   ;;  %v6309_v28 = vld [vmem:[#allocation7 + $0x60] ss:$16 sps:$4 sm:$0xff]   ;;  %v6294_v30 = vld [vmem:[#allocation7 + $0x28] ss:$16 sps:$4 sm:$0xff]  }
  0xb0   : > { %589 = vmatpush1.bf16.msra.mxu0 %v6262_v6  ;;  %v6278_v25 = vld [vmem:[%s6949_s29] sm:$0xff]   ;;  %v6302_v31 = vld [vmem:[#allocation7 + $0x4c] ss:$16 sps:$4 sm:$0xff]   ;;  %v6300_v35 = vld [vmem:[#allocation7 + $0x48] ss:$16 sps:$4 sm:$0xff]   ;;  %s5211_s14 = sshll.u32 %s6945_s26, 7 }
  0xb1   : > { %590 = vmatprep.subr.bf16.mxu0 %v6263_v7  ;;  %1154 = vmatpush1.bf16.msra.mxu1 %v6297_v19  ;;  %v6310_v29 = vld [vmem:[#allocation7 + $0x84] ss:$16 sps:$4 sm:$0xff]   ;;  %v6315_v32 = vld [vmem:[#allocation7 + $0x80] ss:$16 sps:$4 sm:$0xff]   ;;  %v6279_v34 = vld [vmem:[%s6949_s29 + $0x8] sm:$0xff]   ;;  %s7886_s24 = scalar_lea.vmem [#allocation11], %s5211_s14 }
  0xb2   : > { %1155 = vmatprep.subr.bf16.mxu1 %v6298_v20  ;;  %v6316_v33 = vld [vmem:[#allocation7 + $0xa4] ss:$16 sps:$4 sm:$0xff]   ;;  %v6308_v36 = vld [vmem:[#allocation7 + $0x6c] ss:$16 sps:$4 sm:$0xff]   ;;  %v6321_v37 = vld [vmem:[#allocation7 + $0xa0] ss:$16 sps:$4 sm:$0xff]  }
  0xb3   : > { %v6322_v38 = vld [vmem:[#allocation7 + $0xc4] ss:$16 sps:$4 sm:$0xff]   ;;  %v6306_v39 = vld [vmem:[#allocation7 + $0x68] ss:$16 sps:$4 sm:$0xff]   ;;  %v6314_v40 = vld [vmem:[#allocation7 + $0x8c] ss:$16 sps:$4 sm:$0xff]  }
  0xb4   : > { %591 = vmatpush1.bf16.msra.mxu0 %v6265_v8  ;;  %v6327_v41 = vld [vmem:[#allocation7 + $0xc0] ss:$16 sps:$4 sm:$0xff]   ;;  %v6328_v42 = vld [vmem:[#allocation7 + $0xe4] ss:$16 sps:$4 sm:$0xff]   ;;  %v6312_v44 = vld [vmem:[#allocation7 + $0x88] ss:$16 sps:$4 sm:$0xff]  }
  0xb5   : > { %592 = vmatprep.subr.bf16.mxu0 %v6266_v9  ;;  %1156 = vmatpush1.bf16.msra.mxu1 %v6303_v22  ;;  %v6320_v45 = vld [vmem:[#allocation7 + $0xac] ss:$16 sps:$4 sm:$0xff]   ;;  %v6333_v46 = vld [vmem:[#allocation7 + $0xe0] ss:$16 sps:$4 sm:$0xff]   ;;  %v6334_v47 = vld [vmem:[#allocation7 + $0x104] ss:$16 sps:$4 sm:$0xff]  }
  0xb6   : > { %1157 = vmatprep.subr.bf16.mxu1 %v6304_v24  ;;  %v6318_v48 = vld [vmem:[#allocation7 + $0xa8] ss:$16 sps:$4 sm:$0xff]   ;;  %v6326_v50 = vld [vmem:[#allocation7 + $0xcc] ss:$16 sps:$4 sm:$0xff]   ;;  %v6339_v51 = vld [vmem:[#allocation7 + $0x100] ss:$16 sps:$4 sm:$0xff]  }
  0xb7   : > { %v6281_v49 = vld [vmem:[%s6949_s29 + $0x18] sm:$0xff]   ;;  %v6340_v52 = vld [vmem:[#allocation7 + $0x124] ss:$16 sps:$4 sm:$0xff]   ;;  %v6345_v55 = vld [vmem:[#allocation7 + $0x120] ss:$16 sps:$4 sm:$0xff]   ;;  %s5627_s19 = sshll.u32 %s6752_s13, 11 }
  0xb8   : > { %593 = vmatpush1.bf16.msra.mxu0 %v6268_v10  ;;  %v6324_v53 = vld [vmem:[#allocation7 + $0xc8] ss:$16 sps:$4 sm:$0xff]   ;;  %v6332_v54 = vld [vmem:[#allocation7 + $0xec] ss:$16 sps:$4 sm:$0xff]   ;;  %v6346_v56 = vld [vmem:[#allocation7 + $0x144] ss:$16 sps:$4 sm:$0xff]   ;;  %s7921_s15 = scalar_lea.hbm %s7978_s9, %s5627_s19 }
  0xb9   : > { %594 = vmatprep.subr.bf16.mxu0 %v6269_v11  ;;  %1158 = vmatpush1.bf16.msra.mxu1 %v6309_v28  ;;  %v6330_v57 = vld [vmem:[#allocation7 + $0xe8] ss:$16 sps:$4 sm:$0xff]   ;;  %v6338_v58 = vld [vmem:[#allocation7 + $0x10c] ss:$16 sps:$4 sm:$0xff]   ;;  %v6351_v59 = vld [vmem:[#allocation7 + $0x140] ss:$16 sps:$4 sm:$0xff]  }
  0xba   : > { %1159 = vmatprep.subr.bf16.mxu1 %v6310_v29  ;;  %v6352_v60 = vld [vmem:[#allocation7 + $0x164] ss:$16 sps:$4 sm:$0xff]   ;;  %v6336_v62 = vld [vmem:[#allocation7 + $0x108] ss:$16 sps:$4 sm:$0xff]   ;;  %v6344_v63 = vld [vmem:[#allocation7 + $0x12c] ss:$16 sps:$4 sm:$0xff]  }
  0xbb   : > { %v6282_v61 = vld [vmem:[%s6949_s29 + $0x20] sm:$0xff]   ;;  %v6342_v3 = vld [vmem:[#allocation7 + $0x128] ss:$16 sps:$4 sm:$0xff]   ;;  %v6350_v4 = vld [vmem:[#allocation7 + $0x14c] ss:$16 sps:$4 sm:$0xff]   ;;  %s5084_s18 = sshll.u32 %s7886_s24, 4  ;;  %s7923_s18 = int_to_ptr.vmem [resolvable:$true] %s5084_s18 }
  0xbc   : > { %595 = vmatpush1.bf16.msra.mxu0 %v6271_v12  ;;  %v6357_v1 = vld [vmem:[#allocation7 + $0x160] ss:$16 sps:$4 sm:$0xff]   ;;  %v6358_v2 = vld [vmem:[#allocation7 + $0x184] ss:$16 sps:$4 sm:$0xff]   ;;  %v6283_v7 = vld [vmem:[%s6949_s29 + $0x28] sm:$0xff]   ;;  %s5071_s17 = scalar_lea.sflag [#allocation4], %s6945_s26 }
  0xbd   : > { %596 = vmatprep.subr.bf16.mxu0 %v6272_v14  ;;  %1160 = vmatpush1.bf16.msra.mxu1 %v6315_v32  ;;  %v6363_v5 = vld [vmem:[#allocation7 + $0x180] ss:$16 sps:$4 sm:$0xff]   ;;  %v6364_v6 = vld [vmem:[#allocation7 + $0x1a4] ss:$16 sps:$4 sm:$0xff]   ;;  %v6348_v8 = vld [vmem:[#allocation7 + $0x148] ss:$16 sps:$4 sm:$0xff]  }
  0xbe   : > { %1161 = vmatprep.subr.bf16.mxu1 %v6316_v33  ;;  %v6356_v9 = vld [vmem:[#allocation7 + $0x16c] ss:$16 sps:$4 sm:$0xff]   ;;  %v6354_v10 = vld [vmem:[#allocation7 + $0x168] ss:$16 sps:$4 sm:$0xff]   ;;  %v6284_v12 = vld [vmem:[%s6949_s29 + $0x30] sm:$0xff]   ;;  %v446_v33 = vlaneseq  ;;  %s6588_s16 = scalar_lea.vmem %s7923_s18, 2048 }
  0xbf   : > { %v6362_v11 = vld [vmem:[#allocation7 + $0x18c] ss:$16 sps:$4 sm:$0xff]   ;;  %v6360_v13 = vld [vmem:[#allocation7 + $0x188] ss:$16 sps:$4 sm:$0xff]   ;;  %v6376_v22 = vld [vmem:[#allocation7 + $0x1e4] ss:$16 sps:$4 sm:$0xff]   ;;  %p6589_p10 = scmp.ne.s32.totalorder %s7923_s18, %s6588_s16 }
  0xc0   : > { %597 = vmatpush1.bf16.msra.mxu0 %v6274_v17  ;;  %v6368_v14 = vld [vmem:[#allocation7 + $0x1ac] ss:$16 sps:$4 sm:$0xff]   ;;  %v6366_v15 = vld [vmem:[#allocation7 + $0x1a8] ss:$16 sps:$4 sm:$0xff]   ;;  %v6369_v17 = vld [vmem:[#allocation7 + $0x1a0] ss:$16 sps:$4 sm:$0xff]  }
  0xc1   : > { %598 = vmatprep.subr.bf16.mxu0 %v6275_v18  ;;  %1162 = vmatpush1.bf16.msra.mxu1 %v6321_v37  ;;  %v6285_v16 = vld [vmem:[%s6949_s29 + $0x38] sm:$0xff]   ;;  %v6370_v18 = vld [vmem:[#allocation7 + $0x1c4] ss:$16 sps:$4 sm:$0xff]   ;;  %p6590_p5 = pnand %p6589_p10, %p6893_p3  ;;  %s6678_s13 = smov [#allocation11]  }
  0xc2   : > { %1163 = vmatprep.subr.bf16.mxu1 %v6322_v38  ;;  %v6374_v19 = vld [vmem:[#allocation7 + $0x1cc] ss:$16 sps:$4 sm:$0xff]   ;;  %v6372_v20 = vld [vmem:[#allocation7 + $0x1c8] ss:$16 sps:$4 sm:$0xff]   ;;  %s6592_s28 = sshll.u32 %s6678_s13, 4  ;;  %s6593_s28 = int_to_ptr.vmem [resolvable:$false] %s6592_s28 }
  0xc3   : > { %v6378_v24 = vld [vmem:[#allocation7 + $0x1e8] ss:$16 sps:$4 sm:$0xff]   ;;  %p6591_p7 = pneg %p6590_p5  ;;  %s6594_s22 = scalar_lea.vmem %s6593_s28, 4096 }
  0xc4   : > { %599 = vmatpush1.bf16.msra.mxu0 %v6277_v21  ;;  %v6375_v21 = vld [vmem:[#allocation7 + $0x1c0] ss:$16 sps:$4 sm:$0xff]   ;;  %p6595_p12 = scmp.lt.s32.totalorder %s7923_s18, %s6593_s28  ;;  %p6596_p2 = scmp.lt.s32.totalorder %s6594_s22, %s6588_s16 }
  0xc5   : > { %1264 = vmatprep.subr.bf16.mxu0 %v6290_v23  ;;  %1164 = vmatpush1.bf16.msra.mxu1 %v6327_v41  ;;  %v6380_v23 = vld [vmem:[#allocation7 + $0x1ec] ss:$16 sps:$4 sm:$0xff]  }
  0xc6   : > { %1165 = vmatprep.subr.bf16.mxu1 %v6328_v42  ;;  %p6597_p1 = por %p6596_p2, %p6595_p12 }
  0xc7   : > { %617 = vmatmul.mubr.bf16.vlgmr.msra.gmra.mrb[0].mxu0 %v6278_v25  ;;  %v6381_v25 = vld [vmem:[#allocation7 + $0x1e0] ss:$16 sps:$4 sm:$0xff]  }
  0xc8   : > { %626 = vmatprep.mubr.bf16.mxu0 %v6677_v0  ;;  %1265 = vmatpush1.bf16.msra.mxu0 %v6288_v26  ;;  %v1477_v26 = vld [vmem:[#allocation8 + $0x20] sm:$0xff]  ;;  %p6598_p13 = pnand %p6597_p1, %p6591_p7 }
  0xc9   : > { %1266 = vmatprep.subr.bf16.mxu0 %v6296_v27  ;;  %1166 = vmatpush1.bf16.msra.mxu1 %v6333_v46  ;;  %v1474_v27 = vld [vmem:[#allocation8 + $0x8] sm:$0xff] }
  0xca   : > { %1167 = vmatprep.subr.bf16.mxu1 %v6334_v47 }
  0xcc   : > { %1267 = vmatpush1.bf16.msra.mxu0 %v6294_v30  ;;  %v1478_v30 = vld [vmem:[#allocation8 + $0x28] sm:$0xff] }
  0xcd   : > { %1268 = vmatprep.subr.bf16.mxu0 %v6302_v31  ;;  %1168 = vmatpush1.bf16.msra.mxu1 %v6339_v51  ;;  %v5302_v31 = vcombine.low %v1474_v27, %v1478_v30  ;;  %v5303_v32 = vcombine.high %v1474_v27, %v1478_v30 }
  0xce   : > { %1169 = vmatprep.subr.bf16.mxu1 %v6340_v52 }
  0xcf   : > { %627 = vmatmul.mubr.bf16.gmra.mrb[4].mxu0 %v6279_v34  ;;  %v6979_v34 = vshrl.u32 %v446_v33, 7  ;;  %v1506_v33 = vld [vmem:[#allocation8 + $0x108] sm:$0xff] }
  0xd0   : > { %636 = vmatprep.mubr.bf16.mxu0 %v6677_v0  ;;  %1269 = vmatpush1.bf16.msra.mxu0 %v6300_v35 }
  0xd1   : > { %1270 = vmatprep.subr.bf16.mxu0 %v6308_v36  ;;  %1170 = vmatpush1.bf16.msra.mxu1 %v6345_v55  ;;  %8007 = vst [vmem:[#allocation18_spill] sm:$0xff] %v6979_v34  ;;  %v6982_v35 = vsub.s32 0, %v6979_v34  ;;  %v444_v36 = vld [vmem:[%s7971_s2] sm:$0x3]  ;;  %v6988_v37 = vsub.s32 1, %v6979_v34  ;;  %v1486_v55 = vld [vmem:[#allocation8 + $0x68] sm:$0xff] }
  0xd2   : > { %1171 = vmatprep.subr.bf16.mxu1 %v6346_v56 }
  0xd3   : > { %8008 = vst [vmem:[#allocation19_spill] sm:$0xff] %v6988_v37  ;;  %v6991_v38 = vrot.slane %v444_v36, %v6982_v35 }
  0xd4   : > { %1271 = vmatpush1.bf16.msra.mxu0 %v6306_v39  ;;  %v6994_v39 = vrot.slane %v444_v36, %v6988_v37  ;;  %v1510_v36 = vld [vmem:[#allocation8 + $0x128] sm:$0xff] }
  0xd5   : > { %1272 = vmatprep.subr.bf16.mxu0 %v6314_v40  ;;  %1172 = vmatpush1.bf16.msra.mxu1 %v6351_v59 }
  0xd6   : > { %1173 = vmatprep.subr.bf16.mxu1 %v6352_v60 }
  0xd7   : > { %637 = vmatmul.mubr.bf16.gmra.mrb[8].mxu0 %v6280_v43 }
  0xd8   : > { %646 = vmatprep.mubr.bf16.mxu0 %v6677_v0  ;;  %1273 = vmatpush1.bf16.msra.mxu0 %v6312_v44 }
  0xd9   : > { %1274 = vmatprep.subr.bf16.mxu0 %v6320_v45  ;;  %1174 = vmatpush1.bf16.msra.mxu1 %v6357_v1 }
  0xda   : > { %1175 = vmatprep.subr.bf16.mxu1 %v6358_v2 }
  0xdc   : > { %1275 = vmatpush1.bf16.msra.mxu0 %v6318_v48 }
  0xdd   : > { %1276 = vmatprep.subr.bf16.mxu0 %v6326_v50  ;;  %1176 = vmatpush1.bf16.msra.mxu1 %v6363_v5  ;;  %v1481_v50 = vld [vmem:[#allocation8 + $0x40] sm:$0xff]  ;;  %v1494_v5 = vld [vmem:[#allocation8 + $0xa8] sm:$0xff] }
  0xde   : > { %1177 = vmatprep.subr.bf16.mxu1 %v6364_v6 }
  0xdf   : > { %647 = vmatmul.mubr.bf16.gmra.mrb[12].mxu0 %v6281_v49 }
  0xe0   : > { %656 = vmatprep.mubr.bf16.mxu0 %v6677_v0  ;;  %1277 = vmatpush1.bf16.msra.mxu0 %v6324_v53  ;;  %v1485_v53 = vld [vmem:[#allocation8 + $0x60] sm:$0xff] }
  0xe1   : > { %1278 = vmatprep.subr.bf16.mxu0 %v6332_v54  ;;  %1178 = vmatpush1.bf16.msra.mxu1 %v6369_v17  ;;  %v1482_v54 = vld [vmem:[#allocation8 + $0x48] sm:$0xff] }
  0xe2   : > { %1179 = vmatprep.subr.bf16.mxu1 %v6370_v18  ;;  %v1501_v18 = vld [vmem:[#allocation8 + $0xe0] sm:$0xff] }
  0xe4   : > { %1279 = vmatpush1.bf16.msra.mxu0 %v6330_v57 }
  0xe5   : > { %1280 = vmatprep.subr.bf16.mxu0 %v6338_v58  ;;  %1180 = vmatpush1.bf16.msra.mxu1 %v6375_v21 }
  0xe6   : > { %1181 = vmatprep.subr.bf16.mxu1 %v6376_v22 }
  0xe7   : > { %657 = vmatmul.mubr.bf16.gmra.mrb[16].mxu0 %v6282_v61  ;;  %v5309_v61 = vcombine.high %v1481_v50, %v1485_v53 }
  0xe8   : > { %666 = vmatprep.mubr.bf16.mxu0 %v6677_v0  ;;  %1281 = vmatpush1.bf16.msra.mxu0 %v6336_v62  ;;  %v5311_v62 = vcombine.high %v1482_v54, %v1486_v55 }
  0xe9   : > { %1282 = vmatprep.subr.bf16.mxu0 %v6344_v63  ;;  %1182 = vmatpush1.bf16.msra.mxu1 %v6381_v25  ;;  %v1489_v63 = vld [vmem:[#allocation8 + $0x80] sm:$0xff] }
  0xec   : > { %1283 = vmatpush1.bf16.msra.mxu0 %v6342_v3  ;;  %v1493_v3 = vld [vmem:[#allocation8 + $0xa0] sm:$0xff] }
  0xed   : > { %1284 = vmatprep.subr.bf16.mxu0 %v6350_v4  ;;  %v1490_v4 = vld [vmem:[#allocation8 + $0x88] sm:$0xff] }
  0xee   : > { %v5318_v25 = vcombine.low %v1490_v4, %v1494_v5 }
  0xef   : > { %667 = vmatmul.mubr.bf16.gmra.mrb[20].mxu0 %v6283_v7 }
  0xf0   : > { %676 = vmatprep.mubr.bf16.mxu0 %v6677_v0  ;;  %1285 = vmatpush1.bf16.msra.mxu0 %v6348_v8 }
  0xf1   : > { %1286 = vmatprep.subr.bf16.mxu0 %v6356_v9  ;;  %v5308_v9 = vcombine.low %v1481_v50, %v1485_v53  ;;  %v1514_v53 = vld [vmem:[#allocation8 + $0x148] sm:$0xff] }
  0xf4   : > { %1287 = vmatpush1.bf16.msra.mxu0 %v6354_v10  ;;  %v5310_v10 = vcombine.low %v1482_v54, %v1486_v55  ;;  %v1518_v54 = vld [vmem:[#allocation8 + $0x168] sm:$0xff] }
  0xf5   : > { %1288 = vmatprep.subr.bf16.mxu0 %v6362_v11 }
  0xf7   : > { %677 = vmatmul.mubr.bf16.gmra.mrb[24].mxu0 %v6284_v12 }
  0xf8   : > { %686 = vmatprep.mubr.bf16.mxu0 %v6677_v0  ;;  %1289 = vmatpush1.bf16.msra.mxu0 %v6360_v13  ;;  %v1473_v0 = vld [vmem:[#allocation8] sm:$0xff]  ;;  %v5317_v13 = vcombine.high %v1489_v63, %v1493_v3 }
  0xf9   : > { %1290 = vmatprep.subr.bf16.mxu0 %v6368_v14  ;;  %v5300_v28 = vcombine.low %v1473_v0, %v1477_v26  ;;  %v5301_v29 = vcombine.high %v1473_v0, %v1477_v26  ;;  %v5319_v14 = vcombine.high %v1490_v4, %v1494_v5  ;;  %v1525_v4 = vld [vmem:[#allocation8 + $0x1a0] sm:$0xff]  ;;  %v1522_v5 = vld [vmem:[#allocation8 + $0x188] sm:$0xff] }
  0xfb   : > { %3051 = vmatprep.subr.bf16.mxu1 %v5301_v29  ;;  %v1505_v29 = vld [vmem:[#allocation8 + $0x100] sm:$0xff] }
  0xfc   : > { %1291 = vmatpush1.bf16.msra.mxu0 %v6366_v15  ;;  %v1497_v15 = vld [vmem:[#allocation8 + $0xc0] sm:$0xff] }
  0xfd   : > { %1292 = vmatprep.subr.bf16.mxu0 %v6374_v19  ;;  %v1498_v19 = vld [vmem:[#allocation8 + $0xc8] sm:$0xff]  ;;  %v5325_v27 = vcombine.high %v1497_v15, %v1501_v18 }
  0xff   : > { %687 = vmatmul.mubr.bf16.gmra.mrb[28].mxu0 %v6285_v16 }
 0x100   : > { %1293 = vmatpush1.bf16.msra.mxu0 %v6372_v20  ;;  %v1502_v20 = vld [vmem:[#allocation8 + $0xe8] sm:$0xff] }
 0x101   : > { %1294 = vmatprep.subr.bf16.mxu0 %v6380_v23 }
 0x104   : > { %1295 = vmatpush1.bf16.msra.mxu0 %v6378_v24  ;;  %v5316_v24 = vcombine.low %v1489_v63, %v1493_v3  ;;  %v5343_v63 = vcombine.high %v1514_v53, %v1518_v54 }
 0x105   : > { %3277 = vmatprep.subr.bf16.mxu0 %v5303_v32  ;;  %v1509_v32 = vld [vmem:[#allocation8 + $0x120] sm:$0xff] }
 0x19a   : > { %v618_v40 = vpop.f32.mrb[0].mxu0 }
 0x19b   : > { %v619_v41 = vadd.f32 %v618_v40, %v6991_v38  ;;  %v620_v42 = vpop.f32.mrb[1].mxu0 }
 0x19c   : > { %v621_v43 = vadd.f32 %v620_v42, %v6994_v39  ;;  %v622_v44 = vpop.f32.mrb[2].mxu0 }
 0x19d   : > { %v623_v45 = vadd.f32 %v622_v44, %v6991_v38  ;;  %v624_v46 = vpop.f32.mrb[3].mxu0  ;;  %v697_v48 = vmax.f32 %v619_v41, 0.0  ;;  %v5326_v44 = vcombine.low %v1498_v19, %v1502_v20 }
 0x19e   : > { %v625_v47 = vadd.f32 %v624_v46, %v6994_v39  ;;  %v698_v51 = vmax.f32 %v621_v43, 0.0  ;;  %v5324_v43 = vcombine.low %v1497_v15, %v1501_v18 }
 0x19f   : > { %v699_v49 = vmax.f32 %v623_v45, 0.0 }
 0x1a0   : > { %v700_v52 = vmax.f32 %v625_v47, 0.0  ;;  %v5333_v47 = vcombine.high %v1505_v29, %v1509_v32 }
 0x1a1   : > { %v729_v56 = vpack.c.bf16 %v699_v49, %v697_v48  ;;  %v5335_v48 = vcombine.high %v1506_v33, %v1510_v36  ;;  %v1513_v49 = vld [vmem:[#allocation8 + $0x140] sm:$0xff] }
 0x1a2   : > { %v628_v57 = vpop.f32.mrb[4].mxu0  ;;  %v730_v58 = vpack.c.bf16 %v700_v52, %v698_v51  ;;  %v1517_v52 = vld [vmem:[#allocation8 + $0x160] sm:$0xff] }
 0x1a3   : > { %v629_v59 = vadd.f32 %v628_v57, %v6991_v38  ;;  %v630_v60 = vpop.f32.mrb[5].mxu0 }
 0x1a4   : > { %v631_v1 = vadd.f32 %v630_v60, %v6994_v39  ;;  %v632_v2 = vpop.f32.mrb[6].mxu0  ;;  %1183 = vmatprep.mubr.bf16.mxu1 %v730_v58  ;;  %1296 = vmatprep.mubr.bf16.mxu0 %v730_v58  ;;  %v5332_v58 = vcombine.low %v1505_v29, %v1509_v32 }
 0x1a5   : > { %v633_v6 = vadd.f32 %v632_v2, %v6991_v38  ;;  %v634_v7 = vpop.f32.mrb[7].mxu0  ;;  %1184 = vmatmul.mubr.bf16.vlgmr.msra.gmra.mrb[0].mxu1 %v729_v56  ;;  %1297 = vmatmul.mubr.bf16.vlgmr.msra.gmra.mrb[32].mxu0 %v729_v56  ;;  %v701_v11 = vmax.f32 %v629_v59, 0.0  ;;  %v5334_v59 = vcombine.low %v1506_v33, %v1510_v36  ;;  %v1541_v33 = vld [vmem:[#allocation8 + $0x220] sm:$0xff]  ;;  %v1538_v36 = vld [vmem:[#allocation8 + $0x208] sm:$0xff] }
 0x1a6   : > { %v635_v8 = vadd.f32 %v634_v7, %v6994_v39  ;;  %3052 = vmatpush1.bf16.msra.mxu1 %v5300_v28  ;;  %3278 = vmatpush1.bf16.msra.mxu0 %v5302_v31  ;;  %v702_v16 = vmax.f32 %v631_v1, 0.0  ;;  %v5327_v28 = vcombine.high %v1498_v19, %v1502_v20  ;;  %v1521_v1 = vld [vmem:[#allocation8 + $0x180] sm:$0xff]  ;;  %v1530_v20 = vld [vmem:[#allocation8 + $0x1c8] sm:$0xff] }
 0x1a7   : > { %v703_v12 = vmax.f32 %v633_v6, 0.0  ;;  %3053 = vmatprep.subr.bf16.mxu1 %v5309_v61  ;;  %3279 = vmatprep.subr.bf16.mxu0 %v5311_v62  ;;  %v5341_v62 = vcombine.high %v1513_v49, %v1517_v52  ;;  %v1526_v6 = vld [vmem:[#allocation8 + $0x1a8] sm:$0xff]  ;;  %v1533_v19 = vld [vmem:[#allocation8 + $0x1e0] sm:$0xff] }
 0x1a8   : > { %v704_v17 = vmax.f32 %v635_v8, 0.0  ;;  %v5351_v15 = vcombine.high %v1522_v5, %v1526_v6 }
 0x1a9   : > { %v731_v21 = vpack.c.bf16 %v703_v12, %v701_v11  ;;  %v5342_v11 = vcombine.low %v1514_v53, %v1518_v54  ;;  %v1549_v53 = vld [vmem:[#allocation8 + $0x260] sm:$0xff]  ;;  %v1546_v54 = vld [vmem:[#allocation8 + $0x248] sm:$0xff] }
 0x1aa   : > { %v732_v22 = vpack.c.bf16 %v704_v17, %v702_v16  ;;  %v638_v23 = vpop.f32.mrb[8].mxu0  ;;  %3054 = vmatpush1.bf16.msra.mxu1 %v5308_v9  ;;  %3280 = vmatpush1.bf16.msra.mxu0 %v5310_v10  ;;  %v5340_v10 = vcombine.low %v1513_v49, %v1517_v52  ;;  %v1529_v16 = vld [vmem:[#allocation8 + $0x1c0] sm:$0xff] }
 0x1ab   : > { %v639_v0 = vadd.f32 %v638_v23, %v6991_v38  ;;  %v640_v26 = vpop.f32.mrb[9].mxu0  ;;  %3055 = vmatprep.subr.bf16.mxu1 %v5317_v13  ;;  %3281 = vmatprep.subr.bf16.mxu0 %v5319_v14  ;;  %v5349_v14 = vcombine.high %v1521_v1, %v1525_v4 }
 0x1ac   : > { %v641_v30 = vadd.f32 %v640_v26, %v6994_v39  ;;  %v642_v31 = vpop.f32.mrb[10].mxu0  ;;  %1193 = vmatprep.mubr.bf16.mxu1 %v732_v22  ;;  %1306 = vmatprep.mubr.bf16.mxu0 %v732_v22 }
 0x1ad   : > { %v643_v40 = vadd.f32 %v642_v31, %v6991_v38  ;;  %v644_v41 = vpop.f32.mrb[11].mxu0  ;;  %1194 = vmatmul.mubr.bf16.gmra.mrb[4].mxu1 %v731_v21  ;;  %1307 = vmatmul.mubr.bf16.gmra.mrb[36].mxu0 %v731_v21  ;;  %v705_v45 = vmax.f32 %v639_v0, 0.0  ;;  %v1534_v21 = vld [vmem:[#allocation8 + $0x1e8] sm:$0xff]  ;;  %v5350_v0 = vcombine.low %v1522_v5, %v1526_v6  ;;  %v1557_v5 = vld [vmem:[#allocation8 + $0x2a0] sm:$0xff] }
 0x1ae   : > { %v645_v42 = vadd.f32 %v644_v41, %v6994_v39  ;;  %3056 = vmatpush1.bf16.msra.mxu1 %v5316_v24  ;;  %3282 = vmatpush1.bf16.msra.mxu0 %v5318_v25  ;;  %v706_v50 = vmax.f32 %v641_v30, 0.0  ;;  %v5348_v25 = vcombine.low %v1521_v1, %v1525_v4  ;;  %v5359_v29 = vcombine.high %v1530_v20, %v1534_v21  ;;  %v1537_v30 = vld [vmem:[#allocation8 + $0x200] sm:$0xff]  ;;  %v1554_v6 = vld [vmem:[#allocation8 + $0x288] sm:$0xff] }
 0x1af   : > { %v707_v46 = vmax.f32 %v643_v40, 0.0  ;;  %3057 = vmatprep.subr.bf16.mxu1 %v5325_v27  ;;  %3283 = vmatprep.subr.bf16.mxu0 %v5327_v28  ;;  %v5357_v28 = vcombine.high %v1529_v16, %v1533_v19  ;;  %v1542_v40 = vld [vmem:[#allocation8 + $0x228] sm:$0xff] }
 0x1b0   : > { %v708_v51 = vmax.f32 %v645_v42, 0.0  ;;  %v5367_v49 = vcombine.high %v1538_v36, %v1542_v40 }
 0x1b1   : > { %v733_v55 = vpack.c.bf16 %v707_v46, %v705_v45  ;;  %v5358_v45 = vcombine.low %v1530_v20, %v1534_v21  ;;  %v1565_v20 = vld [vmem:[#allocation8 + $0x2e0] sm:$0xff]  ;;  %v1562_v21 = vld [vmem:[#allocation8 + $0x2c8] sm:$0xff] }
 0x1b2   : > { %v734_v56 = vpack.c.bf16 %v708_v51, %v706_v50  ;;  %v648_v57 = vpop.f32.mrb[12].mxu0  ;;  %3058 = vmatpush1.bf16.msra.mxu1 %v5324_v43  ;;  %3284 = vmatpush1.bf16.msra.mxu0 %v5326_v44  ;;  %v5356_v44 = vcombine.low %v1529_v16, %v1533_v19  ;;  %v1545_v50 = vld [vmem:[#allocation8 + $0x240] sm:$0xff] }
 0x1b3   : > { %v649_v60 = vadd.f32 %v648_v57, %v6991_v38  ;;  %v650_v61 = vpop.f32.mrb[13].mxu0  ;;  %3059 = vmatprep.subr.bf16.mxu1 %v5333_v47  ;;  %3285 = vmatprep.subr.bf16.mxu0 %v5335_v48  ;;  %v5365_v48 = vcombine.high %v1537_v30, %v1541_v33 }
 0x1b4   : > { %v651_v2 = vadd.f32 %v650_v61, %v6994_v39  ;;  %v652_v3 = vpop.f32.mrb[14].mxu0  ;;  %1203 = vmatprep.mubr.bf16.mxu1 %v734_v56  ;;  %1316 = vmatprep.mubr.bf16.mxu0 %v734_v56 }
 0x1b5   : > { %v653_v7 = vadd.f32 %v652_v3, %v6991_v38  ;;  %v654_v8 = vpop.f32.mrb[15].mxu0  ;;  %1204 = vmatmul.mubr.bf16.gmra.mrb[8].mxu1 %v733_v55  ;;  %1317 = vmatmul.mubr.bf16.gmra.mrb[40].mxu0 %v733_v55  ;;  %v709_v12 = vmax.f32 %v649_v60, 0.0  ;;  %v1550_v55 = vld [vmem:[#allocation8 + $0x268] sm:$0xff]  ;;  %v5366_v60 = vcombine.low %v1538_v36, %v1542_v40  ;;  %v1573_v36 = vld [vmem:[#allocation8 + $0x320] sm:$0xff] }
 0x1b6   : > { %v655_v9 = vadd.f32 %v654_v8, %v6994_v39  ;;  %3060 = vmatpush1.bf16.msra.mxu1 %v5332_v58  ;;  %3286 = vmatpush1.bf16.msra.mxu0 %v5334_v59  ;;  %v710_v17 = vmax.f32 %v651_v2, 0.0  ;;  %v5364_v59 = vcombine.low %v1537_v30, %v1541_v33  ;;  %v5375_v1 = vcombine.high %v1546_v54, %v1550_v55  ;;  %v1553_v2 = vld [vmem:[#allocation8 + $0x280] sm:$0xff]  ;;  %v1570_v40 = vld [vmem:[#allocation8 + $0x308] sm:$0xff] }
 0x1b7   : > { %v711_v13 = vmax.f32 %v653_v7, 0.0  ;;  %3061 = vmatprep.subr.bf16.mxu1 %v5341_v62  ;;  %3287 = vmatprep.subr.bf16.mxu0 %v5343_v63  ;;  %v5373_v63 = vcombine.high %v1545_v50, %v1549_v53  ;;  %v1558_v7 = vld [vmem:[#allocation8 + $0x2a8] sm:$0xff] }
 0x1b8   : > { %v712_v18 = vmax.f32 %v655_v9, 0.0  ;;  %v5383_v16 = vcombine.high %v1554_v6, %v1558_v7 }
 0x1b9   : > { %v735_v22 = vpack.c.bf16 %v711_v13, %v709_v12  ;;  %v5374_v12 = vcombine.low %v1546_v54, %v1550_v55  ;;  %v1581_v54 = vld [vmem:[#allocation8 + $0x360] sm:$0xff]  ;;  %v1578_v55 = vld [vmem:[#allocation8 + $0x348] sm:$0xff] }
 0x1ba   : > { %v736_v23 = vpack.c.bf16 %v712_v18, %v710_v17  ;;  %v658_v24 = vpop.f32.mrb[16].mxu0  ;;  %3062 = vmatpush1.bf16.msra.mxu1 %v5340_v10  ;;  %3288 = vmatpush1.bf16.msra.mxu0 %v5342_v11  ;;  %v5372_v11 = vcombine.low %v1545_v50, %v1549_v53  ;;  %v1561_v17 = vld [vmem:[#allocation8 + $0x2c0] sm:$0xff] }
 0x1bb   : > { %v659_v26 = vadd.f32 %v658_v24, %v6991_v38  ;;  %v660_v27 = vpop.f32.mrb[17].mxu0  ;;  %3063 = vmatprep.subr.bf16.mxu1 %v5349_v14  ;;  %3289 = vmatprep.subr.bf16.mxu0 %v5351_v15  ;;  %v5381_v15 = vcombine.high %v1553_v2, %v1557_v5 }
 0x1bc   : > { %v661_v31 = vadd.f32 %v660_v27, %v6994_v39  ;;  %v662_v32 = vpop.f32.mrb[18].mxu0  ;;  %1213 = vmatprep.mubr.bf16.mxu1 %v736_v23  ;;  %1326 = vmatprep.mubr.bf16.mxu0 %v736_v23 }
 0x1bd   : > { %v663_v41 = vadd.f32 %v662_v32, %v6991_v38  ;;  %v664_v42 = vpop.f32.mrb[19].mxu0  ;;  %1214 = vmatmul.mubr.bf16.gmra.mrb[12].mxu1 %v735_v22  ;;  %1327 = vmatmul.mubr.bf16.gmra.mrb[44].mxu0 %v735_v22  ;;  %v713_v46 = vmax.f32 %v659_v26, 0.0  ;;  %v1566_v22 = vld [vmem:[#allocation8 + $0x2e8] sm:$0xff]  ;;  %v5382_v26 = vcombine.low %v1554_v6, %v1558_v7 }
 0x1be   : > { %v665_v43 = vadd.f32 %v664_v42, %v6994_v39  ;;  %3064 = vmatpush1.bf16.msra.mxu1 %v5348_v25  ;;  %3290 = vmatpush1.bf16.msra.mxu0 %v5350_v0  ;;  %v714_v51 = vmax.f32 %v661_v31, 0.0  ;;  %v5380_v0 = vcombine.low %v1553_v2, %v1557_v5  ;;  %v5391_v30 = vcombine.high %v1562_v21, %v1566_v22  ;;  %v1569_v31 = vld [vmem:[#allocation8 + $0x300] sm:$0xff] }
 0x1bf   : > { %v715_v47 = vmax.f32 %v663_v41, 0.0  ;;  %3065 = vmatprep.subr.bf16.mxu1 %v5357_v28  ;;  %3291 = vmatprep.subr.bf16.mxu0 %v5359_v29  ;;  %v5389_v29 = vcombine.high %v1561_v17, %v1565_v20  ;;  %v1574_v41 = vld [vmem:[#allocation8 + $0x328] sm:$0xff] }
 0x1c0   : > { %v716_v52 = vmax.f32 %v665_v43, 0.0  ;;  %v5399_v50 = vcombine.high %v1570_v40, %v1574_v41 }
 0x1c1   : > { %v737_v56 = vpack.c.bf16 %v715_v47, %v713_v46  ;;  %v5390_v46 = vcombine.low %v1562_v21, %v1566_v22  ;;  %v1593_v22 = vld [vmem:[#allocation8 + $0x3c0] sm:$0xff] }
 0x1c2   : > { %v738_v57 = vpack.c.bf16 %v716_v52, %v714_v51  ;;  %v668_v58 = vpop.f32.mrb[20].mxu0  ;;  %3066 = vmatpush1.bf16.msra.mxu1 %v5356_v44  ;;  %3292 = vmatpush1.bf16.msra.mxu0 %v5358_v45  ;;  %v5388_v45 = vcombine.low %v1561_v17, %v1565_v20  ;;  %v1577_v51 = vld [vmem:[#allocation8 + $0x340] sm:$0xff] }
 0x1c3   : > { %v669_v61 = vadd.f32 %v668_v58, %v6991_v38  ;;  %v670_v62 = vpop.f32.mrb[21].mxu0  ;;  %3067 = vmatprep.subr.bf16.mxu1 %v5365_v48  ;;  %3293 = vmatprep.subr.bf16.mxu0 %v5367_v49  ;;  %v5397_v49 = vcombine.high %v1569_v31, %v1573_v36 }
 0x1c4   : > { %v671_v3 = vadd.f32 %v670_v62, %v6994_v39  ;;  %v672_v4 = vpop.f32.mrb[22].mxu0  ;;  %1223 = vmatprep.mubr.bf16.mxu1 %v738_v57  ;;  %1336 = vmatprep.mubr.bf16.mxu0 %v738_v57 }
 0x1c5   : > { %v673_v8 = vadd.f32 %v672_v4, %v6991_v38  ;;  %v674_v9 = vpop.f32.mrb[23].mxu0  ;;  %1224 = vmatmul.mubr.bf16.gmra.mrb[16].mxu1 %v737_v56  ;;  %1337 = vmatmul.mubr.bf16.gmra.mrb[48].mxu0 %v737_v56  ;;  %v717_v13 = vmax.f32 %v669_v61, 0.0  ;;  %v1582_v56 = vld [vmem:[#allocation8 + $0x368] sm:$0xff]  ;;  %v5398_v61 = vcombine.low %v1570_v40, %v1574_v41 }
 0x1c6   : > { %v675_v10 = vadd.f32 %v674_v9, %v6994_v39  ;;  %3068 = vmatpush1.bf16.msra.mxu1 %v5364_v59  ;;  %3294 = vmatpush1.bf16.msra.mxu0 %v5366_v60  ;;  %v718_v18 = vmax.f32 %v671_v3, 0.0  ;;  %v5396_v60 = vcombine.low %v1569_v31, %v1573_v36  ;;  %v5407_v2 = vcombine.high %v1578_v55, %v1582_v56  ;;  %v7032_v31 = vld [vmem:[#allocation8 + $0x408] sm:$0xff] }
 0x1c7   : > { %v719_v14 = vmax.f32 %v673_v8, 0.0  ;;  %3069 = vmatprep.subr.bf16.mxu1 %v5373_v63  ;;  %3295 = vmatprep.subr.bf16.mxu0 %v5375_v1  ;;  %v5405_v1 = vcombine.high %v1577_v51, %v1581_v54  ;;  %v5404_v8 = vcombine.low %v1577_v51, %v1581_v54  ;;  %v5406_v9 = vcombine.low %v1578_v55, %v1582_v56  ;;  %v7063_v51 = vld [vmem:[#allocation8 + $0x440] sm:$0xff] }
 0x1c8   : > { %v720_v19 = vmax.f32 %v675_v10, 0.0 }
 0x1c9   : > { %v739_v23 = vpack.c.bf16 %v719_v14, %v717_v13 }
 0x1ca   : > { %v740_v24 = vpack.c.bf16 %v720_v19, %v718_v18  ;;  %v678_v25 = vpop.f32.mrb[24].mxu0  ;;  %3070 = vmatpush1.bf16.msra.mxu1 %v5372_v11  ;;  %3296 = vmatpush1.bf16.msra.mxu0 %v5374_v12  ;;  %v1590_v18 = vld [vmem:[#allocation8 + $0x3a8] sm:$0xff] }
 0x1cb   : > { %v679_v27 = vadd.f32 %v678_v25, %v6991_v38  ;;  %v680_v28 = vpop.f32.mrb[25].mxu0  ;;  %3071 = vmatprep.subr.bf16.mxu1 %v5381_v15  ;;  %3297 = vmatprep.subr.bf16.mxu0 %v5383_v16  ;;  %v1586_v16 = vld [vmem:[#allocation8 + $0x388] sm:$0xff] }
 0x1cc   : > { %v681_v32 = vadd.f32 %v680_v28, %v6994_v39  ;;  %v682_v33 = vpop.f32.mrb[26].mxu0  ;;  %1233 = vmatprep.mubr.bf16.mxu1 %v740_v24  ;;  %1346 = vmatprep.mubr.bf16.mxu0 %v740_v24  ;;  %v5414_v20 = vcombine.low %v1586_v16, %v1590_v18  ;;  %v5415_v21 = vcombine.high %v1586_v16, %v1590_v18  ;;  %v1594_v24 = vld [vmem:[#allocation8 + $0x3c8] sm:$0xff] }
 0x1cd   : > { %v683_v42 = vadd.f32 %v682_v33, %v6991_v38  ;;  %v684_v43 = vpop.f32.mrb[27].mxu0  ;;  %1234 = vmatmul.mubr.bf16.gmra.mrb[20].mxu1 %v739_v23  ;;  %1347 = vmatmul.mubr.bf16.gmra.mrb[52].mxu0 %v739_v23  ;;  %v721_v47 = vmax.f32 %v679_v27, 0.0  ;;  %v1597_v23 = vld [vmem:[#allocation8 + $0x3e0] sm:$0xff]  ;;  %v7036_v33 = vld [vmem:[#allocation8 + $0x428] sm:$0xff] }
 0x1ce   : > { %v685_v44 = vadd.f32 %v684_v43, %v6994_v39  ;;  %3072 = vmatpush1.bf16.msra.mxu1 %v5380_v0  ;;  %3298 = vmatpush1.bf16.msra.mxu0 %v5382_v26  ;;  %v722_v52 = vmax.f32 %v681_v32, 0.0  ;;  %v5421_v25 = vcombine.high %v1593_v22, %v1597_v23  ;;  %v1598_v0 = vld [vmem:[#allocation8 + $0x3e8] sm:$0xff]  ;;  %v5420_v26 = vcombine.low %v1593_v22, %v1597_v23  ;;  %v809_v43 = vld [vmem:[%s7973_s4] sm:$0xf] }
 0x1cf   : > { %v723_v48 = vmax.f32 %v683_v42, 0.0  ;;  %3073 = vmatprep.subr.bf16.mxu1 %v5389_v29  ;;  %3299 = vmatprep.subr.bf16.mxu0 %v5391_v30  ;;  %v5422_v27 = vcombine.low %v1594_v24, %v1598_v0  ;;  %v5423_v28 = vcombine.high %v1594_v24, %v1598_v0  ;;  %v7028_v29 = vld [vmem:[#allocation8 + $0x400] sm:$0xff]  ;;  %v5430_v40 = vcombine.low %v7032_v31, %v7036_v33 }
 0x1d0   : > { %v724_v53 = vmax.f32 %v685_v44, 0.0  ;;  %v7030_v30 = vld [vmem:[#allocation8 + $0x420] sm:$0xff]  ;;  %v5431_v41 = vcombine.high %v7032_v31, %v7036_v33  ;;  %v7985_v42 = vsub.s32 2, %v6979_v34  ;;  %v7984_v44 = vsub.s32 3, %v6979_v34 }
 0x1d1   : > { %v741_v57 = vpack.c.bf16 %v723_v48, %v721_v47  ;;  %v5429_v32 = vcombine.high %v7028_v29, %v7030_v30  ;;  %v5428_v36 = vcombine.low %v7028_v29, %v7030_v30  ;;  %v7057_v47 = vrot.slane %v809_v43, %v6988_v37  ;;  %v7151_v29 = vld [vmem:[#allocation8 + $0x528] sm:$0xff] }
 0x1d2   : > { %v742_v58 = vpack.c.bf16 %v724_v53, %v722_v52  ;;  %v688_v59 = vpop.f32.mrb[28].mxu0  ;;  %3074 = vmatpush1.bf16.msra.mxu1 %v5388_v45  ;;  %3300 = vmatpush1.bf16.msra.mxu0 %v5390_v46  ;;  %v7050_v45 = vrot.slane %v809_v43, %v6982_v35  ;;  %v7054_v46 = vrot.slane %v809_v43, %v7985_v42  ;;  %v7065_v52 = vld [vmem:[#allocation8 + $0x460] sm:$0xff] }
 0x1d3   : > { %v689_v62 = vadd.f32 %v688_v59, %v6991_v38  ;;  %v690_v63 = vpop.f32.mrb[29].mxu0  ;;  %3075 = vmatprep.subr.bf16.mxu1 %v5397_v49  ;;  %3301 = vmatprep.subr.bf16.mxu0 %v5399_v50  ;;  %v7061_v48 = vrot.slane %v809_v43, %v7984_v44  ;;  %v7115_v43 = vld [vmem:[#allocation8 + $0x4e8] sm:$0xff]  ;;  %v1721_v42 = vld [vmem:[#allocation8 + $0x7c0] sm:$0xff] }
 0x1d4   : > { %v691_v3 = vadd.f32 %v690_v63, %v6994_v39  ;;  %v692_v4 = vpop.f32.mrb[30].mxu0  ;;  %1243 = vmatprep.mubr.bf16.mxu1 %v742_v58  ;;  %1356 = vmatprep.mubr.bf16.mxu0 %v742_v58  ;;  %v7071_v58 = vld [vmem:[#allocation8 + $0x468] sm:$0xff] }
 0x1d5   : > { %v693_v5 = vadd.f32 %v692_v4, %v6991_v38  ;;  %v694_v6 = vpop.f32.mrb[31].mxu0  ;;  %1244 = vmatmul.mubr.bf16.gmra.mrb[24].mxu1 %v741_v57  ;;  %1357 = vmatmul.mubr.bf16.gmra.mrb[56].mxu0 %v741_v57  ;;  %v725_v10 = vmax.f32 %v689_v62, 0.0  ;;  %v1585_v38 = vld [vmem:[#allocation8 + $0x380] sm:$0xff]  ;;  %v7069_v57 = vld [vmem:[#allocation8 + $0x448] sm:$0xff]  ;;  %v5437_v4 = vcombine.high %v7063_v51, %v7065_v52 }
 0x1d6   : > { %v695_v7 = vadd.f32 %v694_v6, %v6994_v39  ;;  %3076 = vmatpush1.bf16.msra.mxu1 %v5396_v60  ;;  %3302 = vmatpush1.bf16.msra.mxu0 %v5398_v61  ;;  %v726_v12 = vmax.f32 %v691_v3, 0.0  ;;  %v1589_v39 = vld [vmem:[#allocation8 + $0x3a0] sm:$0xff]  ;;  %v5439_v23 = vcombine.high %v7069_v57, %v7071_v58 }
 0x1d7   : > { %v727_v11 = vmax.f32 %v693_v5, 0.0  ;;  %3077 = vmatprep.subr.bf16.mxu1 %v5405_v1  ;;  %3303 = vmatprep.subr.bf16.mxu0 %v5407_v2  ;;  %v5413_v17 = vcombine.high %v1585_v38, %v1589_v39  ;;  %v5412_v19 = vcombine.low %v1585_v38, %v1589_v39  ;;  %v7091_v38 = vld [vmem:[#allocation8 + $0x4a8] sm:$0xff] }
 0x1d8   : > { %v728_v13 = vmax.f32 %v695_v7, 0.0  ;;  %v5436_v7 = vcombine.low %v7063_v51, %v7065_v52  ;;  %v7184_v52 = vld [vmem:[#allocation8 + $0x548] sm:$0xff] }
 0x1d9   : > { %v743_v14 = vpack.c.bf16 %v727_v11, %v725_v10  ;;  %v7087_v10 = vld [vmem:[#allocation8 + $0x4a0] sm:$0xff] }
 0x1da   : > { %v744_v15 = vpack.c.bf16 %v728_v13, %v726_v12  ;;  %3078 = vmatpush1.bf16.msra.mxu1 %v5404_v8  ;;  %3304 = vmatpush1.bf16.msra.mxu0 %v5406_v9  ;;  %v5438_v8 = vcombine.low %v7069_v57, %v7071_v58  ;;  %v7085_v9 = vld [vmem:[#allocation8 + $0x480] sm:$0xff]  ;;  %v7186_v57 = vld [vmem:[#allocation8 + $0x568] sm:$0xff] }
 0x1db   : > { %3079 = vmatprep.subr.bf16.mxu1 %v5413_v17  ;;  %3305 = vmatprep.subr.bf16.mxu0 %v5415_v21  ;;  %v5445_v24 = vcombine.high %v7085_v9, %v7087_v10 }
 0x1dc   : > { %1253 = vmatprep.mubr.bf16.mxu1 %v744_v15  ;;  %1366 = vmatprep.mubr.bf16.mxu0 %v744_v15  ;;  %v7089_v15 = vld [vmem:[#allocation8 + $0x488] sm:$0xff] }
 0x1dd   : > { %1254 = vmatmul.mubr.bf16.gmra.mrb[28].mxu1 %v743_v14  ;;  %1367 = vmatmul.mubr.bf16.gmra.mrb[60].mxu0 %v743_v14 }
 0x1de   : > { %3080 = vmatpush1.bf16.msra.mxu1 %v5412_v19  ;;  %3306 = vmatpush1.bf16.msra.mxu0 %v5414_v20  ;;  %v7093_v19 = vld [vmem:[#allocation8 + $0x4c0] sm:$0xff] }
 0x1df   : > { %3081 = vmatprep.subr.bf16.mxu1 %v5421_v25  ;;  %3307 = vmatprep.subr.bf16.mxu0 %v5423_v28  ;;  %v7095_v20 = vld [vmem:[#allocation8 + $0x4e0] sm:$0xff]  ;;  %v5444_v28 = vcombine.low %v7085_v9, %v7087_v10 }
 0x1e2   : > { %3082 = vmatpush1.bf16.msra.mxu1 %v5420_v26  ;;  %3308 = vmatpush1.bf16.msra.mxu0 %v5422_v27 }
 0x1e3   : > { %3164 = vmatprep.subr.bf16.mxu1 %v5429_v32  ;;  %3390 = vmatprep.subr.bf16.mxu0 %v5431_v41  ;;  %v5446_v32 = vcombine.low %v7089_v15, %v7091_v38  ;;  %v7113_v41 = vld [vmem:[#allocation8 + $0x4c8] sm:$0xff] }
 0x278   : > { %v1185_v49 = vpop.f32.mrb[0].mxu1  ;;  %v1298_v50 = vpop.f32.mrb[32].mxu0 }
 0x279   : > { %v1186_v53 = vadd.f32 %v1185_v49, %v7050_v45  ;;  %v1299_v54 = vadd.f32 %v1298_v50, %v7054_v46  ;;  %v1187_v55 = vpop.f32.mrb[1].mxu1  ;;  %v1300_v56 = vpop.f32.mrb[33].mxu0 }
 0x27a   : > { %v1188_v59 = vadd.f32 %v1187_v55, %v7057_v47  ;;  %v1301_v60 = vadd.f32 %v1300_v56, %v7061_v48  ;;  %v1189_v61 = vpop.f32.mrb[2].mxu1  ;;  %v1302_v62 = vpop.f32.mrb[34].mxu0  ;;  %v5447_v55 = vcombine.high %v7089_v15, %v7091_v38  ;;  %v5453_v56 = vcombine.high %v7093_v19, %v7095_v20 }
 0x27b   : > { %v1190_v63 = vadd.f32 %v1189_v61, %v7050_v45  ;;  %v1303_v1 = vadd.f32 %v1302_v62, %v7054_v46  ;;  %v1191_v2 = vpop.f32.mrb[3].mxu1  ;;  %v1304_v3 = vpop.f32.mrb[35].mxu0  ;;  %v1377_v11 = vmax.f32 %v1186_v53, 0.0  ;;  %v1379_v12 = vmax.f32 %v1299_v54, 0.0 }
 0x27c   : > { %v1192_v5 = vadd.f32 %v1191_v2, %v7057_v47  ;;  %v1305_v6 = vadd.f32 %v1304_v3, %v7061_v48  ;;  %v1378_v39 = vmax.f32 %v1188_v59, 0.0  ;;  %v1380_v16 = vmax.f32 %v1301_v60, 0.0 }
 0x27d   : > { %v1381_v13 = vmax.f32 %v1190_v63, 0.0  ;;  %v1383_v14 = vmax.f32 %v1303_v1, 0.0  ;;  %v5452_v63 = vcombine.low %v7093_v19, %v7095_v20 }
 0x27e   : > { %v1382_v17 = vmax.f32 %v1192_v5, 0.0  ;;  %v1384_v18 = vmax.f32 %v1305_v6, 0.0  ;;  %v5454_v6 = vcombine.low %v7113_v41, %v7115_v43 }
 0x27f   : > { %v7097_v21 = vpack.c.bf16 %v1381_v13, %v1377_v11  ;;  %v7099_v22 = vpack.c.bf16 %v1383_v14, %v1379_v12  ;;  %v5455_v13 = vcombine.high %v7113_v41, %v7115_v43  ;;  %v7145_v14 = vld [vmem:[#allocation8 + $0x500] sm:$0xff] }
 0x280   : > { %v7105_v25 = vpack.c.bf16 %v1382_v17, %v1378_v39  ;;  %v7107_v0 = vpack.c.bf16 %v1384_v18, %v1380_v16  ;;  %v1195_v26 = vpop.f32.mrb[4].mxu1  ;;  %v1308_v27 = vpop.f32.mrb[36].mxu0  ;;  %v7147_v39 = vld [vmem:[#allocation8 + $0x520] sm:$0xff] }
 0x281   : > { %v1196_v49 = vadd.f32 %v1195_v26, %v7050_v45  ;;  %v1309_v50 = vadd.f32 %v1308_v27, %v7054_v46  ;;  %v1197_v53 = vpop.f32.mrb[5].mxu1  ;;  %v1310_v54 = vpop.f32.mrb[37].mxu0  ;;  %v7149_v27 = vld [vmem:[#allocation8 + $0x508] sm:$0xff] }
 0x282   : > { %v1198_v59 = vadd.f32 %v1197_v53, %v7057_v47  ;;  %v1311_v60 = vadd.f32 %v1310_v54, %v7061_v48  ;;  %v1199_v61 = vpop.f32.mrb[6].mxu1  ;;  %v1312_v62 = vpop.f32.mrb[38].mxu0  ;;  %3083 = vmatprep.mubr.bf16.mxu1 %v7105_v25  ;;  %3309 = vmatprep.mubr.bf16.mxu0 %v7105_v25  ;;  %v5463_v51 = vcombine.high %v7149_v27, %v7151_v29 }
 0x283   : > { %v1200_v1 = vadd.f32 %v1199_v61, %v7050_v45  ;;  %v1313_v2 = vadd.f32 %v1312_v62, %v7054_v46  ;;  %v1201_v3 = vpop.f32.mrb[7].mxu1  ;;  %v1314_v5 = vpop.f32.mrb[39].mxu0  ;;  %3084 = vmatmul.mubr.bf16.vlgmr.msra.gmra.mrb[32].mxu1 %v7097_v21  ;;  %3310 = vmatmul.mubr.bf16.vlgmr.msra.gmra.mrb[64].mxu0 %v7097_v21  ;;  %v1385_v16 = vmax.f32 %v1196_v49, 0.0  ;;  %v1387_v17 = vmax.f32 %v1309_v50, 0.0 }
 0x284   : > { %v1202_v11 = vadd.f32 %v1201_v3, %v7057_v47  ;;  %v1315_v12 = vadd.f32 %v1314_v5, %v7061_v48  ;;  %3165 = vmatpush1.bf16.msra.mxu1 %v5428_v36  ;;  %3391 = vmatpush1.bf16.msra.mxu0 %v5430_v40  ;;  %v1386_v30 = vmax.f32 %v1198_v59, 0.0  ;;  %v1388_v31 = vmax.f32 %v1311_v60, 0.0 }
 0x285   : > { %v1389_v18 = vmax.f32 %v1200_v1, 0.0  ;;  %v1391_v26 = vmax.f32 %v1313_v2, 0.0  ;;  %3166 = vmatprep.subr.bf16.mxu1 %v5437_v4  ;;  %3392 = vmatprep.subr.bf16.mxu0 %v5439_v23  ;;  %v5460_v49 = vcombine.low %v7145_v14, %v7147_v39  ;;  %v5461_v50 = vcombine.high %v7145_v14, %v7147_v39  ;;  %v7161_v4 = vld [vmem:[#allocation8 + $0x540] sm:$0xff] }
 0x286   : > { %v1390_v33 = vmax.f32 %v1202_v11, 0.0  ;;  %v1392_v36 = vmax.f32 %v1315_v12, 0.0  ;;  %v7163_v23 = vld [vmem:[#allocation8 + $0x560] sm:$0xff]  ;;  %v5462_v62 = vcombine.low %v7149_v27, %v7151_v29 }
 0x287   : > { %v7153_v40 = vpack.c.bf16 %v1389_v18, %v1385_v16  ;;  %v7155_v53 = vpack.c.bf16 %v1391_v26, %v1387_v17  ;;  %v5468_v18 = vcombine.low %v7161_v4, %v7163_v23  ;;  %v7281_v14 = vld [vmem:[#allocation8 + $0x600] sm:$0xff] }
 0x288   : > { %v7165_v54 = vpack.c.bf16 %v1390_v33, %v1386_v30  ;;  %v7167_v59 = vpack.c.bf16 %v1392_v36, %v1388_v31  ;;  %3167 = vmatpush1.bf16.msra.mxu1 %v5436_v7  ;;  %v1205_v60 = vpop.f32.mrb[8].mxu1  ;;  %v1318_v61 = vpop.f32.mrb[40].mxu0  ;;  %3393 = vmatpush1.bf16.msra.mxu0 %v5438_v8  ;;  %v5470_v31 = vcombine.low %v7184_v52, %v7186_v57  ;;  %v7210_v33 = vld [vmem:[#allocation8 + $0x580] sm:$0xff] }
 0x289   : > { %v1206_v1 = vadd.f32 %v1205_v60, %v7050_v45  ;;  %v1319_v2 = vadd.f32 %v1318_v61, %v7054_v46  ;;  %v1207_v3 = vpop.f32.mrb[9].mxu1  ;;  %v1320_v5 = vpop.f32.mrb[41].mxu0  ;;  %3168 = vmatprep.subr.bf16.mxu1 %v5445_v24  ;;  %3394 = vmatprep.subr.bf16.mxu0 %v5447_v55  ;;  %v5469_v24 = vcombine.high %v7161_v4, %v7163_v23  ;;  %v7212_v36 = vld [vmem:[#allocation8 + $0x5a0] sm:$0xff] }
 0x28a   : > { %v1208_v58 = vadd.f32 %v1207_v3, %v7057_v47  ;;  %v1321_v7 = vadd.f32 %v1320_v5, %v7061_v48  ;;  %v1209_v8 = vpop.f32.mrb[10].mxu1  ;;  %v1322_v11 = vpop.f32.mrb[42].mxu0  ;;  %3093 = vmatprep.mubr.bf16.mxu1 %v7165_v54  ;;  %3319 = vmatprep.mubr.bf16.mxu0 %v7165_v54  ;;  %v7283_v39 = vld [vmem:[#allocation8 + $0x620] sm:$0xff] }
 0x28b   : > { %v1210_v55 = vadd.f32 %v1209_v8, %v7050_v45  ;;  %v1323_v12 = vadd.f32 %v1322_v11, %v7054_v46  ;;  %v1211_v16 = vpop.f32.mrb[11].mxu1  ;;  %v1324_v17 = vpop.f32.mrb[43].mxu0  ;;  %3094 = vmatmul.mubr.bf16.gmra.mrb[36].mxu1 %v7153_v40  ;;  %3320 = vmatmul.mubr.bf16.gmra.mrb[68].mxu0 %v7153_v40  ;;  %v1393_v60 = vmax.f32 %v1206_v1, 0.0  ;;  %v1395_v61 = vmax.f32 %v1319_v2, 0.0  ;;  %v7316_v23 = vld [vmem:[#allocation8 + $0x640] sm:$0xff] }
 0x28c   : > { %v1212_v26 = vadd.f32 %v1211_v16, %v7057_v47  ;;  %v1325_v30 = vadd.f32 %v1324_v17, %v7061_v48  ;;  %3169 = vmatpush1.bf16.msra.mxu1 %v5444_v28  ;;  %3395 = vmatpush1.bf16.msra.mxu0 %v5446_v32  ;;  %v1394_v9 = vmax.f32 %v1208_v58, 0.0  ;;  %v1396_v10 = vmax.f32 %v1321_v7, 0.0  ;;  %v7217_v28 = vld [vmem:[#allocation8 + $0x588] sm:$0xff]  ;;  %v7243_v16 = vld [vmem:[#allocation8 + $0x5e0] sm:$0xff] }
 0x28d   : > { %v1397_v3 = vmax.f32 %v1210_v55, 0.0  ;;  %v1399_v5 = vmax.f32 %v1323_v12, 0.0  ;;  %3170 = vmatprep.subr.bf16.mxu1 %v5453_v56  ;;  %3396 = vmatprep.subr.bf16.mxu0 %v5455_v13  ;;  %v7219_v32 = vld [vmem:[#allocation8 + $0x5a8] sm:$0xff]  ;;  %v5471_v1 = vcombine.high %v7184_v52, %v7186_v57  ;;  %v5477_v2 = vcombine.high %v7210_v33, %v7212_v36  ;;  %v7241_v12 = vld [vmem:[#allocation8 + $0x5c0] sm:$0xff] }
 0x28e   : > { %v1398_v15 = vmax.f32 %v1212_v26, 0.0  ;;  %v1400_v38 = vmax.f32 %v1325_v30, 0.0  ;;  %v5476_v55 = vcombine.low %v7210_v33, %v7212_v36  ;;  %v5478_v20 = vcombine.low %v7217_v28, %v7219_v32  ;;  %v7318_v52 = vld [vmem:[#allocation8 + $0x660] sm:$0xff] }
 0x28f   : > { %v7221_v8 = vpack.c.bf16 %v1397_v3, %v1393_v60  ;;  %v7223_v11 = vpack.c.bf16 %v1399_v5, %v1395_v61  ;;  %v5479_v60 = vcombine.high %v7217_v28, %v7219_v32  ;;  %v5485_v5 = vcombine.high %v7241_v12, %v7243_v16 }
 0x290   : > { %v7229_v56 = vpack.c.bf16 %v1398_v15, %v1394_v9  ;;  %v7231_v13 = vpack.c.bf16 %v1400_v38, %v1396_v10  ;;  %3171 = vmatpush1.bf16.msra.mxu1 %v5452_v63  ;;  %v1215_v58 = vpop.f32.mrb[12].mxu1  ;;  %v1328_v7 = vpop.f32.mrb[44].mxu0  ;;  %3397 = vmatpush1.bf16.msra.mxu0 %v5454_v6  ;;  %v5484_v15 = vcombine.low %v7241_v12, %v7243_v16  ;;  %v7274_v38 = vld [vmem:[#allocation8 + $0x5c8] sm:$0xff] }
 0x291   : > { %v1216_v17 = vadd.f32 %v1215_v58, %v7050_v45  ;;  %v1329_v26 = vadd.f32 %v1328_v7, %v7054_v46  ;;  %v1217_v30 = vpop.f32.mrb[13].mxu1  ;;  %v1330_v19 = vpop.f32.mrb[45].mxu0  ;;  %3172 = vmatprep.subr.bf16.mxu1 %v5461_v50  ;;  %3398 = vmatprep.subr.bf16.mxu0 %v5463_v51  ;;  %v7276_v58 = vld [vmem:[#allocation8 + $0x5e8] sm:$0xff]  ;;  %v5492_v4 = vcombine.low %v7281_v14, %v7283_v39 }
 0x292   : > { %v1218_v41 = vadd.f32 %v1217_v30, %v7057_v47  ;;  %v1331_v43 = vadd.f32 %v1330_v19, %v7061_v48  ;;  %v1219_v63 = vpop.f32.mrb[14].mxu1  ;;  %v1332_v6 = vpop.f32.mrb[46].mxu0  ;;  %3103 = vmatprep.mubr.bf16.mxu1 %v7229_v56  ;;  %3329 = vmatprep.mubr.bf16.mxu0 %v7229_v56 }
 0x293   : > { %v1220_v61 = vadd.f32 %v1219_v63, %v7050_v45  ;;  %v1333_v50 = vadd.f32 %v1332_v6, %v7054_v46  ;;  %v1221_v51 = vpop.f32.mrb[15].mxu1  ;;  %v1334_v3 = vpop.f32.mrb[47].mxu0  ;;  %3104 = vmatmul.mubr.bf16.gmra.mrb[40].mxu1 %v7221_v8  ;;  %3330 = vmatmul.mubr.bf16.gmra.mrb[72].mxu0 %v7221_v8  ;;  %v1401_v7 = vmax.f32 %v1216_v17, 0.0  ;;  %v1403_v30 = vmax.f32 %v1329_v26, 0.0 }
 0x294   : > { %v1222_v9 = vadd.f32 %v1221_v51, %v7057_v47  ;;  %v1335_v10 = vadd.f32 %v1334_v3, %v7061_v48  ;;  %3173 = vmatpush1.bf16.msra.mxu1 %v5460_v49  ;;  %3399 = vmatpush1.bf16.msra.mxu0 %v5462_v62  ;;  %v1402_v27 = vmax.f32 %v1218_v41, 0.0  ;;  %v1404_v29 = vmax.f32 %v1331_v43, 0.0 }
 0x295   : > { %v1405_v19 = vmax.f32 %v1220_v61, 0.0  ;;  %v1407_v63 = vmax.f32 %v1333_v50, 0.0  ;;  %3174 = vmatprep.subr.bf16.mxu1 %v5469_v24  ;;  %3400 = vmatprep.subr.bf16.mxu0 %v5471_v1  ;;  %v5486_v17 = vcombine.low %v7274_v38, %v7276_v58  ;;  %v5487_v26 = vcombine.high %v7274_v38, %v7276_v58  ;;  %v7293_v24 = vld [vmem:[#allocation8 + $0x608] sm:$0xff] }
 0x296   : > { %v1406_v49 = vmax.f32 %v1222_v9, 0.0  ;;  %v1408_v62 = vmax.f32 %v1335_v10, 0.0  ;;  %v7295_v1 = vld [vmem:[#allocation8 + $0x628] sm:$0xff]  ;;  %v5493_v3 = vcombine.high %v7281_v14, %v7283_v39 }
 0x297   : > { %v7285_v6 = vpack.c.bf16 %v1405_v19, %v1401_v7  ;;  %v7287_v51 = vpack.c.bf16 %v1407_v63, %v1403_v30  ;;  %v7406_v14 = vld [vmem:[#allocation8 + $0x6e8] sm:$0xff] }
 0x298   : > { %v7297_v61 = vpack.c.bf16 %v1406_v49, %v1402_v27  ;;  %v7299_v41 = vpack.c.bf16 %v1408_v62, %v1404_v29  ;;  %3175 = vmatpush1.bf16.msra.mxu1 %v5468_v18  ;;  %v1225_v43 = vpop.f32.mrb[16].mxu1  ;;  %v1338_v50 = vpop.f32.mrb[48].mxu0  ;;  %3401 = vmatpush1.bf16.msra.mxu0 %v5470_v31  ;;  %v5495_v27 = vcombine.high %v7293_v24, %v7295_v1 }
 0x299   : > { %v1226_v9 = vadd.f32 %v1225_v43, %v7050_v45  ;;  %v1339_v10 = vadd.f32 %v1338_v50, %v7054_v46  ;;  %v1227_v38 = vpop.f32.mrb[17].mxu1  ;;  %v1340_v58 = vpop.f32.mrb[49].mxu0  ;;  %3176 = vmatprep.subr.bf16.mxu1 %v5477_v2  ;;  %3402 = vmatprep.subr.bf16.mxu0 %v5479_v60  ;;  %v5494_v2 = vcombine.low %v7293_v24, %v7295_v1  ;;  %v7342_v43 = vld [vmem:[#allocation8 + $0x648] sm:$0xff] }
 0x29a   : > { %v1228_v57 = vadd.f32 %v1227_v38, %v7057_v47  ;;  %v1341_v18 = vadd.f32 %v1340_v58, %v7061_v48  ;;  %v1229_v31 = vpop.f32.mrb[18].mxu1  ;;  %v1342_v7 = vpop.f32.mrb[50].mxu0  ;;  %3113 = vmatprep.mubr.bf16.mxu1 %v7297_v61  ;;  %3339 = vmatprep.mubr.bf16.mxu0 %v7297_v61  ;;  %v5501_v62 = vcombine.high %v7316_v23, %v7318_v52  ;;  %v7344_v50 = vld [vmem:[#allocation8 + $0x668] sm:$0xff] }
 0x29b   : > { %v1230_v60 = vadd.f32 %v1229_v31, %v7050_v45  ;;  %v1343_v30 = vadd.f32 %v1342_v7, %v7054_v46  ;;  %v1231_v19 = vpop.f32.mrb[19].mxu1  ;;  %v1344_v63 = vpop.f32.mrb[51].mxu0  ;;  %3114 = vmatmul.mubr.bf16.gmra.mrb[44].mxu1 %v7285_v6  ;;  %3340 = vmatmul.mubr.bf16.gmra.mrb[76].mxu0 %v7285_v6  ;;  %v1409_v38 = vmax.f32 %v1226_v9, 0.0  ;;  %v1411_v58 = vmax.f32 %v1339_v10, 0.0 }
 0x29c   : > { %v1232_v29 = vadd.f32 %v1231_v19, %v7057_v47  ;;  %v1345_v49 = vadd.f32 %v1344_v63, %v7061_v48  ;;  %3177 = vmatpush1.bf16.msra.mxu1 %v5476_v55  ;;  %3403 = vmatpush1.bf16.msra.mxu0 %v5478_v20  ;;  %v1410_v33 = vmax.f32 %v1228_v57, 0.0  ;;  %v1412_v36 = vmax.f32 %v1341_v18, 0.0  ;;  %v7349_v55 = vld [vmem:[#allocation8 + $0x680] sm:$0xff] }
 0x29d   : > { %v1413_v31 = vmax.f32 %v1230_v60, 0.0  ;;  %v1415_v7 = vmax.f32 %v1343_v30, 0.0  ;;  %3178 = vmatprep.subr.bf16.mxu1 %v5485_v5  ;;  %3404 = vmatprep.subr.bf16.mxu0 %v5487_v26  ;;  %v7351_v20 = vld [vmem:[#allocation8 + $0x6a0] sm:$0xff]  ;;  %v5500_v9 = vcombine.low %v7316_v23, %v7318_v52  ;;  %v5502_v10 = vcombine.low %v7342_v43, %v7344_v50  ;;  %v7370_v30 = vld [vmem:[#allocation8 + $0x688] sm:$0xff] }
 0x29e   : > { %v1414_v28 = vmax.f32 %v1232_v29, 0.0  ;;  %v1416_v32 = vmax.f32 %v1345_v49, 0.0  ;;  %v5503_v60 = vcombine.high %v7342_v43, %v7344_v50  ;;  %v7372_v23 = vld [vmem:[#allocation8 + $0x6a8] sm:$0xff]  ;;  %v5509_v12 = vcombine.high %v7349_v55, %v7351_v20 }
 0x29f   : > { %v7353_v19 = vpack.c.bf16 %v1413_v31, %v1409_v38  ;;  %v7355_v63 = vpack.c.bf16 %v1415_v7, %v1411_v58  ;;  %v5508_v50 = vcombine.low %v7349_v55, %v7351_v20  ;;  %v5510_v7 = vcombine.low %v7370_v30, %v7372_v23  ;;  %v1706_v55 = vld [vmem:[#allocation8 + $0x748] sm:$0xff] }
 0x2a0   : > { %v7361_v5 = vpack.c.bf16 %v1414_v28, %v1410_v33  ;;  %v7363_v26 = vpack.c.bf16 %v1416_v32, %v1412_v36  ;;  %3179 = vmatpush1.bf16.msra.mxu1 %v5484_v15  ;;  %v1235_v57 = vpop.f32.mrb[20].mxu1  ;;  %v1348_v18 = vpop.f32.mrb[52].mxu0  ;;  %3405 = vmatpush1.bf16.msra.mxu0 %v5486_v17  ;;  %v5511_v28 = vcombine.high %v7370_v30, %v7372_v23  ;;  %v7400_v32 = vld [vmem:[#allocation8 + $0x6c0] sm:$0xff]  ;;  %v1710_v20 = vld [vmem:[#allocation8 + $0x768] sm:$0xff] }
 0x2a1   : > { %v1236_v52 = vadd.f32 %v1235_v57, %v7050_v45  ;;  %v1349_v29 = vadd.f32 %v1348_v18, %v7054_v46  ;;  %v1237_v49 = vpop.f32.mrb[21].mxu1  ;;  %v1350_v38 = vpop.f32.mrb[53].mxu0  ;;  %3180 = vmatprep.subr.bf16.mxu1 %v5493_v3  ;;  %3406 = vmatprep.subr.bf16.mxu0 %v5495_v27  ;;  %v7402_v57 = vld [vmem:[#allocation8 + $0x6e0] sm:$0xff] }
 0x2a2   : > { %v1238_v16 = vadd.f32 %v1237_v49, %v7057_v47  ;;  %v1351_v15 = vadd.f32 %v1350_v38, %v7061_v48  ;;  %v1239_v17 = vpop.f32.mrb[22].mxu1  ;;  %v1352_v43 = vpop.f32.mrb[54].mxu0  ;;  %3123 = vmatprep.mubr.bf16.mxu1 %v7361_v5  ;;  %3349 = vmatprep.mubr.bf16.mxu0 %v7361_v5  ;;  %v5516_v23 = vcombine.low %v7400_v32, %v7402_v57 }
 0x2a3   : > { %v1240_v58 = vadd.f32 %v1239_v17, %v7050_v45  ;;  %v1353_v3 = vadd.f32 %v1352_v43, %v7054_v46  ;;  %v1241_v27 = vpop.f32.mrb[23].mxu1  ;;  %v1354_v31 = vpop.f32.mrb[55].mxu0  ;;  %3124 = vmatmul.mubr.bf16.gmra.mrb[48].mxu1 %v7353_v19  ;;  %3350 = vmatmul.mubr.bf16.gmra.mrb[80].mxu0 %v7353_v19  ;;  %v1417_v18 = vmax.f32 %v1236_v52, 0.0  ;;  %v1419_v49 = vmax.f32 %v1349_v29, 0.0  ;;  %v7404_v43 = vld [vmem:[#allocation8 + $0x6c8] sm:$0xff] }
 0x2a4   : > { %v1242_v33 = vadd.f32 %v1241_v27, %v7057_v47  ;;  %v1355_v36 = vadd.f32 %v1354_v31, %v7061_v48  ;;  %3181 = vmatpush1.bf16.msra.mxu1 %v5492_v4  ;;  %3407 = vmatpush1.bf16.msra.mxu0 %v5494_v2  ;;  %v1418_v39 = vmax.f32 %v1238_v16, 0.0  ;;  %v1420_v24 = vmax.f32 %v1351_v15, 0.0 }
 0x2a5   : > { %v1421_v38 = vmax.f32 %v1240_v58, 0.0  ;;  %v1423_v17 = vmax.f32 %v1353_v3, 0.0  ;;  %3182 = vmatprep.subr.bf16.mxu1 %v5501_v62  ;;  %3408 = vmatprep.subr.bf16.mxu0 %v5503_v60  ;;  %v5517_v52 = vcombine.high %v7400_v32, %v7402_v57  ;;  %v7416_v62 = vld [vmem:[#allocation8 + $0x700] sm:$0xff]  ;;  %v5518_v3 = vcombine.low %v7404_v43, %v7406_v14  ;;  %v7430_v57 = vld [vmem:[#allocation8 + $0x708] sm:$0xff] }
 0x2a6   : > { %v1422_v1 = vmax.f32 %v1242_v33, 0.0  ;;  %v1424_v4 = vmax.f32 %v1355_v36, 0.0  ;;  %v7418_v60 = vld [vmem:[#allocation8 + $0x720] sm:$0xff]  ;;  %v5519_v32 = vcombine.high %v7404_v43, %v7406_v14 }
 0x2a7   : > { %v7408_v2 = vpack.c.bf16 %v1421_v38, %v1417_v18  ;;  %v7410_v30 = vpack.c.bf16 %v1423_v17, %v1419_v49 }
 0x2a8   : > { %v7420_v29 = vpack.c.bf16 %v1422_v1, %v1418_v39  ;;  %v7422_v16 = vpack.c.bf16 %v1424_v4, %v1420_v24  ;;  %3183 = vmatpush1.bf16.msra.mxu1 %v5500_v9  ;;  %v1245_v15 = vpop.f32.mrb[24].mxu1  ;;  %v1358_v58 = vpop.f32.mrb[56].mxu0  ;;  %3409 = vmatpush1.bf16.msra.mxu0 %v5502_v10  ;;  %v7432_v9 = vld [vmem:[#allocation8 + $0x728] sm:$0xff]  ;;  %v5524_v39 = vcombine.low %v7416_v62, %v7418_v60 }
 0x2a9   : > { %v1246_v27 = vadd.f32 %v1245_v15, %v7050_v45  ;;  %v1359_v31 = vadd.f32 %v1358_v58, %v7054_v46  ;;  %v1247_v33 = vpop.f32.mrb[25].mxu1  ;;  %v1360_v36 = vpop.f32.mrb[57].mxu0  ;;  %3184 = vmatprep.subr.bf16.mxu1 %v5509_v12  ;;  %3410 = vmatprep.subr.bf16.mxu0 %v5511_v28  ;;  %v5525_v12 = vcombine.high %v7416_v62, %v7418_v60  ;;  %v7453_v15 = vld [vmem:[#allocation8 + $0x740] sm:$0xff] }
 0x2aa   : > { %v1248_v10 = vadd.f32 %v1247_v33, %v7057_v47  ;;  %v1361_v18 = vadd.f32 %v1360_v36, %v7061_v48  ;;  %v1249_v49 = vpop.f32.mrb[26].mxu1  ;;  %v1362_v38 = vpop.f32.mrb[58].mxu0  ;;  %3133 = vmatprep.mubr.bf16.mxu1 %v7420_v29  ;;  %3359 = vmatprep.mubr.bf16.mxu0 %v7420_v29  ;;  %v5527_v4 = vcombine.high %v7430_v57, %v7432_v9  ;;  %v7455_v58 = vld [vmem:[#allocation8 + $0x760] sm:$0xff] }
 0x2ab   : > { %v1250_v28 = vadd.f32 %v1249_v49, %v7050_v45  ;;  %v1363_v17 = vadd.f32 %v1362_v38, %v7054_v46  ;;  %v1251_v43 = vpop.f32.mrb[27].mxu1  ;;  %v1364_v14 = vpop.f32.mrb[59].mxu0  ;;  %3134 = vmatmul.mubr.bf16.gmra.mrb[52].mxu1 %v7408_v2  ;;  %3360 = vmatmul.mubr.bf16.gmra.mrb[84].mxu0 %v7408_v2  ;;  %v1425_v33 = vmax.f32 %v1246_v27, 0.0  ;;  %v1427_v36 = vmax.f32 %v1359_v31, 0.0 }
 0x2ac   : > { %v1252_v24 = vadd.f32 %v1251_v43, %v7057_v47  ;;  %v1365_v1 = vadd.f32 %v1364_v14, %v7061_v48  ;;  %3185 = vmatpush1.bf16.msra.mxu1 %v5508_v50  ;;  %3411 = vmatpush1.bf16.msra.mxu0 %v5510_v7  ;;  %v1426_v60 = vmax.f32 %v1248_v10, 0.0  ;;  %v1428_v38 = vmax.f32 %v1361_v18, 0.0 }
 0x2ad   : > { %v1429_v49 = vmax.f32 %v1250_v28, 0.0  ;;  %v1431_v62 = vmax.f32 %v1363_v17, 0.0  ;;  %3186 = vmatprep.subr.bf16.mxu1 %v5517_v52  ;;  %3412 = vmatprep.subr.bf16.mxu0 %v5519_v32  ;;  %v5526_v44 = vcombine.low %v7430_v57, %v7432_v9  ;;  %v5533_v27 = vcombine.high %v7453_v15, %v7455_v58  ;;  %v7471_v28 = vld [vmem:[#allocation8 + $0x780] sm:$0xff] }
 0x2ae   : > { %v1430_v43 = vmax.f32 %v1252_v24, 0.0  ;;  %v1432_v14 = vmax.f32 %v1365_v1, 0.0  ;;  %v5532_v18 = vcombine.low %v7453_v15, %v7455_v58  ;;  %v7473_v17 = vld [vmem:[#allocation8 + $0x7a0] sm:$0xff] }
 0x2af   : > { %v7457_v50 = vpack.c.bf16 %v1429_v49, %v1425_v33  ;;  %v7459_v7 = vpack.c.bf16 %v1431_v62, %v1427_v36  ;;  %v5535_v33 = vcombine.high %v1706_v55, %v1710_v20  ;;  %v1718_v36 = vld [vmem:[#allocation8 + $0x7a8] sm:$0xff]  ;;  %v5534_v62 = vcombine.low %v1706_v55, %v1710_v20 }
 0x2b0   : > { %v7465_v31 = vpack.c.bf16 %v1430_v43, %v1426_v60  ;;  %v7467_v52 = vpack.c.bf16 %v1432_v14, %v1428_v38  ;;  %3187 = vmatpush1.bf16.msra.mxu1 %v5516_v23  ;;  %v1255_v32 = vpop.f32.mrb[28].mxu1  ;;  %v1368_v10 = vpop.f32.mrb[60].mxu0  ;;  %3413 = vmatpush1.bf16.msra.mxu0 %v5518_v3  ;;  %v1714_v23 = vld [vmem:[#allocation8 + $0x788] sm:$0xff]  ;;  %v5541_v43 = vcombine.high %v7471_v28, %v7473_v17 }
 0x2b1   : > { %v1256_v57 = vadd.f32 %v1255_v32, %v7050_v45  ;;  %v1369_v9 = vadd.f32 %v1368_v10, %v7054_v46  ;;  %v1257_v24 = vpop.f32.mrb[29].mxu1  ;;  %v1370_v1 = vpop.f32.mrb[61].mxu0  ;;  %3188 = vmatprep.subr.bf16.mxu1 %v5525_v12  ;;  %3414 = vmatprep.subr.bf16.mxu0 %v5527_v4  ;;  %v5543_v55 = vcombine.high %v1714_v23, %v1718_v36 }
 0x2b2   : > { %v1258_v3 = vadd.f32 %v1257_v24, %v7057_v47  ;;  %v1371_v49 = vadd.f32 %v1370_v1, %v7061_v48  ;;  %v1259_v15 = vpop.f32.mrb[30].mxu1  ;;  %v1372_v58 = vpop.f32.mrb[62].mxu0  ;;  %3143 = vmatprep.mubr.bf16.mxu1 %v7465_v31  ;;  %3369 = vmatprep.mubr.bf16.mxu0 %v7465_v31 }
 0x2b3   : > { %v1260_v60 = vadd.f32 %v1259_v15, %v7050_v45  ;;  %v1373_v38 = vadd.f32 %v1372_v58, %v7054_v46  ;;  %v1261_v12 = vpop.f32.mrb[31].mxu1  ;;  %v1374_v4 = vpop.f32.mrb[63].mxu0  ;;  %3144 = vmatmul.mubr.bf16.gmra.mrb[56].mxu1 %v7457_v50  ;;  %3370 = vmatmul.mubr.bf16.gmra.mrb[88].mxu0 %v7457_v50  ;;  %v1433_v20 = vmax.f32 %v1256_v57, 0.0  ;;  %v1435_v45 = vmax.f32 %v1369_v9, 0.0 }
 0x2b4   : > { %v1262_v14 = vadd.f32 %v1261_v12, %v7057_v47  ;;  %v1375_v32 = vadd.f32 %v1374_v4, %v7061_v48  ;;  %3189 = vmatpush1.bf16.msra.mxu1 %v5524_v39  ;;  %3415 = vmatpush1.bf16.msra.mxu0 %v5526_v44  ;;  %v1434_v24 = vmax.f32 %v1258_v3, 0.0  ;;  %v1436_v1 = vmax.f32 %v1371_v49, 0.0  ;;  %v1725_v47 = vld [vmem:[#allocation8 + $0x7e0] sm:$0xff]  ;;  %v1722_v48 = vld [vmem:[#allocation8 + $0x7c8] sm:$0xff]  ;;  %v1475_v49 = vld [vmem:[#allocation8 + $0x10] sm:$0xff] }
 0x2b5   : > { %v1437_v10 = vmax.f32 %v1260_v60, 0.0  ;;  %v1439_v46 = vmax.f32 %v1373_v38, 0.0  ;;  %3190 = vmatprep.subr.bf16.mxu1 %v5533_v27  ;;  %3416 = vmatprep.subr.bf16.mxu0 %v5535_v33  ;;  %v1726_v39 = vld [vmem:[#allocation8 + $0x7e8] sm:$0xff]  ;;  %v5540_v27 = vcombine.low %v7471_v28, %v7473_v17  ;;  %v5542_v9 = vcombine.low %v1714_v23, %v1718_v36  ;;  %v1479_v60 = vld [vmem:[#allocation8 + $0x30] sm:$0xff] }
 0x2b6   : > { %v1438_v15 = vmax.f32 %v1262_v14, 0.0  ;;  %v1440_v58 = vmax.f32 %v1375_v32, 0.0  ;;  %v5549_v33 = vcombine.high %v1721_v42, %v1725_v47  ;;  %v5551_v3 = vcombine.high %v1722_v48, %v1726_v39  ;;  %v1483_v38 = vld [vmem:[#allocation8 + $0x50] sm:$0xff]  ;;  %v1488_v14 = vld [vmem:[#allocation8 + $0x78] sm:$0xff] }
 0x2b7   : > { %v7489_v37 = vpack.c.bf16 %v1437_v10, %v1433_v20  ;;  %v7491_v34 = vpack.c.bf16 %v1439_v46, %v1435_v45  ;;  %v5548_v28 = vcombine.low %v1721_v42, %v1725_v47  ;;  %v5550_v17 = vcombine.low %v1722_v48, %v1726_v39  ;;  %v1487_v12 = vld [vmem:[#allocation8 + $0x70] sm:$0xff]  ;;  %v1492_v46 = vld [vmem:[#allocation8 + $0x98] sm:$0xff] }
 0x2b8   : > { %v7493_v44 = vpack.c.bf16 %v1438_v15, %v1434_v24  ;;  %v7495_v57 = vpack.c.bf16 %v1440_v58, %v1436_v1  ;;  %3191 = vmatpush1.bf16.msra.mxu1 %v5532_v18  ;;  %3417 = vmatpush1.bf16.msra.mxu0 %v5534_v62  ;;  %v1476_v18 = vld [vmem:[#allocation8 + $0x18] sm:$0xff]  ;;  %v5305_v23 = vcombine.high %v1475_v49, %v1479_v60  ;;  %v1491_v42 = vld [vmem:[#allocation8 + $0x90] sm:$0xff] }
 0x2b9   : > { %3192 = vmatprep.subr.bf16.mxu1 %v5541_v43  ;;  %3418 = vmatprep.subr.bf16.mxu0 %v5543_v55  ;;  %v1480_v62 = vld [vmem:[#allocation8 + $0x38] sm:$0xff]  ;;  %v5304_v4 = vcombine.low %v1475_v49, %v1479_v60  ;;  %v5313_v55 = vcombine.high %v1483_v38, %v1487_v12  ;;  %v1495_v20 = vld [vmem:[#allocation8 + $0xb0] sm:$0xff]  ;;  %v5312_v10 = vcombine.low %v1483_v38, %v1487_v12 }
 0x2ba   : > { %3153 = vmatprep.mubr.bf16.mxu1 %v7493_v44  ;;  %3379 = vmatprep.mubr.bf16.mxu0 %v7493_v44  ;;  %v5307_v36 = vcombine.high %v1476_v18, %v1480_v62  ;;  %v1484_v43 = vld [vmem:[#allocation8 + $0x58] sm:$0xff]  ;;  %v5306_v32 = vcombine.low %v1476_v18, %v1480_v62  ;;  %v5321_v1 = vcombine.high %v1491_v42, %v1495_v20  ;;  %v1499_v47 = vld [vmem:[#allocation8 + $0xd0] sm:$0xff] }
 0x2bb   : > { %3154 = vmatmul.mubr.bf16.gmra.mrb[60].mxu1 %v7489_v37  ;;  %3380 = vmatmul.mubr.bf16.gmra.mrb[92].mxu0 %v7489_v37  ;;  %v5315_v45 = vcombine.high %v1484_v43, %v1488_v14  ;;  %v1496_v24 = vld [vmem:[#allocation8 + $0xb8] sm:$0xff]  ;;  %v5314_v15 = vcombine.low %v1484_v43, %v1488_v14  ;;  %v1503_v48 = vld [vmem:[#allocation8 + $0xf0] sm:$0xff]  ;;  %v5320_v39 = vcombine.low %v1491_v42, %v1495_v20 }
 0x2bc   : > { %3193 = vmatpush1.bf16.msra.mxu1 %v5540_v27  ;;  %3196 = vmatprep.mubr.bf16.mxu1 %v7107_v0  ;;  %v5323_v58 = vcombine.high %v1492_v46, %v1496_v24  ;;  %v1500_v27 = vld [vmem:[#allocation8 + $0xd8] sm:$0xff]  ;;  %v1507_v49 = vld [vmem:[#allocation8 + $0x110] sm:$0xff]  ;;  %v5328_v62 = vcombine.low %v1499_v47, %v1503_v48 }
 0x2bd   : > { %3419 = vmatpush1.bf16.msra.mxu0 %v5542_v9  ;;  %3422 = vmatprep.mubr.bf16.mxu0 %v7107_v0  ;;  %v1504_v9 = vld [vmem:[#allocation8 + $0xf8] sm:$0xff]  ;;  %v1511_v60 = vld [vmem:[#allocation8 + $0x130] sm:$0xff] }
 0x2be   : > { %3194 = vmatprep.subr.bf16.mxu1 %v5549_v33  ;;  %3420 = vmatprep.subr.bf16.mxu0 %v5551_v3  ;;  %v5322_v33 = vcombine.low %v1492_v46, %v1496_v24  ;;  %v5329_v3 = vcombine.high %v1499_v47, %v1503_v48  ;;  %v5331_v18 = vcombine.high %v1500_v27, %v1504_v9  ;;  %v1515_v12 = vld [vmem:[#allocation8 + $0x150] sm:$0xff]  ;;  %v1516_v14 = vld [vmem:[#allocation8 + $0x158] sm:$0xff] }
 0x2bf   : > { %v5336_v43 = vcombine.low %v1507_v49, %v1511_v60  ;;  %v1523_v20 = vld [vmem:[#allocation8 + $0x190] sm:$0xff]  ;;  %v1524_v24 = vld [vmem:[#allocation8 + $0x198] sm:$0xff] }
 0x2c0   : > { %3195 = vmatpush1.bf16.msra.mxu1 %v5548_v28  ;;  %v1508_v28 = vld [vmem:[#allocation8 + $0x118] sm:$0xff]  ;;  %v1531_v48 = vld [vmem:[#allocation8 + $0x1d0] sm:$0xff] }
 0x2c1   : > { %3421 = vmatpush1.bf16.msra.mxu0 %v5550_v17  ;;  %3503 = vmatprep.subr.bf16.mxu1 %v5305_v23  ;;  %v1512_v17 = vld [vmem:[#allocation8 + $0x138] sm:$0xff]  ;;  %v5337_v23 = vcombine.high %v1507_v49, %v1511_v60  ;;  %v1539_v60 = vld [vmem:[#allocation8 + $0x210] sm:$0xff] }
 0x2c2   : > { %3729 = vmatprep.subr.bf16.mxu0 %v5307_v36  ;;  %v5330_v36 = vcombine.low %v1500_v27, %v1504_v9  ;;  %v5339_v38 = vcombine.high %v1508_v28, %v1512_v17  ;;  %v1532_v9 = vld [vmem:[#allocation8 + $0x1d8] sm:$0xff] }
 0x2c3   : > { %3197 = vmatmul.mubr.bf16.vlgmr.msra.gmra.mrb[32].mxu1 %v7099_v22 }
 0x2c4   : > { %3423 = vmatmul.mubr.bf16.vlgmr.msra.gmra.mrb[64].mxu0 %v7099_v22  ;;  %3504 = vmatpush1.bf16.msra.mxu1 %v5304_v4  ;;  %v1519_v4 = vld [vmem:[#allocation8 + $0x170] sm:$0xff] }
 0x2c5   : > { %3206 = vmatprep.mubr.bf16.mxu1 %v7167_v59  ;;  %3432 = vmatprep.mubr.bf16.mxu0 %v7167_v59  ;;  %v5345_v42 = vcombine.high %v1515_v12, %v1519_v4  ;;  %v5344_v46 = vcombine.low %v1515_v12, %v1519_v4  ;;  %v1547_v4 = vld [vmem:[#allocation8 + $0x250] sm:$0xff] }
 0x2c6   : > { %3730 = vmatpush1.bf16.msra.mxu0 %v5306_v32  ;;  %3505 = vmatprep.subr.bf16.mxu1 %v5313_v55  ;;  %v1520_v32 = vld [vmem:[#allocation8 + $0x178] sm:$0xff]  ;;  %v5338_v55 = vcombine.low %v1508_v28, %v1512_v17 }
 0x2c7   : > { %3731 = vmatprep.subr.bf16.mxu0 %v5315_v45  ;;  %v1527_v45 = vld [vmem:[#allocation8 + $0x1b0] sm:$0xff]  ;;  %v1540_v17 = vld [vmem:[#allocation8 + $0x218] sm:$0xff] }
 0x2c8   : > { %3506 = vmatpush1.bf16.msra.mxu1 %v5312_v10  ;;  %v5347_v10 = vcombine.high %v1516_v14, %v1520_v32  ;;  %v5352_v27 = vcombine.low %v1523_v20, %v1527_v45 }
 0x2c9   : > { %3507 = vmatprep.subr.bf16.mxu1 %v5321_v1  ;;  %v1528_v1 = vld [vmem:[#allocation8 + $0x1b8] sm:$0xff] }
 0x2ca   : > { %3732 = vmatpush1.bf16.msra.mxu0 %v5314_v15  ;;  %v5353_v15 = vcombine.high %v1523_v20, %v1527_v45  ;;  %v5355_v47 = vcombine.high %v1524_v24, %v1528_v1  ;;  %v1555_v45 = vld [vmem:[#allocation8 + $0x290] sm:$0xff] }
 0x2cb   : > { %3207 = vmatmul.mubr.bf16.gmra.mrb[36].mxu1 %v7155_v53  ;;  %3733 = vmatprep.subr.bf16.mxu0 %v5323_v58  ;;  %v5346_v58 = vcombine.low %v1516_v14, %v1520_v32  ;;  %v1548_v32 = vld [vmem:[#allocation8 + $0x258] sm:$0xff] }
 0x2cc   : > { %3433 = vmatmul.mubr.bf16.gmra.mrb[68].mxu0 %v7155_v53  ;;  %3508 = vmatpush1.bf16.msra.mxu1 %v5320_v39  ;;  %v1535_v39 = vld [vmem:[#allocation8 + $0x1f0] sm:$0xff] }
 0x2cd   : > { %3216 = vmatprep.mubr.bf16.mxu1 %v7231_v13  ;;  %3442 = vmatprep.mubr.bf16.mxu0 %v7231_v13  ;;  %v5361_v49 = vcombine.high %v1531_v48, %v1535_v39  ;;  %v5360_v28 = vcombine.low %v1531_v48, %v1535_v39  ;;  %v1563_v39 = vld [vmem:[#allocation8 + $0x2d0] sm:$0xff] }
 0x2ce   : > { %3734 = vmatpush1.bf16.msra.mxu0 %v5322_v33  ;;  %3509 = vmatprep.subr.bf16.mxu1 %v5329_v3  ;;  %v1536_v33 = vld [vmem:[#allocation8 + $0x1f8] sm:$0xff]  ;;  %v5354_v3 = vcombine.low %v1524_v24, %v1528_v1 }
 0x2cf   : > { %3735 = vmatprep.subr.bf16.mxu0 %v5331_v18  ;;  %v1543_v18 = vld [vmem:[#allocation8 + $0x230] sm:$0xff]  ;;  %v1556_v1 = vld [vmem:[#allocation8 + $0x298] sm:$0xff] }
 0x2d0   : > { %3510 = vmatpush1.bf16.msra.mxu1 %v5328_v62  ;;  %v5363_v62 = vcombine.high %v1532_v9, %v1536_v33  ;;  %v5368_v14 = vcombine.low %v1539_v60, %v1543_v18 }
 0x2d1   : > { %3511 = vmatprep.subr.bf16.mxu1 %v5337_v23  ;;  %v1544_v23 = vld [vmem:[#allocation8 + $0x238] sm:$0xff] }
 0x2d2   : > { %3736 = vmatpush1.bf16.msra.mxu0 %v5330_v36  ;;  %v5369_v36 = vcombine.high %v1539_v60, %v1543_v18  ;;  %v5371_v12 = vcombine.high %v1540_v17, %v1544_v23  ;;  %v1571_v18 = vld [vmem:[#allocation8 + $0x310] sm:$0xff] }
 0x2d3   : > { %3217 = vmatmul.mubr.bf16.gmra.mrb[40].mxu1 %v7223_v11  ;;  %3737 = vmatprep.subr.bf16.mxu0 %v5339_v38  ;;  %v5362_v38 = vcombine.low %v1532_v9, %v1536_v33  ;;  %v1564_v33 = vld [vmem:[#allocation8 + $0x2d8] sm:$0xff] }
 0x2d4   : > { %3443 = vmatmul.mubr.bf16.gmra.mrb[72].mxu0 %v7223_v11  ;;  %3512 = vmatpush1.bf16.msra.mxu1 %v5336_v43  ;;  %v1551_v43 = vld [vmem:[#allocation8 + $0x270] sm:$0xff] }
 0x2d5   : > { %3226 = vmatprep.mubr.bf16.mxu1 %v7299_v41  ;;  %3452 = vmatprep.mubr.bf16.mxu0 %v7299_v41  ;;  %v5377_v20 = vcombine.high %v1547_v4, %v1551_v43  ;;  %v5376_v24 = vcombine.low %v1547_v4, %v1551_v43  ;;  %v1579_v43 = vld [vmem:[#allocation8 + $0x350] sm:$0xff] }
 0x2d6   : > { %3738 = vmatpush1.bf16.msra.mxu0 %v5338_v55  ;;  %3513 = vmatprep.subr.bf16.mxu1 %v5345_v42  ;;  %v1552_v55 = vld [vmem:[#allocation8 + $0x278] sm:$0xff]  ;;  %v5370_v42 = vcombine.low %v1540_v17, %v1544_v23 }
 0x2d7   : > { %3739 = vmatprep.subr.bf16.mxu0 %v5347_v10  ;;  %v1559_v10 = vld [vmem:[#allocation8 + $0x2b0] sm:$0xff]  ;;  %v1572_v23 = vld [vmem:[#allocation8 + $0x318] sm:$0xff] }
 0x2d8   : > { %3514 = vmatpush1.bf16.msra.mxu1 %v5344_v46  ;;  %v5379_v46 = vcombine.high %v1548_v32, %v1552_v55  ;;  %v5384_v9 = vcombine.low %v1555_v45, %v1559_v10 }
 0x2d9   : > { %3515 = vmatprep.subr.bf16.mxu1 %v5353_v15  ;;  %v1560_v15 = vld [vmem:[#allocation8 + $0x2b8] sm:$0xff] }
 0x2da   : > { %3740 = vmatpush1.bf16.msra.mxu0 %v5346_v58  ;;  %v5385_v58 = vcombine.high %v1555_v45, %v1559_v10  ;;  %v5387_v48 = vcombine.high %v1556_v1, %v1560_v15  ;;  %v1587_v10 = vld [vmem:[#allocation8 + $0x390] sm:$0xff] }
 0x2db   : > { %3227 = vmatmul.mubr.bf16.gmra.mrb[44].mxu1 %v7287_v51  ;;  %3741 = vmatprep.subr.bf16.mxu0 %v5355_v47  ;;  %v5378_v47 = vcombine.low %v1548_v32, %v1552_v55  ;;  %v1580_v55 = vld [vmem:[#allocation8 + $0x358] sm:$0xff] }
 0x2dc   : > { %3453 = vmatmul.mubr.bf16.gmra.mrb[76].mxu0 %v7287_v51  ;;  %3516 = vmatpush1.bf16.msra.mxu1 %v5352_v27  ;;  %v1567_v27 = vld [vmem:[#allocation8 + $0x2f0] sm:$0xff] }
 0x2dd   : > { %3236 = vmatprep.mubr.bf16.mxu1 %v7363_v26  ;;  %3462 = vmatprep.mubr.bf16.mxu0 %v7363_v26  ;;  %v5393_v60 = vcombine.high %v1563_v39, %v1567_v27  ;;  %v5392_v17 = vcombine.low %v1563_v39, %v1567_v27  ;;  %v1595_v27 = vld [vmem:[#allocation8 + $0x3d0] sm:$0xff] }
 0x2de   : > { %3742 = vmatpush1.bf16.msra.mxu0 %v5354_v3  ;;  %3517 = vmatprep.subr.bf16.mxu1 %v5361_v49  ;;  %v1568_v3 = vld [vmem:[#allocation8 + $0x2f8] sm:$0xff]  ;;  %v5386_v49 = vcombine.low %v1556_v1, %v1560_v15 }
 0x2df   : > { %3743 = vmatprep.subr.bf16.mxu0 %v5363_v62  ;;  %v1575_v62 = vld [vmem:[#allocation8 + $0x330] sm:$0xff]  ;;  %v1588_v15 = vld [vmem:[#allocation8 + $0x398] sm:$0xff] }
 0x2e0   : > { %3518 = vmatpush1.bf16.msra.mxu1 %v5360_v28  ;;  %v5395_v28 = vcombine.high %v1564_v33, %v1568_v3  ;;  %v5400_v32 = vcombine.low %v1571_v18, %v1575_v62 }
 0x2e1   : > { %3519 = vmatprep.subr.bf16.mxu1 %v5369_v36  ;;  %v1576_v36 = vld [vmem:[#allocation8 + $0x338] sm:$0xff] }
 0x2e2   : > { %3744 = vmatpush1.bf16.msra.mxu0 %v5362_v38  ;;  %v5401_v38 = vcombine.high %v1571_v18, %v1575_v62  ;;  %v5403_v4 = vcombine.high %v1572_v23, %v1576_v36  ;;  %v1603_v62 = vld [vmem:[#allocation8 + $0x410] sm:$0xff] }
 0x2e3   : > { %3237 = vmatmul.mubr.bf16.gmra.mrb[48].mxu1 %v7355_v63  ;;  %3745 = vmatprep.subr.bf16.mxu0 %v5371_v12  ;;  %v5394_v12 = vcombine.low %v1564_v33, %v1568_v3  ;;  %v1596_v3 = vld [vmem:[#allocation8 + $0x3d8] sm:$0xff] }
 0x2e4   : > { %3463 = vmatmul.mubr.bf16.gmra.mrb[80].mxu0 %v7355_v63  ;;  %3520 = vmatpush1.bf16.msra.mxu1 %v5368_v14  ;;  %v1583_v14 = vld [vmem:[#allocation8 + $0x370] sm:$0xff] }
 0x2e5   : > { %3246 = vmatprep.mubr.bf16.mxu1 %v7422_v16  ;;  %3472 = vmatprep.mubr.bf16.mxu0 %v7422_v16  ;;  %v5409_v45 = vcombine.high %v1579_v43, %v1583_v14  ;;  %v5408_v1 = vcombine.low %v1579_v43, %v1583_v14  ;;  %v1611_v43 = vld [vmem:[#allocation8 + $0x450] sm:$0xff] }
 0x2e6   : > { %3746 = vmatpush1.bf16.msra.mxu0 %v5370_v42  ;;  %3521 = vmatprep.subr.bf16.mxu1 %v5377_v20  ;;  %v1584_v42 = vld [vmem:[#allocation8 + $0x378] sm:$0xff]  ;;  %v5402_v20 = vcombine.low %v1572_v23, %v1576_v36  ;;  %v1615_v14 = vld [vmem:[#allocation8 + $0x470] sm:$0xff] }
 0x2e7   : > { %3747 = vmatprep.subr.bf16.mxu0 %v5379_v46  ;;  %v1591_v46 = vld [vmem:[#allocation8 + $0x3b0] sm:$0xff]  ;;  %v1604_v36 = vld [vmem:[#allocation8 + $0x418] sm:$0xff] }
 0x2e8   : > { %3522 = vmatpush1.bf16.msra.mxu1 %v5376_v24  ;;  %v5411_v24 = vcombine.high %v1580_v55, %v1584_v42  ;;  %v5416_v33 = vcombine.low %v1587_v10, %v1591_v46 }
 0x2e9   : > { %3523 = vmatprep.subr.bf16.mxu1 %v5385_v58  ;;  %v1592_v58 = vld [vmem:[#allocation8 + $0x3b8] sm:$0xff] }
 0x2ea   : > { %3748 = vmatpush1.bf16.msra.mxu0 %v5378_v47  ;;  %v5417_v47 = vcombine.high %v1587_v10, %v1591_v46  ;;  %v5419_v39 = vcombine.high %v1588_v15, %v1592_v58  ;;  %v1619_v46 = vld [vmem:[#allocation8 + $0x490] sm:$0xff] }
 0x2eb   : > { %3247 = vmatmul.mubr.bf16.gmra.mrb[52].mxu1 %v7410_v30  ;;  %3749 = vmatprep.subr.bf16.mxu0 %v5387_v48  ;;  %v5410_v48 = vcombine.low %v1580_v55, %v1584_v42  ;;  %v1612_v42 = vld [vmem:[#allocation8 + $0x458] sm:$0xff] }
 0x2ec   : > { %3473 = vmatmul.mubr.bf16.gmra.mrb[84].mxu0 %v7410_v30  ;;  %3524 = vmatpush1.bf16.msra.mxu1 %v5384_v9  ;;  %v1599_v9 = vld [vmem:[#allocation8 + $0x3f0] sm:$0xff] }
 0x2ed   : > { %3256 = vmatprep.mubr.bf16.mxu1 %v7467_v52  ;;  %3482 = vmatprep.mubr.bf16.mxu0 %v7467_v52  ;;  %v5425_v18 = vcombine.high %v1595_v27, %v1599_v9  ;;  %v5424_v23 = vcombine.low %v1595_v27, %v1599_v9  ;;  %v1631_v27 = vld [vmem:[#allocation8 + $0x4f0] sm:$0xff] }
 0x2ee   : > { %3750 = vmatpush1.bf16.msra.mxu0 %v5386_v49  ;;  %3525 = vmatprep.subr.bf16.mxu1 %v5393_v60  ;;  %v1600_v49 = vld [vmem:[#allocation8 + $0x3f8] sm:$0xff]  ;;  %v5418_v60 = vcombine.low %v1588_v15, %v1592_v58 }
 0x2ef   : > { %3751 = vmatprep.subr.bf16.mxu0 %v5395_v28  ;;  %v1607_v28 = vld [vmem:[#allocation8 + $0x430] sm:$0xff]  ;;  %v1620_v15 = vld [vmem:[#allocation8 + $0x498] sm:$0xff] }
 0x2f0   : > { %3526 = vmatpush1.bf16.msra.mxu1 %v5392_v17  ;;  %v5427_v17 = vcombine.high %v1596_v3, %v1600_v49  ;;  %v5432_v55 = vcombine.low %v1603_v62, %v1607_v28  ;;  %v1624_v58 = vld [vmem:[#allocation8 + $0x4b8] sm:$0xff] }
 0x2f1   : > { %3527 = vmatprep.subr.bf16.mxu1 %v5401_v38  ;;  %v1608_v38 = vld [vmem:[#allocation8 + $0x438] sm:$0xff]  ;;  %v5451_v9 = vcombine.high %v1620_v15, %v1624_v58 }
 0x2f2   : > { %3752 = vmatpush1.bf16.msra.mxu0 %v5394_v12  ;;  %v5433_v12 = vcombine.high %v1603_v62, %v1607_v28  ;;  %v5434_v10 = vcombine.low %v1604_v36, %v1608_v38  ;;  %v1635_v62 = vld [vmem:[#allocation8 + $0x510] sm:$0xff] }
 0x2f3   : > { %3257 = vmatmul.mubr.bf16.gmra.mrb[56].mxu1 %v7459_v7  ;;  %3753 = vmatprep.subr.bf16.mxu0 %v5403_v4  ;;  %v5426_v4 = vcombine.low %v1596_v3, %v1600_v49  ;;  %v1628_v3 = vld [vmem:[#allocation8 + $0x4d8] sm:$0xff] }
 0x2f4   : > { %3483 = vmatmul.mubr.bf16.gmra.mrb[88].mxu0 %v7459_v7  ;;  %3528 = vmatpush1.bf16.msra.mxu1 %v5400_v32  ;;  %v5435_v32 = vcombine.high %v1604_v36, %v1608_v38  ;;  %v1632_v49 = vld [vmem:[#allocation8 + $0x4f8] sm:$0xff] }
 0x2f5   : > { %3266 = vmatprep.mubr.bf16.mxu1 %v7495_v57  ;;  %3492 = vmatprep.mubr.bf16.mxu0 %v7495_v57  ;;  %v5458_v38 = vcombine.low %v1628_v3, %v1632_v49 }
 0x2f6   : > { %3754 = vmatpush1.bf16.msra.mxu0 %v5402_v20  ;;  %3529 = vmatprep.subr.bf16.mxu1 %v5409_v45  ;;  %v1616_v20 = vld [vmem:[#allocation8 + $0x478] sm:$0xff]  ;;  %v5441_v45 = vcombine.high %v1611_v43, %v1615_v14 }
 0x2f7   : > { %3755 = vmatprep.subr.bf16.mxu0 %v5411_v24  ;;  %v1623_v24 = vld [vmem:[#allocation8 + $0x4b0] sm:$0xff] }
 0x2f8   : > { %3530 = vmatpush1.bf16.msra.mxu1 %v5408_v1  ;;  %v5440_v1 = vcombine.low %v1611_v43, %v1615_v14 }
 0x2f9   : > { %3531 = vmatprep.subr.bf16.mxu1 %v5417_v47  ;;  %v5449_v47 = vcombine.high %v1619_v46, %v1623_v24 }
 0x2fa   : > { %3756 = vmatpush1.bf16.msra.mxu0 %v5410_v48  ;;  %v5442_v48 = vcombine.low %v1612_v42, %v1616_v20 }
 0x2fb   : > { %3267 = vmatmul.mubr.bf16.gmra.mrb[60].mxu1 %v7491_v34  ;;  %3757 = vmatprep.subr.bf16.mxu0 %v5419_v39  ;;  %v1627_v39 = vld [vmem:[#allocation8 + $0x4d0] sm:$0xff] }
 0x2fc   : > { %3493 = vmatmul.mubr.bf16.gmra.mrb[92].mxu0 %v7491_v34  ;;  %3532 = vmatpush1.bf16.msra.mxu1 %v5416_v33  ;;  %v5448_v33 = vcombine.low %v1619_v46, %v1623_v24  ;;  %v5456_v28 = vcombine.low %v1627_v39, %v1631_v27  ;;  %v1652_v46 = vld [vmem:[#allocation8 + $0x598] sm:$0xff] }
 0x2fd   : > { %3535 = vmatprep.mubr.bf16.mxu1 %v7105_v25  ;;  %3761 = vmatprep.mubr.bf16.mxu0 %v7105_v25  ;;  %v5443_v25 = vcombine.high %v1612_v42, %v1616_v20  ;;  %v1656_v24 = vld [vmem:[#allocation8 + $0x5b8] sm:$0xff] }
 0x2fe   : > { %3758 = vmatpush1.bf16.msra.mxu0 %v5418_v60  ;;  %3533 = vmatprep.subr.bf16.mxu1 %v5425_v18  ;;  %v5457_v60 = vcombine.high %v1627_v39, %v1631_v27  ;;  %v5450_v18 = vcombine.low %v1620_v15, %v1624_v58  ;;  %v1659_v15 = vld [vmem:[#allocation8 + $0x5d0] sm:$0xff]  ;;  %v1660_v39 = vld [vmem:[#allocation8 + $0x5d8] sm:$0xff] }
 0x2ff   : > { %3759 = vmatprep.subr.bf16.mxu0 %v5427_v17  ;;  %v1636_v17 = vld [vmem:[#allocation8 + $0x518] sm:$0xff]  ;;  %v1663_v58 = vld [vmem:[#allocation8 + $0x5f0] sm:$0xff] }
 0x300   : > { %3534 = vmatpush1.bf16.msra.mxu1 %v5424_v23  ;;  %v1640_v23 = vld [vmem:[#allocation8 + $0x538] sm:$0xff] }
 0x301   : > { %3616 = vmatprep.subr.bf16.mxu1 %v5433_v12  ;;  %v1643_v12 = vld [vmem:[#allocation8 + $0x550] sm:$0xff]  ;;  %v5467_v43 = vcombine.high %v1636_v17, %v1640_v23  ;;  %v5466_v20 = vcombine.low %v1636_v17, %v1640_v23  ;;  %v1664_v27 = vld [vmem:[#allocation8 + $0x5f8] sm:$0xff] }
 0x302   : > { %3760 = vmatpush1.bf16.msra.mxu0 %v5426_v4  ;;  %v1647_v4 = vld [vmem:[#allocation8 + $0x570] sm:$0xff] }
 0x303   : > { %3536 = vmatmul.mubr.bf16.vlgmr.msra.gmra.mrb[64].mxu1 %v7097_v21  ;;  %3842 = vmatprep.subr.bf16.mxu0 %v5435_v32  ;;  %v1644_v32 = vld [vmem:[#allocation8 + $0x558] sm:$0xff]  ;;  %v5473_v42 = vcombine.high %v1643_v12, %v1647_v4 }
 0x304   : > { %3617 = vmatpush1.bf16.msra.mxu1 %v5432_v55  ;;  %3545 = vmatprep.mubr.bf16.mxu1 %v7165_v54  ;;  %v1648_v55 = vld [vmem:[#allocation8 + $0x578] sm:$0xff] }
 0x305   : > { %3762 = vmatmul.mubr.bf16.vlgmr.msra.gmra.mrb[96].mxu0 %v7097_v21  ;;  %3618 = vmatprep.subr.bf16.mxu1 %v5441_v45  ;;  %v1639_v21 = vld [vmem:[#allocation8 + $0x530] sm:$0xff] }
 0x306   : > { %3771 = vmatprep.mubr.bf16.mxu0 %v7165_v54  ;;  %3843 = vmatpush1.bf16.msra.mxu0 %v5434_v10  ;;  %v5459_v54 = vcombine.high %v1628_v3, %v1632_v49  ;;  %v5465_v36 = vcombine.high %v1635_v62, %v1639_v21  ;;  %v5464_v14 = vcombine.low %v1635_v62, %v1639_v21  ;;  %v1651_v45 = vld [vmem:[#allocation8 + $0x590] sm:$0xff] }
 0x307   : > { %3844 = vmatprep.subr.bf16.mxu0 %v5443_v25  ;;  %v5472_v10 = vcombine.low %v1643_v12, %v1647_v4  ;;  %v1667_v3 = vld [vmem:[#allocation8 + $0x610] sm:$0xff]  ;;  %v5488_v49 = vcombine.low %v1659_v15, %v1663_v58  ;;  %v5490_v21 = vcombine.low %v1660_v39, %v1664_v27 }
 0x308   : > { %3619 = vmatpush1.bf16.msra.mxu1 %v5440_v1  ;;  %v5474_v1 = vcombine.low %v1644_v32, %v1648_v55 }
 0x309   : > { %3620 = vmatprep.subr.bf16.mxu1 %v5449_v47  ;;  %v5483_v47 = vcombine.high %v1652_v46, %v1656_v24 }
 0x30a   : > { %3845 = vmatpush1.bf16.msra.mxu0 %v5442_v48 }
 0x30b   : > { %3546 = vmatmul.mubr.bf16.gmra.mrb[68].mxu1 %v7153_v40  ;;  %3846 = vmatprep.subr.bf16.mxu0 %v5451_v9  ;;  %v5489_v9 = vcombine.high %v1659_v15, %v1663_v58  ;;  %v1699_v15 = vld [vmem:[#allocation8 + $0x710] sm:$0xff] }
 0x30c   : > { %3621 = vmatpush1.bf16.msra.mxu1 %v5448_v33  ;;  %3555 = vmatprep.mubr.bf16.mxu1 %v7229_v56  ;;  %v5482_v33 = vcombine.low %v1652_v46, %v1656_v24  ;;  %v1692_v46 = vld [vmem:[#allocation8 + $0x6d8] sm:$0xff] }
 0x30d   : > { %3772 = vmatmul.mubr.bf16.gmra.mrb[100].mxu0 %v7153_v40  ;;  %3622 = vmatprep.subr.bf16.mxu1 %v5457_v60  ;;  %v1655_v40 = vld [vmem:[#allocation8 + $0x5b0] sm:$0xff]  ;;  %v1668_v60 = vld [vmem:[#allocation8 + $0x618] sm:$0xff] }
 0x30e   : > { %3781 = vmatprep.mubr.bf16.mxu0 %v7229_v56  ;;  %3847 = vmatpush1.bf16.msra.mxu0 %v5450_v18  ;;  %v5475_v56 = vcombine.high %v1644_v32, %v1648_v55  ;;  %v5481_v25 = vcombine.high %v1651_v45, %v1655_v40  ;;  %v5480_v48 = vcombine.low %v1651_v45, %v1655_v40  ;;  %v1672_v18 = vld [vmem:[#allocation8 + $0x638] sm:$0xff]  ;;  %v1691_v45 = vld [vmem:[#allocation8 + $0x6d0] sm:$0xff] }
 0x30f   : > { %3848 = vmatprep.subr.bf16.mxu0 %v5459_v54  ;;  %v1675_v54 = vld [vmem:[#allocation8 + $0x650] sm:$0xff]  ;;  %v5499_v17 = vcombine.high %v1668_v60, %v1672_v18  ;;  %v5498_v4 = vcombine.low %v1668_v60, %v1672_v18  ;;  %v1684_v32 = vld [vmem:[#allocation8 + $0x698] sm:$0xff] }
 0x310   : > { %3623 = vmatpush1.bf16.msra.mxu1 %v5456_v28  ;;  %v1679_v28 = vld [vmem:[#allocation8 + $0x670] sm:$0xff]  ;;  %v1688_v55 = vld [vmem:[#allocation8 + $0x6b8] sm:$0xff] }
 0x311   : > { %3624 = vmatprep.subr.bf16.mxu1 %v5465_v36  ;;  %v1676_v36 = vld [vmem:[#allocation8 + $0x658] sm:$0xff]  ;;  %v5505_v12 = vcombine.high %v1675_v54, %v1679_v28  ;;  %v1695_v40 = vld [vmem:[#allocation8 + $0x6f0] sm:$0xff] }
 0x312   : > { %3849 = vmatpush1.bf16.msra.mxu0 %v5458_v38  ;;  %v1680_v38 = vld [vmem:[#allocation8 + $0x678] sm:$0xff]  ;;  %v5520_v58 = vcombine.low %v1691_v45, %v1695_v40 }
 0x313   : > { %3556 = vmatmul.mubr.bf16.gmra.mrb[72].mxu1 %v7221_v8  ;;  %3850 = vmatprep.subr.bf16.mxu0 %v5467_v43  ;;  %v1683_v43 = vld [vmem:[#allocation8 + $0x690] sm:$0xff]  ;;  %v1696_v24 = vld [vmem:[#allocation8 + $0x6f8] sm:$0xff] }
 0x314   : > { %3625 = vmatpush1.bf16.msra.mxu1 %v5464_v14  ;;  %3565 = vmatprep.mubr.bf16.mxu1 %v7297_v61  ;;  %v5504_v14 = vcombine.low %v1675_v54, %v1679_v28  ;;  %v1716_v54 = vld [vmem:[#allocation8 + $0x798] sm:$0xff] }
 0x315   : > { %3782 = vmatmul.mubr.bf16.gmra.mrb[104].mxu0 %v7221_v8  ;;  %3626 = vmatprep.subr.bf16.mxu1 %v5473_v42  ;;  %v1671_v8 = vld [vmem:[#allocation8 + $0x630] sm:$0xff]  ;;  %v1720_v28 = vld [vmem:[#allocation8 + $0x7b8] sm:$0xff] }
 0x316   : > { %3791 = vmatprep.mubr.bf16.mxu0 %v7297_v61  ;;  %3851 = vmatpush1.bf16.msra.mxu0 %v5466_v20  ;;  %v5491_v61 = vcombine.high %v1660_v39, %v1664_v27  ;;  %v5497_v62 = vcombine.high %v1667_v3, %v1671_v8  ;;  %v5496_v23 = vcombine.low %v1667_v3, %v1671_v8 }
 0x317   : > { %3852 = vmatprep.subr.bf16.mxu0 %v5475_v56  ;;  %v5506_v20 = vcombine.low %v1676_v36, %v1680_v38  ;;  %v5515_v56 = vcombine.high %v1684_v32, %v1688_v55  ;;  %v5522_v27 = vcombine.low %v1692_v46, %v1696_v24 }
 0x318   : > { %3627 = vmatpush1.bf16.msra.mxu1 %v5472_v10 }
 0x319   : > { %3628 = vmatprep.subr.bf16.mxu1 %v5481_v25  ;;  %v5521_v25 = vcombine.high %v1691_v45, %v1695_v40  ;;  %v6386_v45 = vld [vmem:[#allocation10 + $0x48] sm:$0xff]   ;;  %v6385_v40 = vld [vmem:[#allocation10 + $0x80] sm:$0xff]  }
 0x31a   : > { %3853 = vmatpush1.bf16.msra.mxu0 %v5474_v1  ;;  %v5514_v1 = vcombine.low %v1684_v32, %v1688_v55  ;;  %v6382_v32 = vld [vmem:[#allocation10 + $0x40] sm:$0xff]  }
 0x31b   : > { %3566 = vmatmul.mubr.bf16.gmra.mrb[76].mxu1 %v7285_v6  ;;  %3854 = vmatprep.subr.bf16.mxu0 %v5483_v47  ;;  %v1700_v47 = vld [vmem:[#allocation8 + $0x718] sm:$0xff] }
 0x31c   : > { %3629 = vmatpush1.bf16.msra.mxu1 %v5480_v48  ;;  %3575 = vmatprep.mubr.bf16.mxu1 %v7361_v5  ;;  %v1704_v48 = vld [vmem:[#allocation8 + $0x738] sm:$0xff] }
 0x31d   : > { %3792 = vmatmul.mubr.bf16.gmra.mrb[108].mxu0 %v7285_v6  ;;  %3630 = vmatprep.subr.bf16.mxu1 %v5489_v9  ;;  %v1687_v6 = vld [vmem:[#allocation8 + $0x6b0] sm:$0xff]  ;;  %v5531_v3 = vcombine.high %v1700_v47, %v1704_v48  ;;  %v5530_v18 = vcombine.low %v1700_v47, %v1704_v48  ;;  %v6402_v47 = vld [vmem:[#allocation10 + $0x68] sm:$0xff]   ;;  %v6401_v48 = vld [vmem:[#allocation10 + $0xa0] sm:$0xff]  }
 0x31e   : > { %3801 = vmatprep.mubr.bf16.mxu0 %v7361_v5  ;;  %3855 = vmatpush1.bf16.msra.mxu0 %v5482_v33  ;;  %v5507_v5 = vcombine.high %v1676_v36, %v1680_v38  ;;  %v5513_v42 = vcombine.high %v1683_v43, %v1687_v6  ;;  %v5512_v10 = vcombine.low %v1683_v43, %v1687_v6  ;;  %v1707_v9 = vld [vmem:[#allocation8 + $0x750] sm:$0xff]  ;;  %v1724_v43 = vld [vmem:[#allocation8 + $0x7d8] sm:$0xff] }
 0x31f   : > { %3856 = vmatprep.subr.bf16.mxu0 %v5491_v61  ;;  %v1711_v33 = vld [vmem:[#allocation8 + $0x770] sm:$0xff]  ;;  %v1708_v61 = vld [vmem:[#allocation8 + $0x758] sm:$0xff] }
 0x320   : > { %3631 = vmatpush1.bf16.msra.mxu1 %v5488_v49  ;;  %v1712_v49 = vld [vmem:[#allocation8 + $0x778] sm:$0xff]  ;;  %v5537_v60 = vcombine.high %v1707_v9, %v1711_v33  ;;  %v1723_v36 = vld [vmem:[#allocation8 + $0x7d0] sm:$0xff] }
 0x321   : > { %3632 = vmatprep.subr.bf16.mxu1 %v5497_v62  ;;  %v1715_v62 = vld [vmem:[#allocation8 + $0x790] sm:$0xff]  ;;  %v1728_v6 = vld [vmem:[#allocation8 + $0x7f8] sm:$0xff] }
 0x322   : > { %3857 = vmatpush1.bf16.msra.mxu0 %v5490_v21  ;;  %v5536_v21 = vcombine.low %v1707_v9, %v1711_v33  ;;  %v1727_v38 = vld [vmem:[#allocation8 + $0x7f0] sm:$0xff]  ;;  %v5554_v55 = vcombine.low %v1724_v43, %v1728_v6 }
 0x323   : > { %3576 = vmatmul.mubr.bf16.gmra.mrb[80].mxu1 %v7353_v19  ;;  %3858 = vmatprep.subr.bf16.mxu0 %v5499_v17  ;;  %v6407_v9 = vld [vmem:[#allocation10 + $0xf0] sm:$0xff]  }
 0x324   : > { %3633 = vmatpush1.bf16.msra.mxu1 %v5496_v23  ;;  %3585 = vmatprep.mubr.bf16.mxu1 %v7420_v29  ;;  %v5538_v23 = vcombine.low %v1708_v61, %v1712_v49  ;;  %v6408_v33 = vld [vmem:[#allocation10 + $0x30] sm:$0xff]  }
 0x325   : > { %3802 = vmatmul.mubr.bf16.gmra.mrb[112].mxu0 %v7353_v19  ;;  %3634 = vmatprep.subr.bf16.mxu1 %v5505_v12  ;;  %v1703_v19 = vld [vmem:[#allocation8 + $0x730] sm:$0xff]  ;;  %v5547_v12 = vcombine.high %v1716_v54, %v1720_v28 }
 0x326   : > { %3811 = vmatprep.mubr.bf16.mxu0 %v7420_v29  ;;  %3859 = vmatpush1.bf16.msra.mxu0 %v5498_v4  ;;  %v5523_v29 = vcombine.high %v1692_v46, %v1696_v24  ;;  %v5529_v39 = vcombine.high %v1699_v15, %v1703_v19  ;;  %v5528_v8 = vcombine.low %v1699_v15, %v1703_v19  ;;  %v6391_v46 = vld [vmem:[#allocation10 + $0xd0] sm:$0xff]   ;;  %v6395_v15 = vld [vmem:[#allocation10 + $0xd8] sm:$0xff]  }
 0x327   : > { %3860 = vmatprep.subr.bf16.mxu0 %v5507_v5  ;;  %v5553_v5 = vcombine.high %v1723_v36, %v1727_v38  ;;  %v6392_v24 = vld [vmem:[#allocation10 + $0x10] sm:$0xff]   ;;  %v6397_v19 = vld [vmem:[#allocation10 + $0x98] sm:$0xff]  }
 0x328   : > { %3635 = vmatpush1.bf16.msra.mxu1 %v5504_v14  ;;  %v5546_v14 = vcombine.low %v1716_v54, %v1720_v28 }
 0x329   : > { %3636 = vmatprep.subr.bf16.mxu1 %v5513_v42  ;;  %v6383_v42 = vld [vmem:[#allocation10 + $0xc0] sm:$0xff]  }
 0x32a   : > { %3861 = vmatpush1.bf16.msra.mxu0 %v5506_v20  ;;  %v6384_v20 = vld [vmem:[#allocation10] sm:$0xff]  }
 0x32b   : > { %3586 = vmatmul.mubr.bf16.gmra.mrb[84].mxu1 %v7408_v2  ;;  %3862 = vmatprep.subr.bf16.mxu0 %v5515_v56  ;;  %v6387_v56 = vld [vmem:[#allocation10 + $0xc8] sm:$0xff]  }
 0x32c   : > { %3637 = vmatpush1.bf16.msra.mxu1 %v5512_v10  ;;  %3595 = vmatprep.mubr.bf16.mxu1 %v7465_v31  ;;  %v6389_v10 = vld [vmem:[#allocation10 + $0x88] sm:$0xff]  }
 0x32d   : > { %3812 = vmatmul.mubr.bf16.gmra.mrb[116].mxu0 %v7408_v2  ;;  %3638 = vmatprep.subr.bf16.mxu1 %v5521_v25  ;;  %v1719_v2 = vld [vmem:[#allocation8 + $0x7b0] sm:$0xff]  ;;  %v6394_v25 = vld [vmem:[#allocation10 + $0x58] sm:$0xff]  }
 0x32e   : > { %3821 = vmatprep.mubr.bf16.mxu0 %v7465_v31  ;;  %3863 = vmatpush1.bf16.msra.mxu0 %v5514_v1  ;;  %v5539_v31 = vcombine.high %v1708_v61, %v1712_v49  ;;  %v5545_v17 = vcombine.high %v1715_v62, %v1719_v2  ;;  %v5544_v4 = vcombine.low %v1715_v62, %v1719_v2  ;;  %v6393_v1 = vld [vmem:[#allocation10 + $0x90] sm:$0xff]   ;;  %v6411_v61 = vld [vmem:[#allocation10 + $0xf8] sm:$0xff]  }
 0x32f   : > { %3864 = vmatprep.subr.bf16.mxu0 %v5523_v29  ;;  %v6399_v29 = vld [vmem:[#allocation10 + $0xe0] sm:$0xff]   ;;  %v6413_v49 = vld [vmem:[#allocation10 + $0xb8] sm:$0xff]  }
 0x330   : > { %3639 = vmatpush1.bf16.msra.mxu1 %v5520_v58  ;;  %v6400_v58 = vld [vmem:[#allocation10 + $0x20] sm:$0xff]  }
 0x331   : > { %3640 = vmatprep.subr.bf16.mxu1 %v5529_v39  ;;  %v6403_v39 = vld [vmem:[#allocation10 + $0xe8] sm:$0xff]  }
 0x332   : > { %3865 = vmatpush1.bf16.msra.mxu0 %v5522_v27  ;;  %v6405_v27 = vld [vmem:[#allocation10 + $0xa8] sm:$0xff]  }
 0x333   : > { %3596 = vmatmul.mubr.bf16.gmra.mrb[88].mxu1 %v7457_v50  ;;  %3866 = vmatprep.subr.bf16.mxu0 %v5531_v3  ;;  %v6410_v3 = vld [vmem:[#allocation10 + $0x78] sm:$0xff]  }
 0x334   : > { %3641 = vmatpush1.bf16.msra.mxu1 %v5528_v8  ;;  %3605 = vmatprep.mubr.bf16.mxu1 %v7493_v44  ;;  %v6409_v8 = vld [vmem:[#allocation10 + $0xb0] sm:$0xff]  }
 0x335   : > { %3822 = vmatmul.mubr.bf16.gmra.mrb[120].mxu0 %v7457_v50  ;;  %3642 = vmatprep.subr.bf16.mxu1 %v5537_v60  ;;  %v5555_v50 = vcombine.high %v1724_v43, %v1728_v6  ;;  %v7585_v60 = vld [vmem:[#allocation10 + $0x1c0] sm:$0xff]  }
 0x336   : > { %3831 = vmatprep.mubr.bf16.mxu0 %v7493_v44  ;;  %3867 = vmatpush1.bf16.msra.mxu0 %v5530_v18  ;;  %v5552_v44 = vcombine.low %v1723_v36, %v1727_v38 }
 0x337   : > { %3868 = vmatprep.subr.bf16.mxu0 %v5539_v31 }
 0x338   : > { %3643 = vmatpush1.bf16.msra.mxu1 %v5536_v21 }
 0x339   : > { %3644 = vmatprep.subr.bf16.mxu1 %v5545_v17 }
 0x33a   : > { %3869 = vmatpush1.bf16.msra.mxu0 %v5538_v23 }
 0x33b   : > { %3606 = vmatmul.mubr.bf16.gmra.mrb[92].mxu1 %v7489_v37  ;;  %3870 = vmatprep.subr.bf16.mxu0 %v5547_v12 }
 0x33c   : > { %3645 = vmatpush1.bf16.msra.mxu1 %v5544_v4  ;;  %3648 = vmatprep.mubr.bf16.mxu1 %v7107_v0 }
 0x33d   : > { %3832 = vmatmul.mubr.bf16.gmra.mrb[124].mxu0 %v7489_v37  ;;  %3646 = vmatprep.subr.bf16.mxu1 %v5553_v5  ;;  %v6388_v37 = vld [vmem:[#allocation10 + $0x8] sm:$0xff]  }
 0x33e   : > { %3871 = vmatpush1.bf16.msra.mxu0 %v5546_v14  ;;  %3874 = vmatprep.mubr.bf16.mxu0 %v7107_v0  ;;  %v6390_v0 = vld [vmem:[#allocation10 + $0x50] sm:$0xff]  }
 0x33f   : > { %3872 = vmatprep.subr.bf16.mxu0 %v5555_v50 }
 0x340   : > { %3647 = vmatpush1.bf16.msra.mxu1 %v5552_v44 }
 0x341   : > { %5628 = vmatprep.subr.bf16.mxu1 %v6382_v32 }
 0x342   : > { %3873 = vmatpush1.bf16.msra.mxu0 %v5554_v55 }
 0x343   : > { %3649 = vmatmul.mubr.bf16.vlgmr.msra.gmra.mrb[64].mxu1 %v7099_v22  ;;  %5692 = vmatprep.subr.bf16.mxu0 %v6383_v42 }
 0x344   : > { %3658 = vmatprep.mubr.bf16.mxu1 %v7167_v59  ;;  %5629 = vmatpush3.bf16.msra.mxu1 %v6384_v20 }
 0x345   : > { %3875 = vmatmul.mubr.bf16.vlgmr.msra.gmra.mrb[96].mxu0 %v7099_v22  ;;  %5630 = vmatprep.subr.bf16.mxu1 %v6386_v45  ;;  %v6396_v22 = vld [vmem:[#allocation10 + $0x18] sm:$0xff]  }
 0x346   : > { %3884 = vmatprep.mubr.bf16.mxu0 %v7167_v59  ;;  %5693 = vmatpush3.bf16.msra.mxu0 %v6385_v40  ;;  %v6398_v59 = vld [vmem:[#allocation10 + $0x60] sm:$0xff]  }
 0x347   : > { %5694 = vmatprep.subr.bf16.mxu0 %v6387_v56 }
 0x348   : > { %5631 = vmatpush3.bf16.msra.mxu1 %v6388_v37 }
 0x349   : > { %5632 = vmatprep.subr.bf16.mxu1 %v6390_v0  ;;  %v6415_v0 = vld [vmem:[#allocation10 + $0x100] sm:$0xff]  }
 0x34a   : > { %5695 = vmatpush3.bf16.msra.mxu0 %v6389_v10 }
 0x34b   : > { %3659 = vmatmul.mubr.bf16.gmra.mrb[68].mxu1 %v7155_v53  ;;  %5696 = vmatprep.subr.bf16.mxu0 %v6391_v46 }
 0x34c   : > { %3668 = vmatprep.mubr.bf16.mxu1 %v7231_v13  ;;  %5633 = vmatpush3.bf16.msra.mxu1 %v6392_v24 }
 0x34d   : > { %3885 = vmatmul.mubr.bf16.gmra.mrb[100].mxu0 %v7155_v53  ;;  %5634 = vmatprep.subr.bf16.mxu1 %v6394_v25  ;;  %v6404_v53 = vld [vmem:[#allocation10 + $0x28] sm:$0xff]  }
 0x34e   : > { %3894 = vmatprep.mubr.bf16.mxu0 %v7231_v13  ;;  %5697 = vmatpush3.bf16.msra.mxu0 %v6393_v1  ;;  %v6406_v13 = vld [vmem:[#allocation10 + $0x70] sm:$0xff]   ;;  %v6416_v1 = vld [vmem:[#allocation10 + $0x148] sm:$0xff]  }
 0x34f   : > { %5698 = vmatprep.subr.bf16.mxu0 %v6395_v15  ;;  %v7634_v15 = vld [vmem:[#allocation10 + $0x180] sm:$0xff]  }
 0x350   : > { %5635 = vmatpush3.bf16.msra.mxu1 %v6396_v22 }
 0x351   : > { %5636 = vmatprep.subr.bf16.mxu1 %v6398_v59 }
 0x352   : > { %5699 = vmatpush3.bf16.msra.mxu0 %v6397_v19 }
 0x353   : > { %3669 = vmatmul.mubr.bf16.gmra.mrb[72].mxu1 %v7223_v11  ;;  %5700 = vmatprep.subr.bf16.mxu0 %v6399_v29 }
 0x354   : > { %3678 = vmatprep.mubr.bf16.mxu1 %v7299_v41  ;;  %5637 = vmatpush3.bf16.msra.mxu1 %v6400_v58  ;;  %v7638_v58 = vld [vmem:[#allocation10 + $0x1c8] sm:$0xff]  }
 0x355   : > { %3895 = vmatmul.mubr.bf16.gmra.mrb[104].mxu0 %v7223_v11  ;;  %5638 = vmatprep.subr.bf16.mxu1 %v6402_v47  ;;  %v6412_v11 = vld [vmem:[#allocation10 + $0x38] sm:$0xff]  }
 0x356   : > { %3904 = vmatprep.mubr.bf16.mxu0 %v7299_v41  ;;  %5701 = vmatpush3.bf16.msra.mxu0 %v6401_v48  ;;  %v6414_v41 = vld [vmem:[#allocation10 + $0x140] sm:$0xff]  }
 0x357   : > { %5702 = vmatprep.subr.bf16.mxu0 %v6403_v39 }
 0x358   : > { %5639 = vmatpush3.bf16.msra.mxu1 %v6404_v53 }
 0x359   : > { %5640 = vmatprep.subr.bf16.mxu1 %v6406_v13 }
 0x35a   : > { %5703 = vmatpush3.bf16.msra.mxu0 %v6405_v27 }
 0x35b   : > { %3679 = vmatmul.mubr.bf16.gmra.mrb[76].mxu1 %v7287_v51  ;;  %5704 = vmatprep.subr.bf16.mxu0 %v6407_v9 }
 0x35c   : > { %3688 = vmatprep.mubr.bf16.mxu1 %v7363_v26  ;;  %5641 = vmatpush3.bf16.msra.mxu1 %v6408_v33  ;;  %v6417_v33 = vld [vmem:[#allocation10 + $0x108] sm:$0xff]  }
 0x35d   : > { %3905 = vmatmul.mubr.bf16.gmra.mrb[108].mxu0 %v7287_v51  ;;  %5642 = vmatprep.subr.bf16.mxu1 %v6410_v3  ;;  %v7605_v51 = vld [vmem:[%s7975_s6] sm:$0xff] }
 0x35e   : > { %3914 = vmatprep.mubr.bf16.mxu0 %v7363_v26  ;;  %5705 = vmatpush3.bf16.msra.mxu0 %v6409_v8  ;;  %v8009_v26 = vld [vmem:[#allocation18_spill] sm:$0xff] }
 0x35f   : > { %5706 = vmatprep.subr.bf16.mxu0 %v6411_v61 }
 0x360   : > { %5643 = vmatpush3.bf16.msra.mxu1 %v6412_v11  ;;  %v6418_v11 = vld [vmem:[#allocation10 + $0x150] sm:$0xff]  }
 0x361   : > { %5756 = vmatprep.subr.bf16.mxu1 %v6414_v41  ;;  %v7646_v41 = vld [vmem:[#allocation10 + $0x188] sm:$0xff]  }
 0x362   : > { %5707 = vmatpush3.bf16.msra.mxu0 %v6413_v49 }
 0x363   : > { %3689 = vmatmul.mubr.bf16.gmra.mrb[80].mxu1 %v7355_v63  ;;  %5820 = vmatprep.subr.bf16.mxu0 %v7585_v60 }
 0x364   : > { %3698 = vmatprep.mubr.bf16.mxu1 %v7422_v16 }
 0x365   : > { %3915 = vmatmul.mubr.bf16.gmra.mrb[112].mxu0 %v7355_v63  ;;  %v7609_v63 = vrot.slane %v7605_v51, %v6982_v35 }
 0x366   : > { %3924 = vmatprep.mubr.bf16.mxu0 %v7422_v16 }
 0x36b   : > { %3699 = vmatmul.mubr.bf16.gmra.mrb[84].mxu1 %v7410_v30 }
 0x36c   : > { %3708 = vmatprep.mubr.bf16.mxu1 %v7467_v52 }
 0x36d   : > { %3925 = vmatmul.mubr.bf16.gmra.mrb[116].mxu0 %v7410_v30  ;;  %v8010_v30 = vsub.s32 2, %v8009_v26 }
 0x36e   : > { %3934 = vmatprep.mubr.bf16.mxu0 %v7467_v52 }
 0x36f   : > { %v7614_v16 = vrot.slane %v7605_v51, %v8010_v30 }
 0x373   : > { %3709 = vmatmul.mubr.bf16.gmra.mrb[88].mxu1 %v7459_v7 }
 0x374   : > { %3718 = vmatprep.mubr.bf16.mxu1 %v7495_v57 }
 0x375   : > { %3935 = vmatmul.mubr.bf16.gmra.mrb[120].mxu0 %v7459_v7  ;;  %v8011_v7 = vld [vmem:[#allocation19_spill] sm:$0xff] }
 0x376   : > { %3944 = vmatprep.mubr.bf16.mxu0 %v7495_v57  ;;  %v7618_v52 = vrot.slane %v7605_v51, %v8011_v7 }
 0x37b   : > { %3719 = vmatmul.mubr.bf16.gmra.mrb[92].mxu1 %v7491_v34 }
 0x37d   : > { %3945 = vmatmul.mubr.bf16.gmra.mrb[124].mxu0 %v7491_v34  ;;  %v8012_v34 = vsub.s32 3, %v8009_v26 }
 0x37f   : > { %v7623_v57 = vrot.slane %v7605_v51, %v8012_v34 }
 0x396   : > { %v3198_v18 = vpop.f32.mrb[32].mxu1 }
 0x397   : > { %v5900_v62 = vadd.f32 %v3198_v18, %v7609_v63  ;;  %v3424_v2 = vpop.f32.mrb[64].mxu0  ;;  %v3200_v35 = vpop.f32.mrb[33].mxu1  ;;  %v7649_v18 = vld [vmem:[#allocation10 + $0x1d0] sm:$0xff]  }
 0x398   : > { %v5932_v31 = vadd.f32 %v3424_v2, %v7614_v16  ;;  %v5901_v21 = vadd.f32 %v3200_v35, %v7618_v52  ;;  %v3426_v54 = vpop.f32.mrb[65].mxu0  ;;  %v3202_v28 = vpop.f32.mrb[34].mxu1 }
 0x399   : > { %v5933_v17 = vadd.f32 %v3426_v54, %v7623_v57  ;;  %v5902_v23 = vadd.f32 %v3202_v28, %v7609_v63  ;;  %v3428_v36 = vpop.f32.mrb[66].mxu0  ;;  %v3204_v38 = vpop.f32.mrb[35].mxu1  ;;  %v3955_v6 = vmax.f32 %v5900_v62, 0.0  ;;  %v6419_v28 = vld [vmem:[#allocation10 + $0x110] sm:$0xff]  }
 0x39a   : > { %v5934_v12 = vadd.f32 %v3428_v36, %v7614_v16  ;;  %v5903_v4 = vadd.f32 %v3204_v38, %v7618_v52  ;;  %v3430_v43 = vpop.f32.mrb[67].mxu0  ;;  %v3957_v50 = vmax.f32 %v5932_v31, 0.0  ;;  %v3956_v44 = vmax.f32 %v5901_v21, 0.0 }
 0x39b   : > { %v3963_v5 = vmax.f32 %v5902_v23, 0.0  ;;  %v5935_v14 = vadd.f32 %v3430_v43, %v7623_v57  ;;  %v3958_v42 = vmax.f32 %v5933_v17, 0.0 }
 0x39c   : > { %v3965_v32 = vmax.f32 %v5934_v12, 0.0  ;;  %v3964_v55 = vmax.f32 %v5903_v4, 0.0  ;;  %v6420_v12 = vld [vmem:[#allocation10 + $0x158] sm:$0xff]   ;;  %v7653_v4 = vld [vmem:[#allocation10 + $0x190] sm:$0xff]  }
 0x39d   : > { %v4083_v20 = vpack.c.bf16 %v3963_v5, %v3955_v6  ;;  %v3966_v45 = vmax.f32 %v5935_v14, 0.0 }
 0x39e   : > { %v4085_v40 = vpack.c.bf16 %v3965_v32, %v3957_v50  ;;  %v4084_v56 = vpack.c.bf16 %v3964_v55, %v3956_v44  ;;  %v3208_v37 = vpop.f32.mrb[36].mxu1  ;;  %v7658_v50 = vld [vmem:[#allocation10 + $0x1d8] sm:$0xff]  }
 0x39f   : > { %v4086_v10 = vpack.c.bf16 %v3966_v45, %v3958_v42  ;;  %v5904_v46 = vadd.f32 %v3208_v37, %v7609_v63  ;;  %v3434_v24 = vpop.f32.mrb[68].mxu0  ;;  %v3210_v25 = vpop.f32.mrb[37].mxu1 }
 0x3a0   : > { %v5936_v22 = vadd.f32 %v3434_v24, %v7614_v16  ;;  %v5905_v59 = vadd.f32 %v3210_v25, %v7618_v52  ;;  %v3436_v19 = vpop.f32.mrb[69].mxu0  ;;  %v3212_v29 = vpop.f32.mrb[38].mxu1  ;;  %4698 = vmatprep.mubr.bf16.mxu1 %v4084_v56  ;;  %v6421_v56 = vld [vmem:[#allocation10 + $0x118] sm:$0xff]  }
 0x3a1   : > { %v5937_v47 = vadd.f32 %v3436_v19, %v7623_v57  ;;  %v5906_v48 = vadd.f32 %v3212_v29, %v7609_v63  ;;  %v3438_v39 = vpop.f32.mrb[70].mxu0  ;;  %4795 = vmatprep.mubr.bf16.mxu0 %v4086_v10  ;;  %v3214_v53 = vpop.f32.mrb[39].mxu1  ;;  %4699 = vmatmul.mubr.bf16.vlgmr.msra.gmra.mrb[96].mxu1 %v4083_v20  ;;  %v3971_v3 = vmax.f32 %v5904_v46, 0.0  ;;  %v6422_v46 = vld [vmem:[#allocation10 + $0x160] sm:$0xff]   ;;  %v7666_v24 = vld [vmem:[#allocation10 + $0x198] sm:$0xff]  }
 0x3a2   : > { %v5938_v13 = vadd.f32 %v3438_v39, %v7614_v16  ;;  %v5907_v27 = vadd.f32 %v3214_v53, %v7618_v52  ;;  %v3440_v9 = vpop.f32.mrb[71].mxu0  ;;  %4796 = vmatmul.mubr.bf16.vlgmr.msra.gmra.mrb[128].mxu0 %v4085_v40  ;;  %5757 = vmatpush3.bf16.msra.mxu1 %v6415_v0  ;;  %v3973_v49 = vmax.f32 %v5936_v22, 0.0  ;;  %v3972_v30 = vmax.f32 %v5905_v59, 0.0  ;;  %v7669_v19 = vld [vmem:[#allocation10 + $0x1e0] sm:$0xff]  }
 0x3a3   : > { %v3979_v8 = vmax.f32 %v5906_v48, 0.0  ;;  %v5939_v61 = vadd.f32 %v3440_v9, %v7623_v57  ;;  %5758 = vmatprep.subr.bf16.mxu1 %v6416_v1  ;;  %5821 = vmatpush3.bf16.msra.mxu0 %v7634_v15  ;;  %v3974_v62 = vmax.f32 %v5937_v47, 0.0 }
 0x3a4   : > { %v3981_v7 = vmax.f32 %v5938_v13, 0.0  ;;  %v3980_v34 = vmax.f32 %v5907_v27, 0.0  ;;  %5822 = vmatprep.subr.bf16.mxu0 %v7638_v58  ;;  %v6424_v27 = vld [vmem:[#allocation10 + $0x120] sm:$0xff]  }
 0x3a5   : > { %v4091_v2 = vpack.c.bf16 %v3979_v8, %v3971_v3  ;;  %v3982_v35 = vmax.f32 %v5939_v61, 0.0  ;;  %v6428_v61 = vld [vmem:[#allocation10 + $0x168] sm:$0xff]  }
 0x3a6   : > { %v4093_v31 = vpack.c.bf16 %v3981_v7, %v3973_v49  ;;  %v4092_v21 = vpack.c.bf16 %v3980_v34, %v3972_v30  ;;  %v3218_v54 = vpop.f32.mrb[40].mxu1  ;;  %5759 = vmatpush3.bf16.msra.mxu1 %v6417_v33 }
 0x3a7   : > { %v4094_v17 = vpack.c.bf16 %v3982_v35, %v3974_v62  ;;  %v5908_v23 = vadd.f32 %v3218_v54, %v7609_v63  ;;  %v3444_v36 = vpop.f32.mrb[72].mxu0  ;;  %v3220_v38 = vpop.f32.mrb[41].mxu1  ;;  %5760 = vmatprep.subr.bf16.mxu1 %v6418_v11  ;;  %5823 = vmatpush3.bf16.msra.mxu0 %v7646_v41  ;;  %v7673_v11 = vld [vmem:[#allocation10 + $0x1a0] sm:$0xff]   ;;  %v7678_v62 = vld [vmem:[#allocation10 + $0x1e8] sm:$0xff]  }
 0x3a8   : > { %v5940_v43 = vadd.f32 %v3444_v36, %v7614_v16  ;;  %v5909_v6 = vadd.f32 %v3220_v38, %v7618_v52  ;;  %v3446_v5 = vpop.f32.mrb[73].mxu0  ;;  %v3222_v14 = vpop.f32.mrb[42].mxu1  ;;  %4706 = vmatprep.mubr.bf16.mxu1 %v4092_v21  ;;  %5824 = vmatprep.subr.bf16.mxu0 %v7649_v18 }
 0x3a9   : > { %v5941_v44 = vadd.f32 %v3446_v5, %v7623_v57  ;;  %v5910_v32 = vadd.f32 %v3222_v14, %v7609_v63  ;;  %v3448_v55 = vpop.f32.mrb[74].mxu0  ;;  %4803 = vmatprep.mubr.bf16.mxu0 %v4094_v17  ;;  %v3224_v42 = vpop.f32.mrb[43].mxu1  ;;  %4707 = vmatmul.mubr.bf16.gmra.mrb[100].mxu1 %v4091_v2  ;;  %v3987_v37 = vmax.f32 %v5908_v23, 0.0  ;;  %v6429_v23 = vld [vmem:[#allocation10 + $0x128] sm:$0xff]  }
 0x3aa   : > { %v5942_v20 = vadd.f32 %v3448_v55, %v7614_v16  ;;  %v5911_v45 = vadd.f32 %v3224_v42, %v7618_v52  ;;  %v3450_v40 = vpop.f32.mrb[75].mxu0  ;;  %4804 = vmatmul.mubr.bf16.gmra.mrb[132].mxu0 %v4093_v31  ;;  %5761 = vmatpush3.bf16.msra.mxu1 %v6419_v28  ;;  %v3989_v25 = vmax.f32 %v5940_v43, 0.0  ;;  %v3988_v1 = vmax.f32 %v5909_v6, 0.0  ;;  %v6434_v43 = vld [vmem:[#allocation10 + $0x170] sm:$0xff]   ;;  %v7686_v6 = vld [vmem:[#allocation10 + $0x1a8] sm:$0xff]  }
 0x3ab   : > { %v3995_v0 = vmax.f32 %v5910_v32, 0.0  ;;  %v5943_v10 = vadd.f32 %v3450_v40, %v7623_v57  ;;  %5762 = vmatprep.subr.bf16.mxu1 %v6420_v12  ;;  %5825 = vmatpush3.bf16.msra.mxu0 %v7653_v4  ;;  %v3990_v29 = vmax.f32 %v5941_v44, 0.0  ;;  %v7689_v55 = vld [vmem:[#allocation10 + $0x1f0] sm:$0xff]  }
 0x3ac   : > { %v3997_v22 = vmax.f32 %v5942_v20, 0.0  ;;  %v3996_v59 = vmax.f32 %v5911_v45, 0.0  ;;  %5826 = vmatprep.subr.bf16.mxu0 %v7658_v50 }
 0x3ad   : > { %v4099_v47 = vpack.c.bf16 %v3995_v0, %v3987_v37  ;;  %v3998_v48 = vmax.f32 %v5943_v10, 0.0  ;;  %v6435_v0 = vld [vmem:[#allocation10 + $0x130] sm:$0xff]  }
 0x3ae   : > { %v4101_v39 = vpack.c.bf16 %v3997_v22, %v3989_v25  ;;  %v4100_v53 = vpack.c.bf16 %v3996_v59, %v3988_v1  ;;  %v3228_v13 = vpop.f32.mrb[44].mxu1  ;;  %5763 = vmatpush3.bf16.msra.mxu1 %v6421_v56  ;;  %v6440_v22 = vld [vmem:[#allocation10 + $0x178] sm:$0xff]   ;;  %v7693_v59 = vld [vmem:[#allocation10 + $0x1b0] sm:$0xff]  }
 0x3af   : > { %v4102_v9 = vpack.c.bf16 %v3998_v48, %v3990_v29  ;;  %v5912_v33 = vadd.f32 %v3228_v13, %v7609_v63  ;;  %v3454_v3 = vpop.f32.mrb[76].mxu0  ;;  %v3230_v8 = vpop.f32.mrb[45].mxu1  ;;  %5764 = vmatprep.subr.bf16.mxu1 %v6422_v46  ;;  %5827 = vmatpush3.bf16.msra.mxu0 %v7666_v24 }
 0x3b0   : > { %v5944_v49 = vadd.f32 %v3454_v3, %v7614_v16  ;;  %v5913_v30 = vadd.f32 %v3230_v8, %v7618_v52  ;;  %v3456_v7 = vpop.f32.mrb[77].mxu0  ;;  %v3232_v34 = vpop.f32.mrb[46].mxu1  ;;  %4714 = vmatprep.mubr.bf16.mxu1 %v4100_v53  ;;  %5828 = vmatprep.subr.bf16.mxu0 %v7669_v19  ;;  %v7698_v53 = vld [vmem:[#allocation10 + $0x1f8] sm:$0xff]  }
 0x3b1   : > { %v5945_v2 = vadd.f32 %v3456_v7, %v7623_v57  ;;  %v5914_v35 = vadd.f32 %v3232_v34, %v7609_v63  ;;  %v3458_v31 = vpop.f32.mrb[78].mxu0  ;;  %4811 = vmatprep.mubr.bf16.mxu0 %v4102_v9  ;;  %v3234_v21 = vpop.f32.mrb[47].mxu1  ;;  %4715 = vmatmul.mubr.bf16.gmra.mrb[104].mxu1 %v4099_v47  ;;  %v4003_v36 = vmax.f32 %v5912_v33, 0.0 }
 0x3b2   : > { %v5946_v54 = vadd.f32 %v3458_v31, %v7614_v16  ;;  %v5915_v28 = vadd.f32 %v3234_v21, %v7618_v52  ;;  %v3460_v17 = vpop.f32.mrb[79].mxu0  ;;  %4812 = vmatmul.mubr.bf16.gmra.mrb[136].mxu0 %v4101_v39  ;;  %5765 = vmatpush3.bf16.msra.mxu1 %v6424_v27  ;;  %v4005_v5 = vmax.f32 %v5944_v49, 0.0  ;;  %v4004_v14 = vmax.f32 %v5913_v30, 0.0  ;;  %v6441_v49 = vld [vmem:[#allocation10 + $0x138] sm:$0xff]  }
 0x3b3   : > { %v4011_v38 = vmax.f32 %v5914_v35, 0.0  ;;  %v5947_v12 = vadd.f32 %v3460_v17, %v7623_v57  ;;  %5766 = vmatprep.subr.bf16.mxu1 %v6428_v61  ;;  %5829 = vmatpush3.bf16.msra.mxu0 %v7673_v11  ;;  %v4006_v42 = vmax.f32 %v5945_v2, 0.0  ;;  %v7706_v2 = vld [vmem:[#allocation10 + $0x1b8] sm:$0xff]  }
 0x3b4   : > { %v4013_v44 = vmax.f32 %v5946_v54, 0.0  ;;  %v4012_v32 = vmax.f32 %v5915_v28, 0.0  ;;  %5830 = vmatprep.subr.bf16.mxu0 %v7678_v62 }
 0x3b5   : > { %v4107_v20 = vpack.c.bf16 %v4011_v38, %v4003_v36  ;;  %v4014_v45 = vmax.f32 %v5947_v12, 0.0 }
 0x3b6   : > { %v4109_v40 = vpack.c.bf16 %v4013_v44, %v4005_v5  ;;  %v4108_v56 = vpack.c.bf16 %v4012_v32, %v4004_v14  ;;  %v3238_v37 = vpop.f32.mrb[48].mxu1  ;;  %5767 = vmatpush3.bf16.msra.mxu1 %v6429_v23 }
 0x3b7   : > { %v4110_v10 = vpack.c.bf16 %v4014_v45, %v4006_v42  ;;  %v5916_v46 = vadd.f32 %v3238_v37, %v7609_v63  ;;  %v3464_v25 = vpop.f32.mrb[80].mxu0  ;;  %v3240_v1 = vpop.f32.mrb[49].mxu1  ;;  %5768 = vmatprep.subr.bf16.mxu1 %v6434_v43  ;;  %5831 = vmatpush3.bf16.msra.mxu0 %v7686_v6 }
 0x3b8   : > { %v5948_v29 = vadd.f32 %v3464_v25, %v7614_v16  ;;  %v5917_v47 = vadd.f32 %v3240_v1, %v7618_v52  ;;  %v3466_v48 = vpop.f32.mrb[81].mxu0  ;;  %v3242_v39 = vpop.f32.mrb[50].mxu1  ;;  %4722 = vmatprep.mubr.bf16.mxu1 %v4108_v56  ;;  %5832 = vmatprep.subr.bf16.mxu0 %v7689_v55 }
 0x3b9   : > { %v5949_v13 = vadd.f32 %v3466_v48, %v7623_v57  ;;  %v5918_v27 = vadd.f32 %v3242_v39, %v7609_v63  ;;  %v3468_v9 = vpop.f32.mrb[82].mxu0  ;;  %4819 = vmatprep.mubr.bf16.mxu0 %v4110_v10  ;;  %v3244_v33 = vpop.f32.mrb[51].mxu1  ;;  %4723 = vmatmul.mubr.bf16.gmra.mrb[108].mxu1 %v4107_v20  ;;  %v4019_v30 = vmax.f32 %v5916_v46, 0.0 }
 0x3ba   : > { %v5950_v3 = vadd.f32 %v3468_v9, %v7614_v16  ;;  %v5919_v8 = vadd.f32 %v3244_v33, %v7618_v52  ;;  %v3470_v61 = vpop.f32.mrb[83].mxu0  ;;  %4820 = vmatmul.mubr.bf16.gmra.mrb[140].mxu0 %v4109_v40  ;;  %5769 = vmatpush3.bf16.msra.mxu1 %v6435_v0  ;;  %v4021_v35 = vmax.f32 %v5948_v29, 0.0  ;;  %v4020_v31 = vmax.f32 %v5917_v47, 0.0 }
 0x3bb   : > { %v4027_v7 = vmax.f32 %v5918_v27, 0.0  ;;  %v5951_v34 = vadd.f32 %v3470_v61, %v7623_v57  ;;  %5770 = vmatprep.subr.bf16.mxu1 %v6440_v22  ;;  %5833 = vmatpush3.bf16.msra.mxu0 %v7693_v59  ;;  %v4022_v28 = vmax.f32 %v5949_v13, 0.0 }
 0x3bc   : > { %v4029_v21 = vmax.f32 %v5950_v3, 0.0  ;;  %v4028_v54 = vmax.f32 %v5919_v8, 0.0  ;;  %5834 = vmatprep.subr.bf16.mxu0 %v7698_v53 }
 0x3bd   : > { %v4115_v17 = vpack.c.bf16 %v4027_v7, %v4019_v30  ;;  %v4030_v23 = vmax.f32 %v5951_v34, 0.0 }
 0x3be   : > { %v4117_v36 = vpack.c.bf16 %v4029_v21, %v4021_v35  ;;  %v4116_v38 = vpack.c.bf16 %v4028_v54, %v4020_v31  ;;  %v3248_v12 = vpop.f32.mrb[52].mxu1  ;;  %5771 = vmatpush3.bf16.msra.mxu1 %v6441_v49 }
 0x3bf   : > { %v4118_v43 = vpack.c.bf16 %v4030_v23, %v4022_v28  ;;  %v5920_v5 = vadd.f32 %v3248_v12, %v7609_v63  ;;  %v3474_v14 = vpop.f32.mrb[84].mxu0  ;;  %v3250_v44 = vpop.f32.mrb[53].mxu1  ;;  %5835 = vmatpush3.bf16.msra.mxu0 %v7706_v2  ;;  %5884 = vmatprep.subr.bf16.mxu1 %v7585_v60 }
 0x3c0   : > { %v5952_v32 = vadd.f32 %v3474_v14, %v7614_v16  ;;  %v5921_v42 = vadd.f32 %v3250_v44, %v7618_v52  ;;  %v3476_v20 = vpop.f32.mrb[85].mxu0  ;;  %v3252_v45 = vpop.f32.mrb[54].mxu1  ;;  %4730 = vmatprep.mubr.bf16.mxu1 %v4116_v38 }
 0x3c1   : > { %v5953_v40 = vadd.f32 %v3476_v20, %v7623_v57  ;;  %v5922_v56 = vadd.f32 %v3252_v45, %v7609_v63  ;;  %v3478_v37 = vpop.f32.mrb[86].mxu0  ;;  %4827 = vmatprep.mubr.bf16.mxu0 %v4118_v43  ;;  %v3254_v0 = vpop.f32.mrb[55].mxu1  ;;  %4731 = vmatmul.mubr.bf16.gmra.mrb[112].mxu1 %v4115_v17  ;;  %v4035_v25 = vmax.f32 %v5920_v5, 0.0 }
 0x3c2   : > { %v5954_v10 = vadd.f32 %v3478_v37, %v7614_v16  ;;  %v5923_v46 = vadd.f32 %v3254_v0, %v7618_v52  ;;  %v3480_v60 = vpop.f32.mrb[87].mxu0  ;;  %4828 = vmatmul.mubr.bf16.gmra.mrb[144].mxu0 %v4117_v36  ;;  %v4037_v29 = vmax.f32 %v5952_v32, 0.0  ;;  %v4036_v47 = vmax.f32 %v5921_v42, 0.0 }
 0x3c3   : > { %v4043_v1 = vmax.f32 %v5922_v56, 0.0  ;;  %v5955_v22 = vadd.f32 %v3480_v60, %v7623_v57  ;;  %v4038_v13 = vmax.f32 %v5953_v40, 0.0 }
 0x3c4   : > { %v4045_v48 = vmax.f32 %v5954_v10, 0.0  ;;  %v4044_v39 = vmax.f32 %v5923_v46, 0.0 }
 0x3c5   : > { %v4123_v27 = vpack.c.bf16 %v4043_v1, %v4035_v25  ;;  %v4046_v9 = vmax.f32 %v5955_v22, 0.0 }
 0x3c6   : > { %v4125_v33 = vpack.c.bf16 %v4045_v48, %v4037_v29  ;;  %v4124_v3 = vpack.c.bf16 %v4044_v39, %v4036_v47  ;;  %v3258_v8 = vpop.f32.mrb[56].mxu1 }
 0x3c7   : > { %v4126_v61 = vpack.c.bf16 %v4046_v9, %v4038_v13  ;;  %v5924_v49 = vadd.f32 %v3258_v8, %v7609_v63  ;;  %v3484_v30 = vpop.f32.mrb[88].mxu0  ;;  %v3260_v7 = vpop.f32.mrb[57].mxu1 }
 0x3c8   : > { %v5956_v34 = vadd.f32 %v3484_v30, %v7614_v16  ;;  %v5925_v35 = vadd.f32 %v3260_v7, %v7618_v52  ;;  %v3486_v31 = vpop.f32.mrb[89].mxu0  ;;  %v3262_v21 = vpop.f32.mrb[58].mxu1  ;;  %4738 = vmatprep.mubr.bf16.mxu1 %v4124_v3 }
 0x3c9   : > { %v5957_v54 = vadd.f32 %v3486_v31, %v7623_v57  ;;  %v5926_v28 = vadd.f32 %v3262_v21, %v7609_v63  ;;  %v3488_v17 = vpop.f32.mrb[90].mxu0  ;;  %4835 = vmatprep.mubr.bf16.mxu0 %v4126_v61  ;;  %v3264_v23 = vpop.f32.mrb[59].mxu1  ;;  %4739 = vmatmul.mubr.bf16.gmra.mrb[116].mxu1 %v4123_v27  ;;  %v4051_v43 = vmax.f32 %v5924_v49, 0.0 }
 0x3ca   : > { %v5958_v36 = vadd.f32 %v3488_v17, %v7614_v16  ;;  %v5927_v38 = vadd.f32 %v3264_v23, %v7618_v52  ;;  %v3490_v12 = vpop.f32.mrb[91].mxu0  ;;  %4836 = vmatmul.mubr.bf16.gmra.mrb[148].mxu0 %v4125_v33  ;;  %v4053_v44 = vmax.f32 %v5956_v34, 0.0  ;;  %v4052_v32 = vmax.f32 %v5925_v35, 0.0 }
 0x3cb   : > { %v4059_v5 = vmax.f32 %v5926_v28, 0.0  ;;  %v5959_v14 = vadd.f32 %v3490_v12, %v7623_v57  ;;  %v4054_v45 = vmax.f32 %v5957_v54, 0.0 }
 0x3cc   : > { %v4061_v42 = vmax.f32 %v5958_v36, 0.0  ;;  %v4060_v20 = vmax.f32 %v5927_v38, 0.0  ;;  %v1761_v36 = vsub.s32 7, %v8009_v26 }
 0x3cd   : > { %v4131_v40 = vpack.c.bf16 %v4059_v5, %v4051_v43  ;;  %v4062_v56 = vmax.f32 %v5959_v14, 0.0 }
 0x3ce   : > { %v4133_v37 = vpack.c.bf16 %v4061_v42, %v4053_v44  ;;  %v4132_v0 = vpack.c.bf16 %v4060_v20, %v4052_v32  ;;  %v3268_v10 = vpop.f32.mrb[60].mxu1  ;;  %v7749_v14 = vrot.slane %v7605_v51, %v1761_v36 }
 0x3cf   : > { %v4134_v46 = vpack.c.bf16 %v4062_v56, %v4054_v45  ;;  %v5928_v60 = vadd.f32 %v3268_v10, %v7609_v63  ;;  %v3494_v25 = vpop.f32.mrb[92].mxu0  ;;  %v3270_v1 = vpop.f32.mrb[61].mxu1 }
 0x3d0   : > { %v5960_v22 = vadd.f32 %v3494_v25, %v7614_v16  ;;  %v5929_v29 = vadd.f32 %v3270_v1, %v7618_v52  ;;  %v3496_v47 = vpop.f32.mrb[93].mxu0  ;;  %v3272_v48 = vpop.f32.mrb[62].mxu1  ;;  %4746 = vmatprep.mubr.bf16.mxu1 %v4132_v0 }
 0x3d1   : > { %v5961_v39 = vadd.f32 %v3496_v47, %v7623_v57  ;;  %v5930_v13 = vadd.f32 %v3272_v48, %v7609_v63  ;;  %v3498_v27 = vpop.f32.mrb[94].mxu0  ;;  %4843 = vmatprep.mubr.bf16.mxu0 %v4134_v46  ;;  %v3274_v9 = vpop.f32.mrb[63].mxu1  ;;  %4747 = vmatmul.mubr.bf16.gmra.mrb[120].mxu1 %v4131_v40  ;;  %v4067_v61 = vmax.f32 %v5928_v60, 0.0 }
 0x3d2   : > { %v5962_v33 = vadd.f32 %v3498_v27, %v7614_v16  ;;  %v5931_v3 = vadd.f32 %v3274_v9, %v7618_v52  ;;  %v3500_v8 = vpop.f32.mrb[95].mxu0  ;;  %4844 = vmatmul.mubr.bf16.gmra.mrb[152].mxu0 %v4133_v37  ;;  %v4069_v7 = vmax.f32 %v5960_v22, 0.0  ;;  %v4068_v34 = vmax.f32 %v5929_v29, 0.0 }
 0x3d3   : > { %v4075_v49 = vmax.f32 %v5930_v13, 0.0  ;;  %v5963_v30 = vadd.f32 %v3500_v8, %v7623_v57  ;;  %v4070_v21 = vmax.f32 %v5961_v39, 0.0  ;;  %v1749_v16 = vsub.s32 4, %v8009_v26 }
 0x3d4   : > { %v4077_v35 = vmax.f32 %v5962_v33, 0.0  ;;  %v4076_v31 = vmax.f32 %v5931_v3, 0.0  ;;  %v1753_v52 = vsub.s32 5, %v8009_v26  ;;  %v1757_v57 = vsub.s32 6, %v8009_v26 }
 0x3d5   : > { %v4139_v63 = vpack.c.bf16 %v4075_v49, %v4067_v61  ;;  %v4078_v54 = vmax.f32 %v5963_v30, 0.0  ;;  %v7740_v38 = vrot.slane %v7605_v51, %v1749_v16 }
 0x3d6   : > { %v4141_v28 = vpack.c.bf16 %v4077_v35, %v4069_v7  ;;  %v4140_v17 = vpack.c.bf16 %v4076_v31, %v4068_v34  ;;  %v7743_v12 = vrot.slane %v7605_v51, %v1753_v52  ;;  %v7746_v43 = vrot.slane %v7605_v51, %v1757_v57 }
 0x3d7   : > { %v4142_v23 = vpack.c.bf16 %v4078_v54, %v4070_v21 }
 0x3d8   : > { %4754 = vmatprep.mubr.bf16.mxu1 %v4140_v17 }
 0x3d9   : > { %4851 = vmatprep.mubr.bf16.mxu0 %v4142_v23  ;;  %4755 = vmatmul.mubr.bf16.gmra.mrb[124].mxu1 %v4139_v63 }
 0x3da   : > { %4852 = vmatmul.mubr.bf16.gmra.mrb[156].mxu0 %v4141_v28 }
 0x416   : > { %v3650_v5 = vpop.f32.mrb[64].mxu1 }
 0x417   : > { %v5964_v44 = vadd.f32 %v3650_v5, %v7740_v38  ;;  %v3652_v32 = vpop.f32.mrb[65].mxu1 }
 0x418   : > { %v3876_v42 = vpop.f32.mrb[96].mxu0  ;;  %v5965_v20 = vadd.f32 %v3652_v32, %v7743_v12  ;;  %v3654_v26 = vpop.f32.mrb[66].mxu1 }
 0x419   : > { %v5996_v45 = vadd.f32 %v3876_v42, %v7746_v43  ;;  %v3878_v40 = vpop.f32.mrb[97].mxu0  ;;  %v5966_v56 = vadd.f32 %v3654_v26, %v7740_v38  ;;  %v3656_v37 = vpop.f32.mrb[67].mxu1  ;;  %v3959_v51 = vmax.f32 %v5964_v44, 0.0 }
 0x41a   : > { %v5997_v0 = vadd.f32 %v3878_v40, %v7749_v14  ;;  %v3880_v10 = vpop.f32.mrb[98].mxu0  ;;  %v5967_v46 = vadd.f32 %v3656_v37, %v7743_v12  ;;  %v3960_v22 = vmax.f32 %v5965_v20, 0.0 }
 0x41b   : > { %v3967_v60 = vmax.f32 %v5966_v56, 0.0  ;;  %v5998_v25 = vadd.f32 %v3880_v10, %v7746_v43  ;;  %v3882_v1 = vpop.f32.mrb[99].mxu0  ;;  %v3961_v48 = vmax.f32 %v5996_v45, 0.0 }
 0x41c   : > { %v3968_v29 = vmax.f32 %v5967_v46, 0.0  ;;  %v5999_v47 = vadd.f32 %v3882_v1, %v7749_v14  ;;  %v3962_v27 = vmax.f32 %v5997_v0, 0.0 }
 0x41d   : > { %v4087_v39 = vpack.c.bf16 %v3967_v60, %v3959_v51  ;;  %v3969_v13 = vmax.f32 %v5998_v25, 0.0 }
 0x41e   : > { %v4088_v9 = vpack.c.bf16 %v3968_v29, %v3960_v22  ;;  %v3970_v33 = vmax.f32 %v5999_v47, 0.0  ;;  %v3660_v3 = vpop.f32.mrb[68].mxu1 }
 0x41f   : > { %v4089_v8 = vpack.c.bf16 %v3969_v13, %v3961_v48  ;;  %v5968_v61 = vadd.f32 %v3660_v3, %v7740_v38  ;;  %v3662_v49 = vpop.f32.mrb[69].mxu1 }
 0x420   : > { %v4090_v30 = vpack.c.bf16 %v3970_v33, %v3962_v27  ;;  %v3886_v7 = vpop.f32.mrb[100].mxu0  ;;  %v5969_v34 = vadd.f32 %v3662_v49, %v7743_v12  ;;  %v3664_v35 = vpop.f32.mrb[70].mxu1  ;;  %4892 = vmatprep.mubr.bf16.mxu1 %v4088_v9 }
 0x421   : > { %v6000_v31 = vadd.f32 %v3886_v7, %v7746_v43  ;;  %v3888_v21 = vpop.f32.mrb[101].mxu0  ;;  %v5970_v63 = vadd.f32 %v3664_v35, %v7740_v38  ;;  %v3666_v54 = vpop.f32.mrb[71].mxu1  ;;  %4893 = vmatmul.mubr.bf16.vlgmr.msra.gmra.mrb[128].mxu1 %v4087_v39  ;;  %v3975_v16 = vmax.f32 %v5968_v61, 0.0 }
 0x422   : > { %v6001_v28 = vadd.f32 %v3888_v21, %v7749_v14  ;;  %v3890_v17 = vpop.f32.mrb[102].mxu0  ;;  %4989 = vmatprep.mubr.bf16.mxu0 %v4090_v30  ;;  %v5971_v23 = vadd.f32 %v3666_v54, %v7743_v12  ;;  %5892 = vmatpush3.bf16.msra.mxu1 %v7634_v15  ;;  %v3976_v5 = vmax.f32 %v5969_v34, 0.0 }
 0x423   : > { %v3983_v52 = vmax.f32 %v5970_v63, 0.0  ;;  %v6002_v57 = vadd.f32 %v3890_v17, %v7746_v43  ;;  %v3892_v36 = vpop.f32.mrb[103].mxu0  ;;  %4990 = vmatmul.mubr.bf16.vlgmr.msra.gmra.mrb[160].mxu0 %v4089_v8  ;;  %5885 = vmatprep.subr.bf16.mxu1 %v7638_v58  ;;  %v3977_v42 = vmax.f32 %v6000_v31, 0.0 }
 0x424   : > { %v3984_v44 = vmax.f32 %v5971_v23, 0.0  ;;  %v6003_v32 = vadd.f32 %v3892_v36, %v7749_v14  ;;  %v3978_v45 = vmax.f32 %v6001_v28, 0.0 }
 0x425   : > { %v4095_v20 = vpack.c.bf16 %v3983_v52, %v3975_v16  ;;  %v3985_v26 = vmax.f32 %v6002_v57, 0.0 }
 0x426   : > { %v4096_v40 = vpack.c.bf16 %v3984_v44, %v3976_v5  ;;  %v3986_v56 = vmax.f32 %v6003_v32, 0.0  ;;  %v3670_v37 = vpop.f32.mrb[72].mxu1  ;;  %5893 = vmatpush3.bf16.msra.mxu1 %v7646_v41 }
 0x427   : > { %v4097_v15 = vpack.c.bf16 %v3985_v26, %v3977_v42  ;;  %v5972_v0 = vadd.f32 %v3670_v37, %v7740_v38  ;;  %v3672_v10 = vpop.f32.mrb[73].mxu1  ;;  %5886 = vmatprep.subr.bf16.mxu1 %v7649_v18 }
 0x428   : > { %v4098_v58 = vpack.c.bf16 %v3986_v56, %v3978_v45  ;;  %v3896_v46 = vpop.f32.mrb[104].mxu0  ;;  %v5973_v51 = vadd.f32 %v3672_v10, %v7743_v12  ;;  %v3674_v60 = vpop.f32.mrb[74].mxu1  ;;  %4900 = vmatprep.mubr.bf16.mxu1 %v4096_v40 }
 0x429   : > { %v6004_v25 = vadd.f32 %v3896_v46, %v7746_v43  ;;  %v3898_v1 = vpop.f32.mrb[105].mxu0  ;;  %v5974_v22 = vadd.f32 %v3674_v60, %v7740_v38  ;;  %v3676_v29 = vpop.f32.mrb[75].mxu1  ;;  %4901 = vmatmul.mubr.bf16.gmra.mrb[132].mxu1 %v4095_v20  ;;  %v3991_v18 = vmax.f32 %v5972_v0, 0.0 }
 0x42a   : > { %v6005_v41 = vadd.f32 %v3898_v1, %v7749_v14  ;;  %v3900_v47 = vpop.f32.mrb[106].mxu0  ;;  %4997 = vmatprep.mubr.bf16.mxu0 %v4098_v58  ;;  %v5975_v48 = vadd.f32 %v3676_v29, %v7743_v12  ;;  %5894 = vmatpush3.bf16.msra.mxu1 %v7653_v4  ;;  %v3992_v9 = vmax.f32 %v5973_v51, 0.0 }
 0x42b   : > { %v3999_v39 = vmax.f32 %v5974_v22, 0.0  ;;  %v6006_v13 = vadd.f32 %v3900_v47, %v7746_v43  ;;  %v3902_v27 = vpop.f32.mrb[107].mxu0  ;;  %4998 = vmatmul.mubr.bf16.gmra.mrb[164].mxu0 %v4097_v15  ;;  %5887 = vmatprep.subr.bf16.mxu1 %v7658_v50  ;;  %v3993_v8 = vmax.f32 %v6004_v25, 0.0 }
 0x42c   : > { %v4000_v33 = vmax.f32 %v5975_v48, 0.0  ;;  %v6007_v3 = vadd.f32 %v3902_v27, %v7749_v14  ;;  %v3994_v30 = vmax.f32 %v6005_v41, 0.0 }
 0x42d   : > { %v4103_v61 = vpack.c.bf16 %v3999_v39, %v3991_v18  ;;  %v4001_v49 = vmax.f32 %v6006_v13, 0.0 }
 0x42e   : > { %v4104_v7 = vpack.c.bf16 %v4000_v33, %v3992_v9  ;;  %v4002_v34 = vmax.f32 %v6007_v3, 0.0  ;;  %v3680_v35 = vpop.f32.mrb[76].mxu1  ;;  %5895 = vmatpush3.bf16.msra.mxu1 %v7666_v24 }
 0x42f   : > { %v4105_v4 = vpack.c.bf16 %v4001_v49, %v3993_v8  ;;  %v5976_v31 = vadd.f32 %v3680_v35, %v7740_v38  ;;  %v3682_v21 = vpop.f32.mrb[77].mxu1  ;;  %5888 = vmatprep.subr.bf16.mxu1 %v7669_v19 }
 0x430   : > { %v4106_v50 = vpack.c.bf16 %v4002_v34, %v3994_v30  ;;  %v3906_v63 = vpop.f32.mrb[108].mxu0  ;;  %v5977_v54 = vadd.f32 %v3682_v21, %v7743_v12  ;;  %v3684_v28 = vpop.f32.mrb[78].mxu1  ;;  %4908 = vmatprep.mubr.bf16.mxu1 %v4104_v7 }
 0x431   : > { %v6008_v17 = vadd.f32 %v3906_v63, %v7746_v43  ;;  %v3908_v23 = vpop.f32.mrb[109].mxu0  ;;  %v5978_v16 = vadd.f32 %v3684_v28, %v7740_v38  ;;  %v3686_v52 = vpop.f32.mrb[79].mxu1  ;;  %4909 = vmatmul.mubr.bf16.gmra.mrb[136].mxu1 %v4103_v61  ;;  %v4007_v19 = vmax.f32 %v5976_v31, 0.0 }
 0x432   : > { %v6009_v24 = vadd.f32 %v3908_v23, %v7749_v14  ;;  %v3910_v57 = vpop.f32.mrb[110].mxu0  ;;  %5005 = vmatprep.mubr.bf16.mxu0 %v4106_v50  ;;  %v5979_v36 = vadd.f32 %v3686_v52, %v7743_v12  ;;  %5896 = vmatpush3.bf16.msra.mxu1 %v7673_v11  ;;  %v4008_v42 = vmax.f32 %v5977_v54, 0.0 }
 0x433   : > { %v4015_v5 = vmax.f32 %v5978_v16, 0.0  ;;  %v6010_v44 = vadd.f32 %v3910_v57, %v7746_v43  ;;  %v3912_v32 = vpop.f32.mrb[111].mxu0  ;;  %5006 = vmatmul.mubr.bf16.gmra.mrb[168].mxu0 %v4105_v4  ;;  %5889 = vmatprep.subr.bf16.mxu1 %v7678_v62  ;;  %v4009_v45 = vmax.f32 %v6008_v17, 0.0 }
 0x434   : > { %v4016_v20 = vmax.f32 %v5979_v36, 0.0  ;;  %v6011_v26 = vadd.f32 %v3912_v32, %v7749_v14  ;;  %v4010_v37 = vmax.f32 %v6009_v24, 0.0 }
 0x435   : > { %v4111_v40 = vpack.c.bf16 %v4015_v5, %v4007_v19  ;;  %v4017_v56 = vmax.f32 %v6010_v44, 0.0 }
 0x436   : > { %v4112_v15 = vpack.c.bf16 %v4016_v20, %v4008_v42  ;;  %v4018_v0 = vmax.f32 %v6011_v26, 0.0  ;;  %v3690_v10 = vpop.f32.mrb[80].mxu1  ;;  %5897 = vmatpush3.bf16.msra.mxu1 %v7686_v6 }
 0x437   : > { %v4113_v11 = vpack.c.bf16 %v4017_v56, %v4009_v45  ;;  %v5980_v58 = vadd.f32 %v3690_v10, %v7740_v38  ;;  %v3692_v46 = vpop.f32.mrb[81].mxu1  ;;  %5890 = vmatprep.subr.bf16.mxu1 %v7689_v55 }
 0x438   : > { %v4114_v62 = vpack.c.bf16 %v4018_v0, %v4010_v37  ;;  %v3916_v51 = vpop.f32.mrb[112].mxu0  ;;  %v5981_v60 = vadd.f32 %v3692_v46, %v7743_v12  ;;  %v3694_v25 = vpop.f32.mrb[82].mxu1  ;;  %4916 = vmatprep.mubr.bf16.mxu1 %v4112_v15 }
 0x439   : > { %v6012_v1 = vadd.f32 %v3916_v51, %v7746_v43  ;;  %v3918_v22 = vpop.f32.mrb[113].mxu0  ;;  %v5982_v29 = vadd.f32 %v3694_v25, %v7740_v38  ;;  %v3696_v41 = vpop.f32.mrb[83].mxu1  ;;  %4917 = vmatmul.mubr.bf16.gmra.mrb[140].mxu1 %v4111_v40  ;;  %v4023_v55 = vmax.f32 %v5980_v58, 0.0 }
 0x43a   : > { %v6013_v6 = vadd.f32 %v3918_v22, %v7749_v14  ;;  %v3920_v47 = vpop.f32.mrb[114].mxu0  ;;  %5013 = vmatprep.mubr.bf16.mxu0 %v4114_v62  ;;  %v5983_v48 = vadd.f32 %v3696_v41, %v7743_v12  ;;  %5898 = vmatpush3.bf16.msra.mxu1 %v7693_v59  ;;  %v4024_v27 = vmax.f32 %v5981_v60, 0.0 }
 0x43b   : > { %v4031_v18 = vmax.f32 %v5982_v29, 0.0  ;;  %v6014_v39 = vadd.f32 %v3920_v47, %v7746_v43  ;;  %v3922_v13 = vpop.f32.mrb[115].mxu0  ;;  %5014 = vmatmul.mubr.bf16.gmra.mrb[172].mxu0 %v4113_v11  ;;  %5891 = vmatprep.subr.bf16.mxu1 %v7698_v53  ;;  %v4025_v3 = vmax.f32 %v6012_v1, 0.0 }
 0x43c   : > { %v4032_v9 = vmax.f32 %v5983_v48, 0.0  ;;  %v6015_v33 = vadd.f32 %v3922_v13, %v7749_v14  ;;  %v4026_v49 = vmax.f32 %v6013_v6, 0.0 }
 0x43d   : > { %v4119_v8 = vpack.c.bf16 %v4031_v18, %v4023_v55  ;;  %v4033_v61 = vmax.f32 %v6014_v39, 0.0 }
 0x43e   : > { %v4120_v30 = vpack.c.bf16 %v4032_v9, %v4024_v27  ;;  %v4034_v7 = vmax.f32 %v6015_v33, 0.0  ;;  %v3700_v34 = vpop.f32.mrb[84].mxu1  ;;  %5899 = vmatpush3.bf16.msra.mxu1 %v7706_v2 }
 0x43f   : > { %v4121_v59 = vpack.c.bf16 %v4033_v61, %v4025_v3  ;;  %v5984_v35 = vadd.f32 %v3700_v34, %v7740_v38  ;;  %v3702_v4 = vpop.f32.mrb[85].mxu1 }
 0x440   : > { %v4122_v31 = vpack.c.bf16 %v4034_v7, %v4026_v49  ;;  %v3926_v21 = vpop.f32.mrb[116].mxu0  ;;  %v5985_v53 = vadd.f32 %v3702_v4, %v7743_v12  ;;  %v3704_v50 = vpop.f32.mrb[86].mxu1  ;;  %4924 = vmatprep.mubr.bf16.mxu1 %v4120_v30 }
 0x441   : > { %v6016_v63 = vadd.f32 %v3926_v21, %v7746_v43  ;;  %v3928_v54 = vpop.f32.mrb[117].mxu0  ;;  %v5986_v28 = vadd.f32 %v3704_v50, %v7740_v38  ;;  %v3706_v17 = vpop.f32.mrb[87].mxu1  ;;  %4925 = vmatmul.mubr.bf16.gmra.mrb[144].mxu1 %v4119_v8  ;;  %v4039_v52 = vmax.f32 %v5984_v35, 0.0 }
 0x442   : > { %v6017_v23 = vadd.f32 %v3928_v54, %v7749_v14  ;;  %v3930_v2 = vpop.f32.mrb[118].mxu0  ;;  %5021 = vmatprep.mubr.bf16.mxu0 %v4122_v31  ;;  %v5987_v16 = vadd.f32 %v3706_v17, %v7743_v12  ;;  %v4040_v19 = vmax.f32 %v5985_v53, 0.0 }
 0x443   : > { %v4047_v24 = vmax.f32 %v5986_v28, 0.0  ;;  %v6018_v57 = vadd.f32 %v3930_v2, %v7746_v43  ;;  %v3932_v36 = vpop.f32.mrb[119].mxu0  ;;  %5022 = vmatmul.mubr.bf16.gmra.mrb[176].mxu0 %v4121_v59  ;;  %v4041_v32 = vmax.f32 %v6016_v63, 0.0 }
 0x444   : > { %v4048_v5 = vmax.f32 %v5987_v16, 0.0  ;;  %v6019_v44 = vadd.f32 %v3932_v36, %v7749_v14  ;;  %v4042_v26 = vmax.f32 %v6017_v23, 0.0 }
 0x445   : > { %v4127_v42 = vpack.c.bf16 %v4047_v24, %v4039_v52  ;;  %v4049_v20 = vmax.f32 %v6018_v57, 0.0 }
 0x446   : > { %v4128_v45 = vpack.c.bf16 %v4048_v5, %v4040_v19  ;;  %v4050_v40 = vmax.f32 %v6019_v44, 0.0  ;;  %v3710_v56 = vpop.f32.mrb[88].mxu1 }
 0x447   : > { %v4129_v37 = vpack.c.bf16 %v4049_v20, %v4041_v32  ;;  %v5988_v15 = vadd.f32 %v3710_v56, %v7740_v38  ;;  %v3712_v0 = vpop.f32.mrb[89].mxu1 }
 0x448   : > { %v4130_v10 = vpack.c.bf16 %v4050_v40, %v4042_v26  ;;  %v3936_v11 = vpop.f32.mrb[120].mxu0  ;;  %v5989_v58 = vadd.f32 %v3712_v0, %v7743_v12  ;;  %v3714_v46 = vpop.f32.mrb[90].mxu1  ;;  %4932 = vmatprep.mubr.bf16.mxu1 %v4128_v45 }
 0x449   : > { %v6020_v62 = vadd.f32 %v3936_v11, %v7746_v43  ;;  %v3938_v51 = vpop.f32.mrb[121].mxu0  ;;  %v5990_v60 = vadd.f32 %v3714_v46, %v7740_v38  ;;  %v3716_v25 = vpop.f32.mrb[91].mxu1  ;;  %4933 = vmatmul.mubr.bf16.gmra.mrb[148].mxu1 %v4127_v42  ;;  %v4055_v41 = vmax.f32 %v5988_v15, 0.0 }
 0x44a   : > { %v6021_v1 = vadd.f32 %v3938_v51, %v7749_v14  ;;  %v3940_v22 = vpop.f32.mrb[122].mxu0  ;;  %5029 = vmatprep.mubr.bf16.mxu0 %v4130_v10  ;;  %v5991_v29 = vadd.f32 %v3716_v25, %v7743_v12  ;;  %v4056_v55 = vmax.f32 %v5989_v58, 0.0 }
 0x44b   : > { %v4063_v6 = vmax.f32 %v5990_v60, 0.0  ;;  %v6022_v47 = vadd.f32 %v3940_v22, %v7746_v43  ;;  %v3942_v48 = vpop.f32.mrb[123].mxu0  ;;  %5030 = vmatmul.mubr.bf16.gmra.mrb[180].mxu0 %v4129_v37  ;;  %v4057_v13 = vmax.f32 %v6020_v62, 0.0 }
 0x44c   : > { %v4064_v18 = vmax.f32 %v5991_v29, 0.0  ;;  %v6023_v39 = vadd.f32 %v3942_v48, %v7749_v14  ;;  %v4058_v33 = vmax.f32 %v6021_v1, 0.0 }
 0x44d   : > { %v4135_v27 = vpack.c.bf16 %v4063_v6, %v4055_v41  ;;  %v4065_v9 = vmax.f32 %v6022_v47, 0.0 }
 0x44e   : > { %v4136_v3 = vpack.c.bf16 %v4064_v18, %v4056_v55  ;;  %v4066_v8 = vmax.f32 %v6023_v39, 0.0  ;;  %v3720_v61 = vpop.f32.mrb[92].mxu1 }
 0x44f   : > { %v4137_v49 = vpack.c.bf16 %v4065_v9, %v4057_v13  ;;  %v5992_v30 = vadd.f32 %v3720_v61, %v7740_v38  ;;  %v3722_v7 = vpop.f32.mrb[93].mxu1 }
 0x450   : > { %v4138_v34 = vpack.c.bf16 %v4066_v8, %v4058_v33  ;;  %v3946_v59 = vpop.f32.mrb[124].mxu0  ;;  %v5993_v35 = vadd.f32 %v3722_v7, %v7743_v12  ;;  %v3724_v4 = vpop.f32.mrb[94].mxu1  ;;  %4940 = vmatprep.mubr.bf16.mxu1 %v4136_v3 }
 0x451   : > { %v6024_v31 = vadd.f32 %v3946_v59, %v7746_v43  ;;  %v3948_v21 = vpop.f32.mrb[125].mxu0  ;;  %v5994_v53 = vadd.f32 %v3724_v4, %v7740_v38  ;;  %v3726_v50 = vpop.f32.mrb[95].mxu1  ;;  %4941 = vmatmul.mubr.bf16.gmra.mrb[152].mxu1 %v4135_v27  ;;  %v4071_v17 = vmax.f32 %v5992_v30, 0.0 }
 0x452   : > { %v6025_v63 = vadd.f32 %v3948_v21, %v7749_v14  ;;  %v3950_v54 = vpop.f32.mrb[126].mxu0  ;;  %v5995_v28 = vadd.f32 %v3726_v50, %v7743_v12  ;;  %v4072_v52 = vmax.f32 %v5993_v35, 0.0 }
 0x453   : > { %v4079_v23 = vmax.f32 %v5994_v53, 0.0  ;;  %v6026_v2 = vadd.f32 %v3950_v54, %v7746_v43  ;;  %v3952_v16 = vpop.f32.mrb[127].mxu0  ;;  %v4073_v36 = vmax.f32 %v6024_v31, 0.0 }
 0x454   : > { %v4080_v24 = vmax.f32 %v5995_v28, 0.0  ;;  %v6027_v57 = vadd.f32 %v3952_v16, %v7749_v14  ;;  %v4074_v38 = vmax.f32 %v6025_v63, 0.0  ;;  %v7833_v14 = vld [vmem:[%s7977_s8] ss:$0 sm:$0xff] }
 0x455   : > { %v4143_v19 = vpack.c.bf16 %v4079_v23, %v4071_v17  ;;  %v4081_v5 = vmax.f32 %v6026_v2, 0.0 }
 0x456   : > { %v4144_v44 = vpack.c.bf16 %v4080_v24, %v4072_v52  ;;  %v4082_v32 = vmax.f32 %v6027_v57, 0.0 }
 0x457   : > { %v4145_v42 = vpack.c.bf16 %v4081_v5, %v4073_v36 }
 0x458   : > { %v4146_v20 = vpack.c.bf16 %v4082_v32, %v4074_v38  ;;  %4948 = vmatprep.mubr.bf16.mxu1 %v4144_v44 }
 0x459   : > { %4949 = vmatmul.mubr.bf16.gmra.mrb[156].mxu1 %v4143_v19 }
 0x45a   : > { %5037 = vmatprep.mubr.bf16.mxu1 %v4138_v34 }
 0x461   : > { %5038 = vmatmul.mubr.bf16.vlgmr.msra.gmra.mrb[160].mxu1 %v4137_v49 }
 0x462   : > { %5045 = vmatprep.mubr.bf16.mxu1 %v4146_v20 }
 0x469   : > { %5046 = vmatmul.mubr.bf16.gmra.mrb[164].mxu1 %v4145_v42 }
 0x474   : > { %v5644_v12 = vpop.f32.mrb[96].mxu1 }
 0x475   : > { %v5708_v43 = vpop.f32.mrb[128].mxu0  ;;  %v5645_v26 = vpop.f32.mrb[97].mxu1 }
 0x476   : > { %v5646_v45 = vadd.f32 %v5645_v26, %v5644_v12  ;;  %v5709_v40 = vpop.f32.mrb[129].mxu0  ;;  %v5647_v56 = vpop.f32.mrb[98].mxu1 }
 0x477   : > { %v5710_v37 = vadd.f32 %v5709_v40, %v5708_v43  ;;  %v5711_v15 = vpop.f32.mrb[130].mxu0  ;;  %v5648_v0 = vpop.f32.mrb[99].mxu1 }
 0x478   : > { %v4701_v10 = vadd.f32 %v5646_v45, %v7833_v14  ;;  %v5649_v11 = vadd.f32 %v5648_v0, %v5647_v56  ;;  %v5712_v58 = vpop.f32.mrb[131].mxu0 }
 0x479   : > { %v5713_v46 = vadd.f32 %v5712_v58, %v5711_v15 }
 0x47a   : > { %v7836_v62 = vadd.f32 %v5710_v37, %v4701_v10  ;;  %v4704_v51 = vadd.f32 %v5649_v11, %v7833_v14 }
 0x47c   : > { %v7839_v60 = vadd.f32 %v5713_v46, %v4704_v51  ;;  %v5650_v25 = vpop.f32.mrb[100].mxu1 }
 0x47d   : > { %v5714_v1 = vpop.f32.mrb[132].mxu0  ;;  %v5651_v22 = vpop.f32.mrb[101].mxu1 }
 0x47e   : > { %v5652_v29 = vadd.f32 %v5651_v22, %v5650_v25  ;;  %v5715_v41 = vpop.f32.mrb[133].mxu0  ;;  %v5653_v6 = vpop.f32.mrb[102].mxu1 }
 0x47f   : > { %v5716_v47 = vadd.f32 %v5715_v41, %v5714_v1  ;;  %v5717_v48 = vpop.f32.mrb[134].mxu0  ;;  %v5654_v55 = vpop.f32.mrb[103].mxu1 }
 0x480   : > { %v4709_v18 = vadd.f32 %v5652_v29, %v7833_v14  ;;  %v5655_v39 = vadd.f32 %v5654_v55, %v5653_v6  ;;  %v5718_v13 = vpop.f32.mrb[135].mxu0 }
 0x481   : > { %v5719_v27 = vadd.f32 %v5718_v13, %v5717_v48 }
 0x482   : > { %v7842_v9 = vadd.f32 %v5716_v47, %v4709_v18  ;;  %v4712_v33 = vadd.f32 %v5655_v39, %v7833_v14 }
 0x484   : > { %v7845_v3 = vadd.f32 %v5719_v27, %v4712_v33  ;;  %v5656_v8 = vpop.f32.mrb[104].mxu1 }
 0x485   : > { %v5720_v61 = vpop.f32.mrb[136].mxu0  ;;  %v5657_v49 = vpop.f32.mrb[105].mxu1 }
 0x486   : > { %v5658_v30 = vadd.f32 %v5657_v49, %v5656_v8  ;;  %v5721_v7 = vpop.f32.mrb[137].mxu0  ;;  %v5659_v34 = vpop.f32.mrb[106].mxu1 }
 0x487   : > { %v5722_v59 = vadd.f32 %v5721_v7, %v5720_v61  ;;  %v5723_v35 = vpop.f32.mrb[138].mxu0  ;;  %v5660_v4 = vpop.f32.mrb[107].mxu1 }
 0x488   : > { %v4717_v31 = vadd.f32 %v5658_v30, %v7833_v14  ;;  %v5661_v21 = vadd.f32 %v5660_v4, %v5659_v34  ;;  %v5724_v53 = vpop.f32.mrb[139].mxu0 }
 0x489   : > { %v5725_v50 = vadd.f32 %v5724_v53, %v5723_v35 }
 0x48a   : > { %v7848_v63 = vadd.f32 %v5722_v59, %v4717_v31  ;;  %v4720_v54 = vadd.f32 %v5661_v21, %v7833_v14 }
 0x48c   : > { %v7851_v28 = vadd.f32 %v5725_v50, %v4720_v54  ;;  %v5662_v17 = vpop.f32.mrb[108].mxu1 }
 0x48d   : > { %v5726_v23 = vpop.f32.mrb[140].mxu0  ;;  %v5663_v2 = vpop.f32.mrb[109].mxu1 }
 0x48e   : > { %v5664_v16 = vadd.f32 %v5663_v2, %v5662_v17  ;;  %v5727_v52 = vpop.f32.mrb[141].mxu0  ;;  %v5665_v24 = vpop.f32.mrb[110].mxu1 }
 0x48f   : > { %v5728_v57 = vadd.f32 %v5727_v52, %v5726_v23  ;;  %v5729_v36 = vpop.f32.mrb[142].mxu0  ;;  %v5666_v19 = vpop.f32.mrb[111].mxu1 }
 0x490   : > { %v4725_v5 = vadd.f32 %v5664_v16, %v7833_v14  ;;  %v5667_v38 = vadd.f32 %v5666_v19, %v5665_v24  ;;  %v5730_v44 = vpop.f32.mrb[143].mxu0 }
 0x491   : > { %v5731_v32 = vadd.f32 %v5730_v44, %v5729_v36 }
 0x492   : > { %v7854_v42 = vadd.f32 %v5728_v57, %v4725_v5  ;;  %v4728_v20 = vadd.f32 %v5667_v38, %v7833_v14 }
 0x494   : > { %v7857_v12 = vadd.f32 %v5731_v32, %v4728_v20  ;;  %v5668_v43 = vpop.f32.mrb[112].mxu1 }
 0x495   : > { %v5732_v26 = vpop.f32.mrb[144].mxu0  ;;  %v5669_v45 = vpop.f32.mrb[113].mxu1 }
 0x496   : > { %v5670_v40 = vadd.f32 %v5669_v45, %v5668_v43  ;;  %v5733_v56 = vpop.f32.mrb[145].mxu0  ;;  %v5671_v37 = vpop.f32.mrb[114].mxu1 }
 0x497   : > { %v5734_v15 = vadd.f32 %v5733_v56, %v5732_v26  ;;  %v5735_v0 = vpop.f32.mrb[146].mxu0  ;;  %v5672_v10 = vpop.f32.mrb[115].mxu1 }
 0x498   : > { %v4733_v11 = vadd.f32 %v5670_v40, %v7833_v14  ;;  %v5673_v58 = vadd.f32 %v5672_v10, %v5671_v37  ;;  %v5736_v46 = vpop.f32.mrb[147].mxu0 }
 0x499   : > { %v5737_v51 = vadd.f32 %v5736_v46, %v5735_v0 }
 0x49a   : > { %v7860_v25 = vadd.f32 %v5734_v15, %v4733_v11  ;;  %v4736_v1 = vadd.f32 %v5673_v58, %v7833_v14 }
 0x49c   : > { %v7863_v22 = vadd.f32 %v5737_v51, %v4736_v1  ;;  %v5674_v29 = vpop.f32.mrb[116].mxu1 }
 0x49d   : > { %v5738_v41 = vpop.f32.mrb[148].mxu0  ;;  %v5675_v6 = vpop.f32.mrb[117].mxu1 }
 0x49e   : > { %v5676_v47 = vadd.f32 %v5675_v6, %v5674_v29  ;;  %v5739_v48 = vpop.f32.mrb[149].mxu0  ;;  %v5677_v55 = vpop.f32.mrb[118].mxu1 }
 0x49f   : > { %v5740_v18 = vadd.f32 %v5739_v48, %v5738_v41  ;;  %v5741_v39 = vpop.f32.mrb[150].mxu0  ;;  %v5678_v13 = vpop.f32.mrb[119].mxu1 }
 0x4a0   : > { %v4741_v27 = vadd.f32 %v5676_v47, %v7833_v14  ;;  %v5679_v33 = vadd.f32 %v5678_v13, %v5677_v55  ;;  %v5742_v8 = vpop.f32.mrb[151].mxu0 }
 0x4a1   : > { %v5743_v61 = vadd.f32 %v5742_v8, %v5741_v39 }
 0x4a2   : > { %v7866_v49 = vadd.f32 %v5740_v18, %v4741_v27  ;;  %v4744_v30 = vadd.f32 %v5679_v33, %v7833_v14 }
 0x4a4   : > { %v7869_v7 = vadd.f32 %v5743_v61, %v4744_v30  ;;  %v5680_v34 = vpop.f32.mrb[120].mxu1 }
 0x4a5   : > { %v5744_v59 = vpop.f32.mrb[152].mxu0  ;;  %v5681_v35 = vpop.f32.mrb[121].mxu1 }
 0x4a6   : > { %v5682_v4 = vadd.f32 %v5681_v35, %v5680_v34  ;;  %v5745_v31 = vpop.f32.mrb[153].mxu0  ;;  %v5683_v21 = vpop.f32.mrb[122].mxu1 }
 0x4a7   : > { %v5746_v53 = vadd.f32 %v5745_v31, %v5744_v59  ;;  %v5747_v50 = vpop.f32.mrb[154].mxu0  ;;  %v5684_v54 = vpop.f32.mrb[123].mxu1 }
 0x4a8   : > { %v4749_v17 = vadd.f32 %v5682_v4, %v7833_v14  ;;  %v5685_v23 = vadd.f32 %v5684_v54, %v5683_v21  ;;  %v5748_v2 = vpop.f32.mrb[155].mxu0 }
 0x4a9   : > { %v5749_v16 = vadd.f32 %v5748_v2, %v5747_v50 }
 0x4aa   : > { %v7872_v52 = vadd.f32 %v5746_v53, %v4749_v17  ;;  %v4752_v24 = vadd.f32 %v5685_v23, %v7833_v14 }
 0x4ac   : > { %v7875_v57 = vadd.f32 %v5749_v16, %v4752_v24  ;;  %v5686_v36 = vpop.f32.mrb[124].mxu1 }
 0x4ad   : > { %v5750_v19 = vpop.f32.mrb[156].mxu0  ;;  %v5687_v5 = vpop.f32.mrb[125].mxu1 }
 0x4ae   : > { %v5688_v38 = vadd.f32 %v5687_v5, %v5686_v36  ;;  %v5751_v44 = vpop.f32.mrb[157].mxu0  ;;  %v5689_v32 = vpop.f32.mrb[126].mxu1 }
 0x4af   : > { %v5752_v20 = vadd.f32 %v5751_v44, %v5750_v19  ;;  %v5753_v43 = vpop.f32.mrb[158].mxu0  ;;  %v5690_v26 = vpop.f32.mrb[127].mxu1 }
 0x4b0   : > { %v4757_v45 = vadd.f32 %v5688_v38, %v7833_v14  ;;  %v5691_v40 = vadd.f32 %v5690_v26, %v5689_v32  ;;  %v5754_v56 = vpop.f32.mrb[159].mxu0 }
 0x4b1   : > { %v5755_v37 = vadd.f32 %v5754_v56, %v5753_v43 }
 0x4b2   : > { %v7878_v15 = vadd.f32 %v5752_v20, %v4757_v45  ;;  %v4760_v0 = vadd.f32 %v5691_v40, %v7833_v14 }
 0x4b4   : > { %v7881_v10 = vadd.f32 %v5755_v37, %v4760_v0 }
 0x4f4   : > { %v5772_v11 = vpop.f32.mrb[128].mxu1 }
 0x4f5   : > { %v5773_v58 = vpop.f32.mrb[129].mxu1 }
 0x4f6   : > { %v5836_v46 = vpop.f32.mrb[160].mxu0  ;;  %v5774_v51 = vadd.f32 %v5773_v58, %v5772_v11  ;;  %v5775_v1 = vpop.f32.mrb[130].mxu1 }
 0x4f7   : > { %v5837_v29 = vpop.f32.mrb[161].mxu0  ;;  %v5776_v41 = vpop.f32.mrb[131].mxu1 }
 0x4f8   : > { %v4895_v6 = vadd.f32 %v5774_v51, %v7836_v62  ;;  %v5838_v47 = vadd.f32 %v5837_v29, %v5836_v46  ;;  %v5839_v48 = vpop.f32.mrb[162].mxu0  ;;  %v5777_v55 = vadd.f32 %v5776_v41, %v5775_v1 }
 0x4f9   : > { %v5840_v18 = vpop.f32.mrb[163].mxu0 }
 0x4fa   : > { %v4992_v39 = vadd.f32 %v5838_v47, %v4895_v6  ;;  %v4898_v13 = vadd.f32 %v5777_v55, %v7839_v60  ;;  %v5841_v14 = vadd.f32 %v5840_v18, %v5839_v48 }
 0x4fc   : > { %5054 = vst [vmem:[%s7886_s24] sm:$0xff] %v4992_v39  ;;  %v4995_v27 = vadd.f32 %v5841_v14, %v4898_v13  ;;  %v5778_v33 = vpop.f32.mrb[132].mxu1 }
 0x4fd   : > { %v5779_v8 = vpop.f32.mrb[133].mxu1 }
 0x4fe   : > { %5055 = vst [vmem:[%s7886_s24 + $0x8] sm:$0xff] %v4995_v27  ;;  %v5842_v61 = vpop.f32.mrb[164].mxu0  ;;  %v5780_v62 = vadd.f32 %v5779_v8, %v5778_v33  ;;  %v5781_v30 = vpop.f32.mrb[134].mxu1 }
 0x4ff   : > { %v5843_v34 = vpop.f32.mrb[165].mxu0  ;;  %v5782_v59 = vpop.f32.mrb[135].mxu1 }
 0x500   : > { %v4903_v35 = vadd.f32 %v5780_v62, %v7842_v9  ;;  %v5844_v60 = vadd.f32 %v5843_v34, %v5842_v61  ;;  %v5845_v4 = vpop.f32.mrb[166].mxu0  ;;  %v5783_v31 = vadd.f32 %v5782_v59, %v5781_v30 }
 0x501   : > { %v5846_v21 = vpop.f32.mrb[167].mxu0 }
 0x502   : > { %v5000_v53 = vadd.f32 %v5844_v60, %v4903_v35  ;;  %v4906_v50 = vadd.f32 %v5783_v31, %v7845_v3  ;;  %v5847_v54 = vadd.f32 %v5846_v21, %v5845_v4 }
 0x504   : > { %5056 = vst [vmem:[%s7886_s24 + $0x10] sm:$0xff] %v5000_v53  ;;  %v5003_v17 = vadd.f32 %v5847_v54, %v4906_v50  ;;  %v5784_v23 = vpop.f32.mrb[136].mxu1 }
 0x505   : > { %v5785_v2 = vpop.f32.mrb[137].mxu1 }
 0x506   : > { %5057 = vst [vmem:[%s7886_s24 + $0x18] sm:$0xff] %v5003_v17  ;;  %v5848_v16 = vpop.f32.mrb[168].mxu0  ;;  %v5786_v24 = vadd.f32 %v5785_v2, %v5784_v23  ;;  %v5787_v36 = vpop.f32.mrb[138].mxu1 }
 0x507   : > { %v5849_v19 = vpop.f32.mrb[169].mxu0  ;;  %v5788_v9 = vpop.f32.mrb[139].mxu1 }
 0x508   : > { %v4911_v5 = vadd.f32 %v5786_v24, %v7848_v63  ;;  %v5850_v38 = vadd.f32 %v5849_v19, %v5848_v16  ;;  %v5851_v44 = vpop.f32.mrb[170].mxu0  ;;  %v5789_v32 = vadd.f32 %v5788_v9, %v5787_v36 }
 0x509   : > { %v5852_v20 = vpop.f32.mrb[171].mxu0 }
 0x50a   : > { %v5008_v3 = vadd.f32 %v5850_v38, %v4911_v5  ;;  %v4914_v43 = vadd.f32 %v5789_v32, %v7851_v28  ;;  %v5853_v26 = vadd.f32 %v5852_v20, %v5851_v44 }
 0x50c   : > { %5058 = vst [vmem:[%s7886_s24 + $0x20] sm:$0xff] %v5008_v3  ;;  %v5011_v45 = vadd.f32 %v5853_v26, %v4914_v43  ;;  %v5790_v40 = vpop.f32.mrb[140].mxu1 }
 0x50d   : > { %v5791_v56 = vpop.f32.mrb[141].mxu1 }
 0x50e   : > { %5059 = vst [vmem:[%s7886_s24 + $0x28] sm:$0xff] %v5011_v45  ;;  %v5854_v37 = vpop.f32.mrb[172].mxu0  ;;  %v5792_v0 = vadd.f32 %v5791_v56, %v5790_v40  ;;  %v5793_v11 = vpop.f32.mrb[142].mxu1 }
 0x50f   : > { %v5855_v58 = vpop.f32.mrb[173].mxu0  ;;  %v5794_v63 = vpop.f32.mrb[143].mxu1 }
 0x510   : > { %v4919_v46 = vadd.f32 %v5792_v0, %v7854_v42  ;;  %v5856_v51 = vadd.f32 %v5855_v58, %v5854_v37  ;;  %v5857_v1 = vpop.f32.mrb[174].mxu0  ;;  %v5795_v29 = vadd.f32 %v5794_v63, %v5793_v11 }
 0x511   : > { %v5858_v41 = vpop.f32.mrb[175].mxu0 }
 0x512   : > { %v5016_v28 = vadd.f32 %v5856_v51, %v4919_v46  ;;  %v4922_v6 = vadd.f32 %v5795_v29, %v7857_v12  ;;  %v5859_v47 = vadd.f32 %v5858_v41, %v5857_v1 }
 0x514   : > { %5060 = vst [vmem:[%s7886_s24 + $0x30] sm:$0xff] %v5016_v28  ;;  %v5019_v48 = vadd.f32 %v5859_v47, %v4922_v6  ;;  %v5796_v55 = vpop.f32.mrb[144].mxu1 }
 0x515   : > { %v5797_v18 = vpop.f32.mrb[145].mxu1 }
 0x516   : > { %5061 = vst [vmem:[%s7886_s24 + $0x38] sm:$0xff] %v5019_v48  ;;  %v5860_v39 = vpop.f32.mrb[176].mxu0  ;;  %v5798_v13 = vadd.f32 %v5797_v18, %v5796_v55  ;;  %v5799_v14 = vpop.f32.mrb[146].mxu1 }
 0x517   : > { %v5861_v27 = vpop.f32.mrb[177].mxu0  ;;  %v5800_v42 = vpop.f32.mrb[147].mxu1 }
 0x518   : > { %v4927_v33 = vadd.f32 %v5798_v13, %v7860_v25  ;;  %v5862_v8 = vadd.f32 %v5861_v27, %v5860_v39  ;;  %v5863_v61 = vpop.f32.mrb[178].mxu0  ;;  %v5801_v62 = vadd.f32 %v5800_v42, %v5799_v14 }
 0x519   : > { %v5864_v30 = vpop.f32.mrb[179].mxu0 }
 0x51a   : > { %v5024_v12 = vadd.f32 %v5862_v8, %v4927_v33  ;;  %v4930_v34 = vadd.f32 %v5801_v62, %v7863_v22  ;;  %v5865_v59 = vadd.f32 %v5864_v30, %v5863_v61 }
 0x51c   : > { %5062 = vst [vmem:[%s7886_s24 + $0x40] sm:$0xff] %v5024_v12  ;;  %v5027_v35 = vadd.f32 %v5865_v59, %v4930_v34  ;;  %v5802_v60 = vpop.f32.mrb[148].mxu1 }
 0x51d   : > { %v5803_v4 = vpop.f32.mrb[149].mxu1 }
 0x51e   : > { %5063 = vst [vmem:[%s7886_s24 + $0x48] sm:$0xff] %v5027_v35  ;;  %v5866_v31 = vpop.f32.mrb[180].mxu0  ;;  %v5804_v21 = vadd.f32 %v5803_v4, %v5802_v60  ;;  %v5805_v53 = vpop.f32.mrb[150].mxu1 }
 0x51f   : > { %v5867_v50 = vpop.f32.mrb[181].mxu0  ;;  %v5806_v25 = vpop.f32.mrb[151].mxu1 }
 0x520   : > { %v4935_v54 = vadd.f32 %v5804_v21, %v7866_v49  ;;  %v5868_v17 = vadd.f32 %v5867_v50, %v5866_v31  ;;  %v5869_v23 = vpop.f32.mrb[182].mxu0  ;;  %v5807_v2 = vadd.f32 %v5806_v25, %v5805_v53 }
 0x521   : > { %v5870_v16 = vpop.f32.mrb[183].mxu0 }
 0x522   : > { %v5032_v22 = vadd.f32 %v5868_v17, %v4935_v54  ;;  %v4938_v24 = vadd.f32 %v5807_v2, %v7869_v7  ;;  %v5871_v36 = vadd.f32 %v5870_v16, %v5869_v23 }
 0x524   : > { %5064 = vst [vmem:[%s7886_s24 + $0x50] sm:$0xff] %v5032_v22  ;;  %v5035_v19 = vadd.f32 %v5871_v36, %v4938_v24  ;;  %v5808_v9 = vpop.f32.mrb[152].mxu1 }
 0x525   : > { %v5809_v5 = vpop.f32.mrb[153].mxu1 }
 0x526   : > { %5065 = vst [vmem:[%s7886_s24 + $0x58] sm:$0xff] %v5035_v19  ;;  %v5810_v38 = vadd.f32 %v5809_v5, %v5808_v9  ;;  %v5811_v44 = vpop.f32.mrb[154].mxu1 }
 0x527   : > { %v5812_v32 = vpop.f32.mrb[155].mxu1 }
 0x528   : > { %v4943_v20 = vadd.f32 %v5810_v38, %v7872_v52  ;;  %v5813_v3 = vadd.f32 %v5812_v32, %v5811_v44 }
 0x52a   : > { %v4946_v49 = vadd.f32 %v5813_v3, %v7875_v57 }
 0x52c   : > { %v5814_v43 = vpop.f32.mrb[156].mxu1 }
 0x52d   : > { %v5815_v26 = vpop.f32.mrb[157].mxu1 }
 0x52e   : > { %v5816_v45 = vadd.f32 %v5815_v26, %v5814_v43  ;;  %v5817_v7 = vpop.f32.mrb[158].mxu1 }
 0x52f   : > { %v5818_v40 = vpop.f32.mrb[159].mxu1 }
 0x530   : > { %v4951_v56 = vadd.f32 %v5816_v45, %v7878_v15  ;;  %v5819_v37 = vadd.f32 %v5818_v40, %v5817_v7 }
 0x532   : > { %v4954_v0 = vadd.f32 %v5819_v37, %v7881_v10 }
 0x534   : > { %v5872_v11 = vpop.f32.mrb[160].mxu1 }
 0x535   : > { %v5873_v58 = vpop.f32.mrb[161].mxu1 }
 0x536   : > { %v5874_v52 = vadd.f32 %v5873_v58, %v5872_v11  ;;  %v5875_v63 = vpop.f32.mrb[162].mxu1 }
 0x537   : > { %v5876_v46 = vpop.f32.mrb[163].mxu1 }
 0x538   : > { %v5040_v57 = vadd.f32 %v5874_v52, %v4943_v20  ;;  %v5877_v51 = vadd.f32 %v5876_v46, %v5875_v63 }
 0x53a   : > { %5066 = vst [vmem:[%s7886_s24 + $0x60] sm:$0xff] %v5040_v57  ;;  %v5043_v1 = vadd.f32 %v5877_v51, %v4946_v49 }
 0x53c   : > { %5067 = vst [vmem:[%s7886_s24 + $0x68] sm:$0xff] %v5043_v1  ;;  %v5878_v29 = vpop.f32.mrb[164].mxu1 }
 0x53d   : > { %v5879_v15 = vpop.f32.mrb[165].mxu1 }
 0x53e   : > { %v5880_v41 = vadd.f32 %v5879_v15, %v5878_v29  ;;  %v5881_v28 = vpop.f32.mrb[166].mxu1 }
 0x53f   : > { %v5882_v10 = vpop.f32.mrb[167].mxu1 }
 0x540   : > { %v5048_v6 = vadd.f32 %v5880_v41, %v4951_v56  ;;  %v5883_v47 = vadd.f32 %v5882_v10, %v5881_v28 }
 0x542   : > { %5068 = vst [vmem:[%s7886_s24 + $0x70] sm:$0xff] %v5048_v6  ;;  %v5051_v48 = vadd.f32 %v5883_v47, %v4954_v0 }
 0x544   : > { %5069 = vst [vmem:[%s7886_s24 + $0x78] sm:$0xff] %v5051_v48 }
 0x545   : > { %6601 = shalt.err (!%p6598_p13)
}
 0x546   : > { %s6602_s30 = scalar_lea.hbm %s7921_s15, 2048  ;;  %s6606_s14 = scalar_lea.hbm %s7978_s9, 4096 }
 0x547   : > { %p6603_p9 = scmp.ne.s32.totalorder %s7921_s15, %s6602_s30  ;;  %p6607_p4 = scmp.lt.u32.totalorder %s7921_s15, %s7978_s9 }
 0x548   : > { %p6608_p8 = scmp.lt.u32.totalorder %s6606_s14, %s6602_s30  ;;  %p6610_p10 = scmp.lt.u32.totalorder %s6602_s30, %s7921_s15 }
 0x549   : > { %p6604_p0 = pnand %p6603_p9, %p6893_p3 }
 0x54a   : > { %p6609_p6 = por %p6608_p8, %p6607_p4 }
 0x54b   : > { %p6605_p11 = pneg %p6604_p0 }
 0x54c   : > { %p6611_p5 = por %p6610_p10, %p6609_p6 }
 0x54e   : > { %p6612_p7 = pnand %p6611_p5, %p6605_p11 }
 0x550   : > { %6615 = shalt.err (!%p6612_p7)
}
 0x551   : > { %s6679_s25 = smov 128   ;;  %s6680_s29 = smov 8  }
 0x552   : > { %6174 = dma.vmem_to_hbm [thread:$0]  (%p6893_p3), %s7923_s18, 2048, %s7921_s15, %s5071_s17, %s6679_s25, %s6679_s25, %s6680_s29  }
 0x553 PF: > { %s8013_s16 = sld [smem:[#allocation16_spill]]  ;;  %s8014_s13 = sld [smem:[#allocation17_spill]] }
 0x554   : > { %p8016_p2 = scmp.ge.s32.totalorder %s6662_s12, 2 }
 0x559   : > { %s5099_s28 = sand.u32 1, %s8013_s16   ;;  %p8015_p12 = scmp.ne.s32.totalorder %s8014_s13, 0 }
 0x55a   : > { %s5100_s22 = scalar_lea.sflag [#allocation4], %s5099_s28 }
 0x55b   : > { %p6194_p1 = pnand %p8016_p2, %p8015_p12 }
 0x55d   : > { %6645 = dma.done.wait (!%p6194_p1), %s5100_s22, 2048  }
 0x55e   : > { %6647 = vsyncadd (!%p6194_p1), %s5100_s22, 4294965248  ;;  %p24_p13 = scmp.ge.s32.totalorder %s6880_s21, 4   ;;  %s8017_s30 = smov %s6654_s10 }
 0x55f   : > { %s8018_s10 = smov %s6658_s11  ;;  %s8019_s11 = smov %s6889_s27 }
 0x560   : > { %s8020_s12 = smov %s6880_s21  ;;  %26 = sbr.rel (!%p24_p13) target bundleno = 9 (0x9), region = 117 }
 0x567   :  { %5105 = vsyncpa [#allocation3], 1 }
 0x568   :  { %5107 = vsyncpa [#allocation3 + $0x1], 1 }
 0x569   :  { %5108 = vsyncpa [#allocation6], 1 }
 0x56a   :  { %5109 = vsyncpa [#allocation9], 1 }
 0x56b   :  { %5110 = vsyncpa [#allocation4], 1 }
 0x56c   :  { %5112 = vsyncpa [#allocation4 + $0x1], 1 }

</bundles_post_ra>
